<compile_context>
chip_gen: v5e
topology: v5e:2x2
jax: 0.10.0
libtpu: 0.0.40
codegen_flags: <defaults>
</compile_context>

<pallas_src>
import math

import jax
import jax.numpy as jnp
from jax.experimental import pallas as pl
from jax.experimental.pallas import tpu as pltpu

# ----------------------------- config (small) --------------------------------
B = 2            # batch
SEQ = 8          # sequence length == images per sample (module: 64)
H = 128          # hidden size (module: 768)
NH = 4           # attention heads
HD = H // NH
FFN = 4 * H
NER_IN = 5       # nn.Linear(5, 64)
NER_HID = 64
IMG_C, IMG_S = 3, 16
PATCH = IMG_S * IMG_S          # spatial positions per image (16*16)
K9 = 9 * IMG_C                 # im2col contraction size for the 3x3 conv
STEM_C = 8                     # simplified "resnet" stem channels
VOCAB = 1024
IMG_TOK_0 = 1014
IMG_TOK_1 = 1015
VOCAB = max(VOCAB, IMG_TOK_1 + 1)   # special ids must be valid embedding rows
NSP_PAD = 128                  # NSP head padded to a full 128-lane store

LN_EPS_BERT = 1e-12            # HF BertEmbeddings / encoder LayerNorm eps
LN_EPS_2D = 1e-5               # nn.LayerNorm([64, 768]) default eps
ATTN_SCALE = 1.0 / math.sqrt(HD)


# ----------------------- kernel 1: fused embedding stage ----------------------
def _embed_kernel(ids_ref, we_ref, te_ref, pe_ref, eg_ref, eb_ref,
                  cols_ref, pool_ref, cw_ref, cb_ref, rw_ref, rb_ref,
                  ner_ref, nw1_ref, nb1_ref, nw2_ref, nb2_ref,
                  g2_ref, b2_ref, o_ref):
    # --- bert.embeddings: word + position + token_type, LayerNorm over H ---
    x = we_ref[0] + te_ref[0] + pe_ref[...]                    # (SEQ, H)
    mu = jnp.mean(x, axis=-1, keepdims=True)
    var = jnp.mean((x - mu) ** 2, axis=-1, keepdims=True)
    word = (x - mu) * jax.lax.rsqrt(var + LN_EPS_BERT) * eg_ref[...] + eb_ref[...]

    # --- zero word-emb rows at image-placeholder token positions (1014/1015) ---
    ids = ids_ref[0]                                           # (SEQ, 1) int32
    nonword = jnp.logical_or(ids == IMG_TOK_0, ids == IMG_TOK_1)
    word = word * (1.0 - nonword.astype(jnp.float32))          # (SEQ, H)

    # --- image branch: im2col conv (MXU) + ReLU + GAP-as-matmul + Linear(->H) ---
    conv = jnp.maximum(
        jnp.dot(cols_ref[0], cw_ref[...], preferred_element_type=jnp.float32)
        + cb_ref[...], 0.0)                                    # (SEQ*PATCH, STEM_C)
    pooled = jnp.dot(pool_ref[...], conv,
                     preferred_element_type=jnp.float32)       # (SEQ, STEM_C)
    img = jnp.dot(pooled, rw_ref[...],
                  preferred_element_type=jnp.float32) + rb_ref[...]   # (SEQ, H)

    # --- NER branch: Linear(5,64)+ReLU -> Linear(64,H)+ReLU (stays in VMEM) ---
    ner = jnp.maximum(
        jnp.dot(ner_ref[0], nw1_ref[...], preferred_element_type=jnp.float32)
        + nb1_ref[...], 0.0)                                   # (SEQ, 64)
    ner = jnp.maximum(
        jnp.dot(ner, nw2_ref[...], preferred_element_type=jnp.float32)
        + nb2_ref[...], 0.0)                                   # (SEQ, H)

    # --- shared LayerNorm([SEQ, H]) on each embedding type, then sum ---
    g2 = g2_ref[...]
    b2 = b2_ref[...]

    def ln2d(t):
        m = jnp.mean(t, axis=(0, 1), keepdims=True)
        v = jnp.mean((t - m) ** 2, axis=(0, 1), keepdims=True)
        return (t - m) * jax.lax.rsqrt(v + LN_EPS_2D) * g2 + b2

    o_ref[0] = ln2d(word) + ln2d(img) + ln2d(ner)


def fused_embeddings(p, input_ids, we, te, cols2d, ners_emb):
    B_ = input_ids.shape[0]
    ids3 = input_ids.astype(jnp.int32).reshape(B_, SEQ, 1)

    def perb(shape):
        return pl.BlockSpec(shape, lambda b: (b, 0, 0))

    def shared(shape):
        return pl.BlockSpec(shape, lambda b: (0, 0))

    return pl.pallas_call(
        _embed_kernel,
        out_shape=jax.ShapeDtypeStruct((B_, SEQ, H), jnp.float32),
        grid=(B_,),
        in_specs=[
            perb((1, SEQ, 1)),                 # ids
            perb((1, SEQ, H)),                 # gathered word embeddings
            perb((1, SEQ, H)),                 # gathered token-type embeddings
            shared((SEQ, H)),                  # position embeddings
            shared((1, H)), shared((1, H)),    # bert-emb LayerNorm gamma/beta
            perb((1, SEQ * PATCH, K9)),        # im2col columns
            shared((SEQ, SEQ * PATCH)),        # pooling matrix (GAP as matmul)
            shared((K9, STEM_C)), shared((1, STEM_C)),   # conv stem
            shared((STEM_C, H)), shared((1, H)),         # resnet fc
            perb((1, SEQ, NER_IN)),            # ner features
            shared((NER_IN, NER_HID)), shared((1, NER_HID)),
            shared((NER_HID, H)), shared((1, H)),
            shared((SEQ, H)), shared((SEQ, H)),          # LayerNorm([SEQ,H])
        ],
        out_specs=perb((1, SEQ, H)),
        compiler_params=pltpu.CompilerParams(dimension_semantics=("parallel",)),
    )(ids3, we, te, p["pos_emb"], p["emb_ln_g"], p["emb_ln_b"],
      cols2d, p["pool_mat"], p["conv_w"], p["conv_b"], p["rfc_w"], p["rfc_b"],
      ners_emb, p["ner_w1"], p["ner_b1"], p["ner_w2"], p["ner_b2"],
      p["ln2d_g"], p["ln2d_b"])


# ------------------ kernel 2: fused encoder + pooler + NSP head ----------------
def _encoder_kernel(x_ref, mask_ref, wqkv_ref, bqkv_ref, wo_ref, bo_ref,
                    ag_ref, ab_ref, w1_ref, b1_ref, w2_ref, b2_ref,
                    fg_ref, fb_ref, pw_ref, pb_ref, nw_ref, nb_ref, o_ref):
    x = x_ref[0]                                   # (SEQ, H)
    bias = (1.0 - mask_ref[0]) * -10000.0          # (1, SEQ) additive attn mask

    def ln(t, g, b):
        mu = jnp.mean(t, axis=-1, keepdims=True)
        var = jnp.mean((t - mu) ** 2, axis=-1, keepdims=True)
        return (t - mu) * jax.lax.rsqrt(var + LN_EPS_BERT) * g + b

    # --- self-attention: single fused QKV matmul, per-head softmax, fused WO ---
    qkv = jnp.dot(x, wqkv_ref[...], preferred_element_type=jnp.float32) + bqkv_ref[...]
    wo = wo_ref[...]
    attn_out = bo_ref[...]                         # (1, H), broadcasts on add
    for h in range(NH):                            # static unroll (NH=4)
        q = qkv[:, h * HD:(h + 1) * HD]            # (SEQ, HD)
        k = qkv[:, H + h * HD:H + (h + 1) * HD]
        v = qkv[:, 2 * H + h * HD:2 * H + (h + 1) * HD]
        s = jax.lax.dot_general(q, k, (((1,), (1,)), ((), ())),
                                preferred_element_type=jnp.float32)
        s = s * ATTN_SCALE + bias                  # (SEQ, SEQ)
        s = s - jnp.max(s, axis=-1, keepdims=True)
        pexp = jnp.exp(s)
        pexp = pexp * pl.reciprocal(jnp.sum(pexp, axis=-1, keepdims=True),
                                    approx=True)
        ctx_h = jnp.dot(pexp, v, preferred_element_type=jnp.float32)  # (SEQ, HD)
        # ctx @ WO == sum_h ctx_h @ WO[h*HD:(h+1)*HD]  (no lane concat needed)
        attn_out = attn_out + jnp.dot(ctx_h, wo[h * HD:(h + 1) * HD, :],
                                      preferred_element_type=jnp.float32)
    x = ln(attn_out + x, ag_ref[...], ab_ref[...])

    # --- FFN ---
    # TODO(synk): HF BERT uses exact erf GELU; tanh-approx GELU used here.
    ff = jax.nn.gelu(
        jnp.dot(x, w1_ref[...], preferred_element_type=jnp.float32) + b1_ref[...],
        approximate=True)
    ff = jnp.dot(ff, w2_ref[...], preferred_element_type=jnp.float32) + b2_ref[...]
    x = ln(ff + x, fg_ref[...], fb_ref[...])

    # --- pooler (CLS token) + NSP head (padded to 128 lanes) ---
    cls = x[0:1, :]
    pooled = jnp.tanh(
        jnp.dot(cls, pw_ref[...], preferred_element_type=jnp.float32) + pb_ref[...])
    o_ref[0] = (jnp.dot(pooled, nw_ref[...], preferred_element_type=jnp.float32)
                + nb_ref[...])


def encoder_head(p, emb, masks_f32):
    B_ = emb.shape[0]

    def shared(shape):
        return pl.BlockSpec(shape, lambda b: (0, 0))

    out = pl.pallas_call(
        _encoder_kernel,
        out_shape=jax.ShapeDtypeStruct((B_, 1, NSP_PAD), jnp.float32),
        grid=(B_,),
        in_specs=[
            pl.BlockSpec((1, SEQ, H), lambda b: (b, 0, 0)),   # input embeddings
            pl.BlockSpec((1, 1, SEQ), lambda b: (b, 0, 0)),   # attention mask
            shared((H, 3 * H)), shared((1, 3 * H)),           # fused QKV
            shared((H, H)), shared((1, H)),                   # attn output proj
            shared((1, H)), shared((1, H)),                   # attn LayerNorm
            shared((H, FFN)), shared((1, FFN)),               # FFN in
            shared((FFN, H)), shared((1, H)),                 # FFN out
            shared((1, H)), shared((1, H)),                   # FFN LayerNorm
            shared((H, H)), shared((1, H)),                   # pooler
            shared((H, NSP_PAD)), shared((1, NSP_PAD)),       # NSP head (padded)
        ],
        out_specs=pl.BlockSpec((1, 1, NSP_PAD), lambda b: (b, 0, 0)),
        compiler_params=pltpu.CompilerParams(dimension_semantics=("parallel",)),
    )(emb, masks_f32, p["wqkv"], p["bqkv"], p["wo"], p["bo"],
      p["attn_ln_g"], p["attn_ln_b"], p["ffn_w1"], p["ffn_b1"],
      p["ffn_w2"], p["ffn_b2"], p["ffn_ln_g"], p["ffn_ln_b"],
      p["pool_w"], p["pool_b"], p["nsp_w_pad"], p["nsp_b_pad"])
    return out[:, 0, :2]                                      # (B, 2) logits


# ------------------------------- glue helpers ---------------------------------
def im2col3x3_flat(imgs_nchw):
    """(B*SEQ, C, Hs, Ws) NCHW -> (B, SEQ*Hs*Ws, 9*C) im2col columns."""
    N = imgs_nchw.shape[0]
    x = jnp.transpose(imgs_nchw, (0, 2, 3, 1))                # NCHW -> NHWC
    xp = jnp.pad(x, ((0, 0), (1, 1), (1, 1), (0, 0)))
    cols = [xp[:, dy:dy + IMG_S, dx:dx + IMG_S, :]
            for dy in range(3) for dx in range(3)]
    cols = jnp.concatenate(cols, axis=-1)                     # (N, Hs, Ws, 9C)
    return cols.reshape(N // SEQ, SEQ * PATCH, K9)


# ------------------------------ parameters ------------------------------------
def init_params(key):
    keys = iter(jax.random.split(key, 32))

    def nrm(shape, scale=0.02):
        return scale * jax.random.normal(next(keys), shape, dtype=jnp.float32)

    p = {}
    # bert.embeddings
    p["word_emb"] = nrm((VOCAB, H))
    p["pos_emb"] = nrm((SEQ, H))
    p["type_emb"] = nrm((2, H))
    p["emb_ln_g"] = jnp.ones((1, H), jnp.float32)
    p["emb_ln_b"] = jnp.zeros((1, H), jnp.float32)
    # simplified resnet encoder (conv stem + GAP + fc)
    p["conv_w"] = nrm((K9, STEM_C))
    p["conv_b"] = jnp.zeros((1, STEM_C), jnp.float32)
    p["rfc_w"] = nrm((STEM_C, H))
    p["rfc_b"] = jnp.zeros((1, H), jnp.float32)
    # global-average-pool expressed as a (SEQ, SEQ*PATCH) matmul constant
    p["pool_mat"] = (jnp.arange(SEQ, dtype=jnp.int32)[:, None] ==
                     (jnp.arange(SEQ * PATCH, dtype=jnp.int32)[None, :] // PATCH)
                     ).astype(jnp.float32) / PATCH
    # ner_embedding_layer: Linear(5,64)+ReLU, Linear(64,H)+ReLU
    p["ner_w1"] = nrm((NER_IN, NER_HID))
    p["ner_b1"] = jnp.zeros((1, NER_HID), jnp.float32)
    p["ner_w2"] = nrm((NER_HID, H))
    p["ner_b2"] = jnp.zeros((1, H), jnp.float32)
    # self.ln = LayerNorm([SEQ, H])
    p["ln2d_g"] = jnp.ones((SEQ, H), jnp.float32)
    p["ln2d_b"] = jnp.zeros((SEQ, H), jnp.float32)
    # single encoder layer (Q/K/V fused into one (H, 3H) weight)
    p["wqkv"] = nrm((H, 3 * H))
    p["bqkv"] = jnp.zeros((1, 3 * H), jnp.float32)
    p["wo"] = nrm((H, H))
    p["bo"] = jnp.zeros((1, H), jnp.float32)
    p["attn_ln_g"] = jnp.ones((1, H), jnp.float32)
    p["attn_ln_b"] = jnp.zeros((1, H), jnp.float32)
    p["ffn_w1"] = nrm((H, FFN))
    p["ffn_b1"] = jnp.zeros((1, FFN), jnp.float32)
    p["ffn_w2"] = nrm((FFN, H))
    p["ffn_b2"] = jnp.zeros((1, H), jnp.float32)
    p["ffn_ln_g"] = jnp.ones((1, H), jnp.float32)
    p["ffn_ln_b"] = jnp.zeros((1, H), jnp.float32)
    # pooler + NSP head (NSP weight zero-padded from 2 -> 128 output lanes)
    p["pool_w"] = nrm((H, H))
    p["pool_b"] = jnp.zeros((1, H), jnp.float32)
    p["nsp_w_pad"] = jnp.pad(nrm((H, 2)), ((0, 0), (0, NSP_PAD - 2)))
    p["nsp_b_pad"] = jnp.zeros((1, NSP_PAD), jnp.float32)
    return p


# ------------------------------ forward pass -----------------------------------
def bert_nspm_forward(p, input_ids, input_masks, input_imgs, input_ners,
                      input_ners_embeddings):
    del input_ners  # unused in the reference forward
    B_, L_ = input_ids.shape

    # Embedding-table gathers stay in XLA glue (data-dependent gather).
    # NOTE: module passes input_masks as token_type_ids (kept intentionally).
    we = jnp.take(p["word_emb"], input_ids.astype(jnp.int32), axis=0)   # (B,L,H)
    te = jnp.take(p["type_emb"], input_masks.astype(jnp.int32), axis=0) # (B,L,H)

    # im2col layout prep for the 3x3 conv stem (pure layout glue).
    cols = im2col3x3_flat(input_imgs.reshape(B_ * L_, IMG_C, IMG_S, IMG_S))

    # Fused embedding stage: one pallas_call, grid=(B,) parallel.
    emb = fused_embeddings(p, input_ids, we, te, cols, input_ners_embeddings)

    # Fused encoder + pooler + NSP head: one pallas_call, grid=(B,) parallel.
    masks_f32 = input_masks.astype(jnp.float32).reshape(B_, 1, L_)
    return encoder_head(p, emb, masks_f32)                    # (B, 2)


# ---------------------------------- main ---------------------------------------
if __name__ == "__main__":
    key = jax.random.PRNGKey(0)
    pkey, k1, k2, k3 = jax.random.split(key, 4)
    params = init_params(pkey)

    input_ids = jax.random.randint(k1, (B, SEQ), 0, 1000, dtype=jnp.int32)
    # plant image-placeholder tokens (ids 1014 / 1015) to exercise the masking
    input_ids = input_ids.at[0, 2].set(IMG_TOK_0).at[0, 3].set(IMG_TOK_1)
    input_ids = input_ids.at[1, 5].set(IMG_TOK_0)

    input_masks = jnp.ones((B, SEQ), dtype=jnp.int32).at[1, SEQ - 1].set(0)
    input_imgs = jax.random.normal(k2, (B, SEQ, IMG_C, IMG_S, IMG_S),
                                   dtype=jnp.float32)          # NCHW per image
    input_ners = jnp.zeros((B, SEQ), dtype=jnp.int32)           # unused in forward
    input_ners_embeddings = jax.random.normal(k3, (B, SEQ, NER_IN),
                                              dtype=jnp.float32)

    fwd = jax.jit(bert_nspm_forward)
    logits = fwd(params, input_ids, input_masks, input_imgs, input_ners,
                 input_ners_embeddings)
    jax.block_until_ready(logits)
    assert logits.shape == (B, 2) and logits.dtype == jnp.float32
    print("KERNEL_OK")
</pallas_src>

<mosaic_0001>
module attributes {stable_mosaic.version = 11 : i64} {
  func.func @_encoder_kernel(%arg0: i32, %arg1: memref<1x8x128xf32, #tpu.memory_space<vmem>>, %arg2: memref<1x1x8xf32, #tpu.memory_space<vmem>>, %arg3: memref<128x384xf32, #tpu.memory_space<vmem>>, %arg4: memref<1x384xf32, #tpu.memory_space<vmem>>, %arg5: memref<128x128xf32, #tpu.memory_space<vmem>>, %arg6: memref<1x128xf32, #tpu.memory_space<vmem>>, %arg7: memref<1x128xf32, #tpu.memory_space<vmem>>, %arg8: memref<1x128xf32, #tpu.memory_space<vmem>>, %arg9: memref<128x512xf32, #tpu.memory_space<vmem>>, %arg10: memref<1x512xf32, #tpu.memory_space<vmem>>, %arg11: memref<512x128xf32, #tpu.memory_space<vmem>>, %arg12: memref<1x128xf32, #tpu.memory_space<vmem>>, %arg13: memref<1x128xf32, #tpu.memory_space<vmem>>, %arg14: memref<1x128xf32, #tpu.memory_space<vmem>>, %arg15: memref<128x128xf32, #tpu.memory_space<vmem>>, %arg16: memref<1x128xf32, #tpu.memory_space<vmem>>, %arg17: memref<128x128xf32, #tpu.memory_space<vmem>>, %arg18: memref<1x128xf32, #tpu.memory_space<vmem>>, %arg19: memref<1x1x128xf32, #tpu.memory_space<vmem>>) attributes {dimension_semantics = [#tpu.dimension_semantics<parallel>], iteration_bounds = array<i64: 2>, scalar_prefetch = 0 : i64, scratch_operands = 0 : i64, tpu.core_type = #tpu.core_type<tc>, window_params = [{transform_indices = @transform_0, window_bounds = array<i64: 1, 8, 128>}, {transform_indices = @transform_1, window_bounds = array<i64: 1, 1, 8>}, {pipeline_mode = #tpu.pipeline_mode<synchronous>, transform_indices = @transform_2, window_bounds = array<i64: 128, 384>}, {pipeline_mode = #tpu.pipeline_mode<synchronous>, transform_indices = @transform_3, window_bounds = array<i64: 1, 384>}, {pipeline_mode = #tpu.pipeline_mode<synchronous>, transform_indices = @transform_4, window_bounds = array<i64: 128, 128>}, {pipeline_mode = #tpu.pipeline_mode<synchronous>, transform_indices = @transform_5, window_bounds = array<i64: 1, 128>}, {pipeline_mode = #tpu.pipeline_mode<synchronous>, transform_indices = @transform_6, window_bounds = array<i64: 1, 128>}, {pipeline_mode = #tpu.pipeline_mode<synchronous>, transform_indices = @transform_7, window_bounds = array<i64: 1, 128>}, {pipeline_mode = #tpu.pipeline_mode<synchronous>, transform_indices = @transform_8, window_bounds = array<i64: 128, 512>}, {pipeline_mode = #tpu.pipeline_mode<synchronous>, transform_indices = @transform_9, window_bounds = array<i64: 1, 512>}, {pipeline_mode = #tpu.pipeline_mode<synchronous>, transform_indices = @transform_10, window_bounds = array<i64: 512, 128>}, {pipeline_mode = #tpu.pipeline_mode<synchronous>, transform_indices = @transform_11, window_bounds = array<i64: 1, 128>}, {pipeline_mode = #tpu.pipeline_mode<synchronous>, transform_indices = @transform_12, window_bounds = array<i64: 1, 128>}, {pipeline_mode = #tpu.pipeline_mode<synchronous>, transform_indices = @transform_13, window_bounds = array<i64: 1, 128>}, {pipeline_mode = #tpu.pipeline_mode<synchronous>, transform_indices = @transform_14, window_bounds = array<i64: 128, 128>}, {pipeline_mode = #tpu.pipeline_mode<synchronous>, transform_indices = @transform_15, window_bounds = array<i64: 1, 128>}, {pipeline_mode = #tpu.pipeline_mode<synchronous>, transform_indices = @transform_16, window_bounds = array<i64: 128, 128>}, {pipeline_mode = #tpu.pipeline_mode<synchronous>, transform_indices = @transform_17, window_bounds = array<i64: 1, 128>}, {transform_indices = @transform_18, window_bounds = array<i64: 1, 1, 128>}]} {
    %c0 = arith.constant 0 : index
    %c0_0 = arith.constant 0 : index
    %c0_1 = arith.constant 0 : index
    %0 = vector.load %arg1[%c0, %c0_0, %c0_1] : memref<1x8x128xf32, #tpu.memory_space<vmem>>, vector<1x8x128xf32>
    %1 = vector.shape_cast %0 : vector<1x8x128xf32> to vector<8x128xf32>
    %c0_2 = arith.constant 0 : index
    %c0_3 = arith.constant 0 : index
    %c0_4 = arith.constant 0 : index
    %2 = vector.load %arg2[%c0_2, %c0_3, %c0_4] : memref<1x1x8xf32, #tpu.memory_space<vmem>>, vector<1x1x8xf32>
    %3 = vector.shape_cast %2 : vector<1x1x8xf32> to vector<1x8xf32>
    %cst = arith.constant 1.000000e+00 : f32
    %4 = vector.broadcast %cst : f32 to vector<1x8xf32>
    %5 = arith.subf %4, %3 : vector<1x8xf32>
    %cst_5 = arith.constant -1.000000e+04 : f32
    %6 = vector.broadcast %cst_5 : f32 to vector<1x8xf32>
    %7 = arith.mulf %5, %6 : vector<1x8xf32>
    %c0_6 = arith.constant 0 : index
    %c0_7 = arith.constant 0 : index
    %8 = vector.load %arg3[%c0_6, %c0_7] : memref<128x384xf32, #tpu.memory_space<vmem>>, vector<128x384xf32>
    %cst_8 = arith.constant dense<0.000000e+00> : vector<8x384xf32>
    %9 = tpu.matmul %1, %8, %cst_8 {dimension_numbers = #tpu.dot_dimension_numbers<[1], [0], [0], [1], [0, 0, 1, 1], [], []>} : vector<8x128xf32>, vector<128x384xf32>, vector<8x384xf32> -> vector<8x384xf32>
    %c0_9 = arith.constant 0 : index
    %c0_10 = arith.constant 0 : index
    %10 = vector.load %arg4[%c0_9, %c0_10] : memref<1x384xf32, #tpu.memory_space<vmem>>, vector<1x384xf32>
    %11 = vector.broadcast %10 : vector<1x384xf32> to vector<8x384xf32>
    %12 = arith.addf %9, %11 : vector<8x384xf32>
    %c0_11 = arith.constant 0 : index
    %c0_12 = arith.constant 0 : index
    %13 = vector.load %arg5[%c0_11, %c0_12] : memref<128x128xf32, #tpu.memory_space<vmem>>, vector<128x128xf32>
    %c0_13 = arith.constant 0 : index
    %c0_14 = arith.constant 0 : index
    %14 = vector.load %arg6[%c0_13, %c0_14] : memref<1x128xf32, #tpu.memory_space<vmem>>, vector<1x128xf32>
    %15 = vector.extract_strided_slice %12 {offsets = [0, 0], sizes = [8, 32], strides = [1, 1]} : vector<8x384xf32> to vector<8x32xf32>
    %16 = vector.extract_strided_slice %12 {offsets = [0, 128], sizes = [8, 32], strides = [1, 1]} : vector<8x384xf32> to vector<8x32xf32>
    %17 = vector.extract_strided_slice %12 {offsets = [0, 256], sizes = [8, 32], strides = [1, 1]} : vector<8x384xf32> to vector<8x32xf32>
    %cst_15 = arith.constant dense<0.000000e+00> : vector<8x8xf32>
    %18 = tpu.matmul %15, %16, %cst_15 {dimension_numbers = #tpu.dot_dimension_numbers<[1], [1], [0], [0], [0, 0, 1, 0], [], []>} : vector<8x32xf32>, vector<8x32xf32>, vector<8x8xf32> -> vector<8x8xf32>
    %cst_16 = arith.constant 0.176776692 : f32
    %19 = vector.broadcast %cst_16 : f32 to vector<8x8xf32>
    %20 = arith.mulf %18, %19 : vector<8x8xf32>
    %21 = vector.broadcast %7 : vector<1x8xf32> to vector<8x8xf32>
    %22 = arith.addf %20, %21 : vector<8x8xf32>
    %cst_17 = arith.constant dense<0xFF800000> : vector<8xf32>
    %23 = vector.multi_reduction <maximumf>, %22, %cst_17 [1] : vector<8x8xf32> to vector<8xf32>
    %24 = vector.shape_cast %23 : vector<8xf32> to vector<8x1xf32>
    %25 = vector.broadcast %24 : vector<8x1xf32> to vector<8x8xf32>
    %26 = arith.subf %22, %25 : vector<8x8xf32>
    %27 = math.exp %26 : vector<8x8xf32>
    %cst_18 = arith.constant dense<0.000000e+00> : vector<8xf32>
    %28 = vector.multi_reduction <add>, %27, %cst_18 [1] : vector<8x8xf32> to vector<8xf32>
    %29 = vector.shape_cast %28 : vector<8xf32> to vector<8x1xf32>
    %30 = tpu.reciprocal %29 {approx = true} : vector<8x1xf32> -> vector<8x1xf32>
    %31 = vector.broadcast %30 : vector<8x1xf32> to vector<8x8xf32>
    %32 = arith.mulf %27, %31 : vector<8x8xf32>
    %cst_19 = arith.constant dense<0.000000e+00> : vector<8x32xf32>
    %33 = tpu.matmul %32, %17, %cst_19 {dimension_numbers = #tpu.dot_dimension_numbers<[1], [0], [0], [1], [0, 0, 1, 1], [], []>} : vector<8x8xf32>, vector<8x32xf32>, vector<8x32xf32> -> vector<8x32xf32>
    %34 = vector.extract_strided_slice %13 {offsets = [0, 0], sizes = [32, 128], strides = [1, 1]} : vector<128x128xf32> to vector<32x128xf32>
    %cst_20 = arith.constant dense<0.000000e+00> : vector<8x128xf32>
    %35 = tpu.matmul %33, %34, %cst_20 {dimension_numbers = #tpu.dot_dimension_numbers<[1], [0], [0], [1], [0, 0, 1, 1], [], []>} : vector<8x32xf32>, vector<32x128xf32>, vector<8x128xf32> -> vector<8x128xf32>
    %36 = vector.broadcast %14 : vector<1x128xf32> to vector<8x128xf32>
    %37 = arith.addf %36, %35 : vector<8x128xf32>
    %38 = vector.extract_strided_slice %12 {offsets = [0, 32], sizes = [8, 32], strides = [1, 1]} : vector<8x384xf32> to vector<8x32xf32>
    %39 = vector.extract_strided_slice %12 {offsets = [0, 160], sizes = [8, 32], strides = [1, 1]} : vector<8x384xf32> to vector<8x32xf32>
    %40 = vector.extract_strided_slice %12 {offsets = [0, 288], sizes = [8, 32], strides = [1, 1]} : vector<8x384xf32> to vector<8x32xf32>
    %cst_21 = arith.constant dense<0.000000e+00> : vector<8x8xf32>
    %41 = tpu.matmul %38, %39, %cst_21 {dimension_numbers = #tpu.dot_dimension_numbers<[1], [1], [0], [0], [0, 0, 1, 0], [], []>} : vector<8x32xf32>, vector<8x32xf32>, vector<8x8xf32> -> vector<8x8xf32>
    %cst_22 = arith.constant 0.176776692 : f32
    %42 = vector.broadcast %cst_22 : f32 to vector<8x8xf32>
    %43 = arith.mulf %41, %42 : vector<8x8xf32>
    %44 = vector.broadcast %7 : vector<1x8xf32> to vector<8x8xf32>
    %45 = arith.addf %43, %44 : vector<8x8xf32>
    %cst_23 = arith.constant dense<0xFF800000> : vector<8xf32>
    %46 = vector.multi_reduction <maximumf>, %45, %cst_23 [1] : vector<8x8xf32> to vector<8xf32>
    %47 = vector.shape_cast %46 : vector<8xf32> to vector<8x1xf32>
    %48 = vector.broadcast %47 : vector<8x1xf32> to vector<8x8xf32>
    %49 = arith.subf %45, %48 : vector<8x8xf32>
    %50 = math.exp %49 : vector<8x8xf32>
    %cst_24 = arith.constant dense<0.000000e+00> : vector<8xf32>
    %51 = vector.multi_reduction <add>, %50, %cst_24 [1] : vector<8x8xf32> to vector<8xf32>
    %52 = vector.shape_cast %51 : vector<8xf32> to vector<8x1xf32>
    %53 = tpu.reciprocal %52 {approx = true} : vector<8x1xf32> -> vector<8x1xf32>
    %54 = vector.broadcast %53 : vector<8x1xf32> to vector<8x8xf32>
    %55 = arith.mulf %50, %54 : vector<8x8xf32>
    %cst_25 = arith.constant dense<0.000000e+00> : vector<8x32xf32>
    %56 = tpu.matmul %55, %40, %cst_25 {dimension_numbers = #tpu.dot_dimension_numbers<[1], [0], [0], [1], [0, 0, 1, 1], [], []>} : vector<8x8xf32>, vector<8x32xf32>, vector<8x32xf32> -> vector<8x32xf32>
    %57 = vector.extract_strided_slice %13 {offsets = [32, 0], sizes = [32, 128], strides = [1, 1]} : vector<128x128xf32> to vector<32x128xf32>
    %cst_26 = arith.constant dense<0.000000e+00> : vector<8x128xf32>
    %58 = tpu.matmul %56, %57, %cst_26 {dimension_numbers = #tpu.dot_dimension_numbers<[1], [0], [0], [1], [0, 0, 1, 1], [], []>} : vector<8x32xf32>, vector<32x128xf32>, vector<8x128xf32> -> vector<8x128xf32>
    %59 = arith.addf %37, %58 : vector<8x128xf32>
    %60 = vector.extract_strided_slice %12 {offsets = [0, 64], sizes = [8, 32], strides = [1, 1]} : vector<8x384xf32> to vector<8x32xf32>
    %61 = vector.extract_strided_slice %12 {offsets = [0, 192], sizes = [8, 32], strides = [1, 1]} : vector<8x384xf32> to vector<8x32xf32>
    %62 = vector.extract_strided_slice %12 {offsets = [0, 320], sizes = [8, 32], strides = [1, 1]} : vector<8x384xf32> to vector<8x32xf32>
    %cst_27 = arith.constant dense<0.000000e+00> : vector<8x8xf32>
    %63 = tpu.matmul %60, %61, %cst_27 {dimension_numbers = #tpu.dot_dimension_numbers<[1], [1], [0], [0], [0, 0, 1, 0], [], []>} : vector<8x32xf32>, vector<8x32xf32>, vector<8x8xf32> -> vector<8x8xf32>
    %cst_28 = arith.constant 0.176776692 : f32
    %64 = vector.broadcast %cst_28 : f32 to vector<8x8xf32>
    %65 = arith.mulf %63, %64 : vector<8x8xf32>
    %66 = vector.broadcast %7 : vector<1x8xf32> to vector<8x8xf32>
    %67 = arith.addf %65, %66 : vector<8x8xf32>
    %cst_29 = arith.constant dense<0xFF800000> : vector<8xf32>
    %68 = vector.multi_reduction <maximumf>, %67, %cst_29 [1] : vector<8x8xf32> to vector<8xf32>
    %69 = vector.shape_cast %68 : vector<8xf32> to vector<8x1xf32>
    %70 = vector.broadcast %69 : vector<8x1xf32> to vector<8x8xf32>
    %71 = arith.subf %67, %70 : vector<8x8xf32>
    %72 = math.exp %71 : vector<8x8xf32>
    %cst_30 = arith.constant dense<0.000000e+00> : vector<8xf32>
    %73 = vector.multi_reduction <add>, %72, %cst_30 [1] : vector<8x8xf32> to vector<8xf32>
    %74 = vector.shape_cast %73 : vector<8xf32> to vector<8x1xf32>
    %75 = tpu.reciprocal %74 {approx = true} : vector<8x1xf32> -> vector<8x1xf32>
    %76 = vector.broadcast %75 : vector<8x1xf32> to vector<8x8xf32>
    %77 = arith.mulf %72, %76 : vector<8x8xf32>
    %cst_31 = arith.constant dense<0.000000e+00> : vector<8x32xf32>
    %78 = tpu.matmul %77, %62, %cst_31 {dimension_numbers = #tpu.dot_dimension_numbers<[1], [0], [0], [1], [0, 0, 1, 1], [], []>} : vector<8x8xf32>, vector<8x32xf32>, vector<8x32xf32> -> vector<8x32xf32>
    %79 = vector.extract_strided_slice %13 {offsets = [64, 0], sizes = [32, 128], strides = [1, 1]} : vector<128x128xf32> to vector<32x128xf32>
    %cst_32 = arith.constant dense<0.000000e+00> : vector<8x128xf32>
    %80 = tpu.matmul %78, %79, %cst_32 {dimension_numbers = #tpu.dot_dimension_numbers<[1], [0], [0], [1], [0, 0, 1, 1], [], []>} : vector<8x32xf32>, vector<32x128xf32>, vector<8x128xf32> -> vector<8x128xf32>
    %81 = arith.addf %59, %80 : vector<8x128xf32>
    %82 = vector.extract_strided_slice %12 {offsets = [0, 96], sizes = [8, 32], strides = [1, 1]} : vector<8x384xf32> to vector<8x32xf32>
    %83 = vector.extract_strided_slice %12 {offsets = [0, 224], sizes = [8, 32], strides = [1, 1]} : vector<8x384xf32> to vector<8x32xf32>
    %84 = vector.extract_strided_slice %12 {offsets = [0, 352], sizes = [8, 32], strides = [1, 1]} : vector<8x384xf32> to vector<8x32xf32>
    %cst_33 = arith.constant dense<0.000000e+00> : vector<8x8xf32>
    %85 = tpu.matmul %82, %83, %cst_33 {dimension_numbers = #tpu.dot_dimension_numbers<[1], [1], [0], [0], [0, 0, 1, 0], [], []>} : vector<8x32xf32>, vector<8x32xf32>, vector<8x8xf32> -> vector<8x8xf32>
    %cst_34 = arith.constant 0.176776692 : f32
    %86 = vector.broadcast %cst_34 : f32 to vector<8x8xf32>
    %87 = arith.mulf %85, %86 : vector<8x8xf32>
    %88 = vector.broadcast %7 : vector<1x8xf32> to vector<8x8xf32>
    %89 = arith.addf %87, %88 : vector<8x8xf32>
    %cst_35 = arith.constant dense<0xFF800000> : vector<8xf32>
    %90 = vector.multi_reduction <maximumf>, %89, %cst_35 [1] : vector<8x8xf32> to vector<8xf32>
    %91 = vector.shape_cast %90 : vector<8xf32> to vector<8x1xf32>
    %92 = vector.broadcast %91 : vector<8x1xf32> to vector<8x8xf32>
    %93 = arith.subf %89, %92 : vector<8x8xf32>
    %94 = math.exp %93 : vector<8x8xf32>
    %cst_36 = arith.constant dense<0.000000e+00> : vector<8xf32>
    %95 = vector.multi_reduction <add>, %94, %cst_36 [1] : vector<8x8xf32> to vector<8xf32>
    %96 = vector.shape_cast %95 : vector<8xf32> to vector<8x1xf32>
    %97 = tpu.reciprocal %96 {approx = true} : vector<8x1xf32> -> vector<8x1xf32>
    %98 = vector.broadcast %97 : vector<8x1xf32> to vector<8x8xf32>
    %99 = arith.mulf %94, %98 : vector<8x8xf32>
    %cst_37 = arith.constant dense<0.000000e+00> : vector<8x32xf32>
    %100 = tpu.matmul %99, %84, %cst_37 {dimension_numbers = #tpu.dot_dimension_numbers<[1], [0], [0], [1], [0, 0, 1, 1], [], []>} : vector<8x8xf32>, vector<8x32xf32>, vector<8x32xf32> -> vector<8x32xf32>
    %101 = vector.extract_strided_slice %13 {offsets = [96, 0], sizes = [32, 128], strides = [1, 1]} : vector<128x128xf32> to vector<32x128xf32>
    %cst_38 = arith.constant dense<0.000000e+00> : vector<8x128xf32>
    %102 = tpu.matmul %100, %101, %cst_38 {dimension_numbers = #tpu.dot_dimension_numbers<[1], [0], [0], [1], [0, 0, 1, 1], [], []>} : vector<8x32xf32>, vector<32x128xf32>, vector<8x128xf32> -> vector<8x128xf32>
    %103 = arith.addf %81, %102 : vector<8x128xf32>
    %104 = arith.addf %103, %1 : vector<8x128xf32>
    %c0_39 = arith.constant 0 : index
    %c0_40 = arith.constant 0 : index
    %105 = vector.load %arg7[%c0_39, %c0_40] : memref<1x128xf32, #tpu.memory_space<vmem>>, vector<1x128xf32>
    %c0_41 = arith.constant 0 : index
    %c0_42 = arith.constant 0 : index
    %106 = vector.load %arg8[%c0_41, %c0_42] : memref<1x128xf32, #tpu.memory_space<vmem>>, vector<1x128xf32>
    %cst_43 = arith.constant dense<0.000000e+00> : vector<8xf32>
    %107 = vector.multi_reduction <add>, %104, %cst_43 [1] : vector<8x128xf32> to vector<8xf32>
    %108 = vector.shape_cast %107 : vector<8xf32> to vector<8x1xf32>
    %cst_44 = arith.constant 1.280000e+02 : f32
    %109 = vector.broadcast %cst_44 : f32 to vector<8x1xf32>
    %110 = arith.divf %108, %109 : vector<8x1xf32>
    %111 = vector.broadcast %110 : vector<8x1xf32> to vector<8x128xf32>
    %112 = arith.subf %104, %111 : vector<8x128xf32>
    %113 = arith.mulf %112, %112 : vector<8x128xf32>
    %cst_45 = arith.constant dense<0.000000e+00> : vector<8xf32>
    %114 = vector.multi_reduction <add>, %113, %cst_45 [1] : vector<8x128xf32> to vector<8xf32>
    %115 = vector.shape_cast %114 : vector<8xf32> to vector<8x1xf32>
    %cst_46 = arith.constant 1.280000e+02 : f32
    %116 = vector.broadcast %cst_46 : f32 to vector<8x1xf32>
    %117 = arith.divf %115, %116 : vector<8x1xf32>
    %118 = vector.broadcast %110 : vector<8x1xf32> to vector<8x128xf32>
    %119 = arith.subf %104, %118 : vector<8x128xf32>
    %cst_47 = arith.constant 9.99999996E-13 : f32
    %120 = vector.broadcast %cst_47 : f32 to vector<8x1xf32>
    %121 = arith.addf %117, %120 : vector<8x1xf32>
    %122 = math.rsqrt %121 : vector<8x1xf32>
    %123 = vector.broadcast %122 : vector<8x1xf32> to vector<8x128xf32>
    %124 = arith.mulf %119, %123 : vector<8x128xf32>
    %125 = vector.broadcast %105 : vector<1x128xf32> to vector<8x128xf32>
    %126 = arith.mulf %124, %125 : vector<8x128xf32>
    %127 = vector.broadcast %106 : vector<1x128xf32> to vector<8x128xf32>
    %128 = arith.addf %126, %127 : vector<8x128xf32>
    %c0_48 = arith.constant 0 : index
    %c0_49 = arith.constant 0 : index
    %129 = vector.load %arg9[%c0_48, %c0_49] : memref<128x512xf32, #tpu.memory_space<vmem>>, vector<128x512xf32>
    %cst_50 = arith.constant dense<0.000000e+00> : vector<8x512xf32>
    %130 = tpu.matmul %128, %129, %cst_50 {dimension_numbers = #tpu.dot_dimension_numbers<[1], [0], [0], [1], [0, 0, 1, 1], [], []>} : vector<8x128xf32>, vector<128x512xf32>, vector<8x512xf32> -> vector<8x512xf32>
    %c0_51 = arith.constant 0 : index
    %c0_52 = arith.constant 0 : index
    %131 = vector.load %arg10[%c0_51, %c0_52] : memref<1x512xf32, #tpu.memory_space<vmem>>, vector<1x512xf32>
    %132 = vector.broadcast %131 : vector<1x512xf32> to vector<8x512xf32>
    %133 = arith.addf %130, %132 : vector<8x512xf32>
    %134 = arith.mulf %133, %133 : vector<8x512xf32>
    %135 = arith.mulf %133, %134 : vector<8x512xf32>
    %cst_53 = arith.constant 4.471500e-02 : f32
    %136 = vector.broadcast %cst_53 : f32 to vector<8x512xf32>
    %137 = arith.mulf %136, %135 : vector<8x512xf32>
    %138 = arith.addf %133, %137 : vector<8x512xf32>
    %cst_54 = arith.constant 0.797884583 : f32
    %139 = vector.broadcast %cst_54 : f32 to vector<8x512xf32>
    %140 = arith.mulf %139, %138 : vector<8x512xf32>
    %141 = math.tanh %140 : vector<8x512xf32>
    %cst_55 = arith.constant 1.000000e+00 : f32
    %142 = vector.broadcast %cst_55 : f32 to vector<8x512xf32>
    %143 = arith.addf %142, %141 : vector<8x512xf32>
    %cst_56 = arith.constant 5.000000e-01 : f32
    %144 = vector.broadcast %cst_56 : f32 to vector<8x512xf32>
    %145 = arith.mulf %144, %143 : vector<8x512xf32>
    %146 = arith.mulf %133, %145 : vector<8x512xf32>
    %c0_57 = arith.constant 0 : index
    %c0_58 = arith.constant 0 : index
    %147 = vector.load %arg11[%c0_57, %c0_58] : memref<512x128xf32, #tpu.memory_space<vmem>>, vector<512x128xf32>
    %cst_59 = arith.constant dense<0.000000e+00> : vector<8x128xf32>
    %148 = tpu.matmul %146, %147, %cst_59 {dimension_numbers = #tpu.dot_dimension_numbers<[1], [0], [0], [1], [0, 0, 1, 1], [], []>} : vector<8x512xf32>, vector<512x128xf32>, vector<8x128xf32> -> vector<8x128xf32>
    %c0_60 = arith.constant 0 : index
    %c0_61 = arith.constant 0 : index
    %149 = vector.load %arg12[%c0_60, %c0_61] : memref<1x128xf32, #tpu.memory_space<vmem>>, vector<1x128xf32>
    %150 = vector.broadcast %149 : vector<1x128xf32> to vector<8x128xf32>
    %151 = arith.addf %148, %150 : vector<8x128xf32>
    %152 = arith.addf %151, %128 : vector<8x128xf32>
    %c0_62 = arith.constant 0 : index
    %c0_63 = arith.constant 0 : index
    %153 = vector.load %arg13[%c0_62, %c0_63] : memref<1x128xf32, #tpu.memory_space<vmem>>, vector<1x128xf32>
    %c0_64 = arith.constant 0 : index
    %c0_65 = arith.constant 0 : index
    %154 = vector.load %arg14[%c0_64, %c0_65] : memref<1x128xf32, #tpu.memory_space<vmem>>, vector<1x128xf32>
    %cst_66 = arith.constant dense<0.000000e+00> : vector<8xf32>
    %155 = vector.multi_reduction <add>, %152, %cst_66 [1] : vector<8x128xf32> to vector<8xf32>
    %156 = vector.shape_cast %155 : vector<8xf32> to vector<8x1xf32>
    %cst_67 = arith.constant 1.280000e+02 : f32
    %157 = vector.broadcast %cst_67 : f32 to vector<8x1xf32>
    %158 = arith.divf %156, %157 : vector<8x1xf32>
    %159 = vector.broadcast %158 : vector<8x1xf32> to vector<8x128xf32>
    %160 = arith.subf %152, %159 : vector<8x128xf32>
    %161 = arith.mulf %160, %160 : vector<8x128xf32>
    %cst_68 = arith.constant dense<0.000000e+00> : vector<8xf32>
    %162 = vector.multi_reduction <add>, %161, %cst_68 [1] : vector<8x128xf32> to vector<8xf32>
    %163 = vector.shape_cast %162 : vector<8xf32> to vector<8x1xf32>
    %cst_69 = arith.constant 1.280000e+02 : f32
    %164 = vector.broadcast %cst_69 : f32 to vector<8x1xf32>
    %165 = arith.divf %163, %164 : vector<8x1xf32>
    %166 = vector.broadcast %158 : vector<8x1xf32> to vector<8x128xf32>
    %167 = arith.subf %152, %166 : vector<8x128xf32>
    %cst_70 = arith.constant 9.99999996E-13 : f32
    %168 = vector.broadcast %cst_70 : f32 to vector<8x1xf32>
    %169 = arith.addf %165, %168 : vector<8x1xf32>
    %170 = math.rsqrt %169 : vector<8x1xf32>
    %171 = vector.broadcast %170 : vector<8x1xf32> to vector<8x128xf32>
    %172 = arith.mulf %167, %171 : vector<8x128xf32>
    %173 = vector.broadcast %153 : vector<1x128xf32> to vector<8x128xf32>
    %174 = arith.mulf %172, %173 : vector<8x128xf32>
    %175 = vector.broadcast %154 : vector<1x128xf32> to vector<8x128xf32>
    %176 = arith.addf %174, %175 : vector<8x128xf32>
    %177 = vector.extract_strided_slice %176 {offsets = [0, 0], sizes = [1, 128], strides = [1, 1]} : vector<8x128xf32> to vector<1x128xf32>
    %c0_71 = arith.constant 0 : index
    %c0_72 = arith.constant 0 : index
    %178 = vector.load %arg15[%c0_71, %c0_72] : memref<128x128xf32, #tpu.memory_space<vmem>>, vector<128x128xf32>
    %cst_73 = arith.constant dense<0.000000e+00> : vector<1x128xf32>
    %179 = tpu.matmul %177, %178, %cst_73 {dimension_numbers = #tpu.dot_dimension_numbers<[1], [0], [0], [1], [0, 0, 1, 1], [], []>} : vector<1x128xf32>, vector<128x128xf32>, vector<1x128xf32> -> vector<1x128xf32>
    %c0_74 = arith.constant 0 : index
    %c0_75 = arith.constant 0 : index
    %180 = vector.load %arg16[%c0_74, %c0_75] : memref<1x128xf32, #tpu.memory_space<vmem>>, vector<1x128xf32>
    %181 = arith.addf %179, %180 : vector<1x128xf32>
    %182 = math.tanh %181 : vector<1x128xf32>
    %c0_76 = arith.constant 0 : index
    %c0_77 = arith.constant 0 : index
    %183 = vector.load %arg17[%c0_76, %c0_77] : memref<128x128xf32, #tpu.memory_space<vmem>>, vector<128x128xf32>
    %cst_78 = arith.constant dense<0.000000e+00> : vector<1x128xf32>
    %184 = tpu.matmul %182, %183, %cst_78 {dimension_numbers = #tpu.dot_dimension_numbers<[1], [0], [0], [1], [0, 0, 1, 1], [], []>} : vector<1x128xf32>, vector<128x128xf32>, vector<1x128xf32> -> vector<1x128xf32>
    %c0_79 = arith.constant 0 : index
    %c0_80 = arith.constant 0 : index
    %185 = vector.load %arg18[%c0_79, %c0_80] : memref<1x128xf32, #tpu.memory_space<vmem>>, vector<1x128xf32>
    %186 = arith.addf %184, %185 : vector<1x128xf32>
    %c0_81 = arith.constant 0 : index
    %c0_82 = arith.constant 0 : index
    %c0_83 = arith.constant 0 : index
    %187 = vector.load %arg19[%c0_81, %c0_82, %c0_83] : memref<1x1x128xf32, #tpu.memory_space<vmem>>, vector<1x1x128xf32>
    %188 = vector.shape_cast %187 : vector<1x1x128xf32> to vector<1x128xf32>
    %189 = vector.shape_cast %186 : vector<1x128xf32> to vector<1x1x128xf32>
    tpu.vector_store %arg19[%c0_81, %c0_82, %c0_83], %189 {strides = array<i32>} : memref<1x1x128xf32, #tpu.memory_space<vmem>>, vector<1x1x128xf32>,
    return
  }
  func.func @transform_0(%arg0: i32) -> (i32, i32, i32) {
    %c0_i32 = arith.constant 0 : i32
    %c0_i32_0 = arith.constant 0 : i32
    %c0_i32_1 = arith.constant 0 : i32
    return %arg0, %c0_i32, %c0_i32_0 : i32, i32, i32
  }
  func.func @transform_1(%arg0: i32) -> (i32, i32, i32) {
    %c0_i32 = arith.constant 0 : i32
    %c0_i32_0 = arith.constant 0 : i32
    %c0_i32_1 = arith.constant 0 : i32
    return %arg0, %c0_i32, %c0_i32_0 : i32, i32, i32
  }
  func.func @transform_2(%arg0: i32) -> (i32, i32) {
    %c0_i32 = arith.constant 0 : i32
    %c0_i32_0 = arith.constant 0 : i32
    %c0_i32_1 = arith.constant 0 : i32
    return %c0_i32, %c0_i32_0 : i32, i32
  }
  func.func @transform_3(%arg0: i32) -> (i32, i32) {
    %c0_i32 = arith.constant 0 : i32
    %c0_i32_0 = arith.constant 0 : i32
    %c0_i32_1 = arith.constant 0 : i32
    return %c0_i32, %c0_i32_0 : i32, i32
  }
  func.func @transform_4(%arg0: i32) -> (i32, i32) {
    %c0_i32 = arith.constant 0 : i32
    %c0_i32_0 = arith.constant 0 : i32
    %c0_i32_1 = arith.constant 0 : i32
    return %c0_i32, %c0_i32_0 : i32, i32
  }
  func.func @transform_5(%arg0: i32) -> (i32, i32) {
    %c0_i32 = arith.constant 0 : i32
    %c0_i32_0 = arith.constant 0 : i32
    %c0_i32_1 = arith.constant 0 : i32
    return %c0_i32, %c0_i32_0 : i32, i32
  }
  func.func @transform_6(%arg0: i32) -> (i32, i32) {
    %c0_i32 = arith.constant 0 : i32
    %c0_i32_0 = arith.constant 0 : i32
    %c0_i32_1 = arith.constant 0 : i32
    return %c0_i32, %c0_i32_0 : i32, i32
  }
  func.func @transform_7(%arg0: i32) -> (i32, i32) {
    %c0_i32 = arith.constant 0 : i32
    %c0_i32_0 = arith.constant 0 : i32
    %c0_i32_1 = arith.constant 0 : i32
    return %c0_i32, %c0_i32_0 : i32, i32
  }
  func.func @transform_8(%arg0: i32) -> (i32, i32) {
    %c0_i32 = arith.constant 0 : i32
    %c0_i32_0 = arith.constant 0 : i32
    %c0_i32_1 = arith.constant 0 : i32
    return %c0_i32, %c0_i32_0 : i32, i32
  }
  func.func @transform_9(%arg0: i32) -> (i32, i32) {
    %c0_i32 = arith.constant 0 : i32
    %c0_i32_0 = arith.constant 0 : i32
    %c0_i32_1 = arith.constant 0 : i32
    return %c0_i32, %c0_i32_0 : i32, i32
  }
  func.func @transform_10(%arg0: i32) -> (i32, i32) {
    %c0_i32 = arith.constant 0 : i32
    %c0_i32_0 = arith.constant 0 : i32
    %c0_i32_1 = arith.constant 0 : i32
    return %c0_i32, %c0_i32_0 : i32, i32
  }
  func.func @transform_11(%arg0: i32) -> (i32, i32) {
    %c0_i32 = arith.constant 0 : i32
    %c0_i32_0 = arith.constant 0 : i32
    %c0_i32_1 = arith.constant 0 : i32
    return %c0_i32, %c0_i32_0 : i32, i32
  }
  func.func @transform_12(%arg0: i32) -> (i32, i32) {
    %c0_i32 = arith.constant 0 : i32
    %c0_i32_0 = arith.constant 0 : i32
    %c0_i32_1 = arith.constant 0 : i32
    return %c0_i32, %c0_i32_0 : i32, i32
  }
  func.func @transform_13(%arg0: i32) -> (i32, i32) {
    %c0_i32 = arith.constant 0 : i32
    %c0_i32_0 = arith.constant 0 : i32
    %c0_i32_1 = arith.constant 0 : i32
    return %c0_i32, %c0_i32_0 : i32, i32
  }
  func.func @transform_14(%arg0: i32) -> (i32, i32) {
    %c0_i32 = arith.constant 0 : i32
    %c0_i32_0 = arith.constant 0 : i32
    %c0_i32_1 = arith.constant 0 : i32
    return %c0_i32, %c0_i32_0 : i32, i32
  }
  func.func @transform_15(%arg0: i32) -> (i32, i32) {
    %c0_i32 = arith.constant 0 : i32
    %c0_i32_0 = arith.constant 0 : i32
    %c0_i32_1 = arith.constant 0 : i32
    return %c0_i32, %c0_i32_0 : i32, i32
  }
  func.func @transform_16(%arg0: i32) -> (i32, i32) {
    %c0_i32 = arith.constant 0 : i32
    %c0_i32_0 = arith.constant 0 : i32
    %c0_i32_1 = arith.constant 0 : i32
    return %c0_i32, %c0_i32_0 : i32, i32
  }
  func.func @transform_17(%arg0: i32) -> (i32, i32) {
    %c0_i32 = arith.constant 0 : i32
    %c0_i32_0 = arith.constant 0 : i32
    %c0_i32_1 = arith.constant 0 : i32
    return %c0_i32, %c0_i32_0 : i32, i32
  }
  func.func @transform_18(%arg0: i32) -> (i32, i32, i32) {
    %c0_i32 = arith.constant 0 : i32
    %c0_i32_0 = arith.constant 0 : i32
    %c0_i32_1 = arith.constant 0 : i32
    return %arg0, %c0_i32, %c0_i32_0 : i32, i32, i32
  }
}

module attributes {stable_mosaic.version = 11 : i64} {
  func.func @_embed_kernel(%arg0: i32, %arg1: memref<1x8x1xi32, #tpu.memory_space<vmem>>, %arg2: memref<1x8x128xf32, #tpu.memory_space<vmem>>, %arg3: memref<1x8x128xf32, #tpu.memory_space<vmem>>, %arg4: memref<8x128xf32, #tpu.memory_space<vmem>>, %arg5: memref<1x128xf32, #tpu.memory_space<vmem>>, %arg6: memref<1x128xf32, #tpu.memory_space<vmem>>, %arg7: memref<1x2048x27xf32, #tpu.memory_space<vmem>>, %arg8: memref<8x2048xf32, #tpu.memory_space<vmem>>, %arg9: memref<27x8xf32, #tpu.memory_space<vmem>>, %arg10: memref<1x8xf32, #tpu.memory_space<vmem>>, %arg11: memref<8x128xf32, #tpu.memory_space<vmem>>, %arg12: memref<1x128xf32, #tpu.memory_space<vmem>>, %arg13: memref<1x8x5xf32, #tpu.memory_space<vmem>>, %arg14: memref<5x64xf32, #tpu.memory_space<vmem>>, %arg15: memref<1x64xf32, #tpu.memory_space<vmem>>, %arg16: memref<64x128xf32, #tpu.memory_space<vmem>>, %arg17: memref<1x128xf32, #tpu.memory_space<vmem>>, %arg18: memref<8x128xf32, #tpu.memory_space<vmem>>, %arg19: memref<8x128xf32, #tpu.memory_space<vmem>>, %arg20: memref<1x8x128xf32, #tpu.memory_space<vmem>>) attributes {dimension_semantics = [#tpu.dimension_semantics<parallel>], iteration_bounds = array<i64: 2>, scalar_prefetch = 0 : i64, scratch_operands = 0 : i64, tpu.core_type = #tpu.core_type<tc>, window_params = [{transform_indices = @transform_0, window_bounds = array<i64: 1, 8, 1>}, {transform_indices = @transform_1, window_bounds = array<i64: 1, 8, 128>}, {transform_indices = @transform_2, window_bounds = array<i64: 1, 8, 128>}, {pipeline_mode = #tpu.pipeline_mode<synchronous>, transform_indices = @transform_3, window_bounds = array<i64: 8, 128>}, {pipeline_mode = #tpu.pipeline_mode<synchronous>, transform_indices = @transform_4, window_bounds = array<i64: 1, 128>}, {pipeline_mode = #tpu.pipeline_mode<synchronous>, transform_indices = @transform_5, window_bounds = array<i64: 1, 128>}, {transform_indices = @transform_6, window_bounds = array<i64: 1, 2048, 27>}, {pipeline_mode = #tpu.pipeline_mode<synchronous>, transform_indices = @transform_7, window_bounds = array<i64: 8, 2048>}, {pipeline_mode = #tpu.pipeline_mode<synchronous>, transform_indices = @transform_8, window_bounds = array<i64: 27, 8>}, {pipeline_mode = #tpu.pipeline_mode<synchronous>, transform_indices = @transform_9, window_bounds = array<i64: 1, 8>}, {pipeline_mode = #tpu.pipeline_mode<synchronous>, transform_indices = @transform_10, window_bounds = array<i64: 8, 128>}, {pipeline_mode = #tpu.pipeline_mode<synchronous>, transform_indices = @transform_11, window_bounds = array<i64: 1, 128>}, {transform_indices = @transform_12, window_bounds = array<i64: 1, 8, 5>}, {pipeline_mode = #tpu.pipeline_mode<synchronous>, transform_indices = @transform_13, window_bounds = array<i64: 5, 64>}, {pipeline_mode = #tpu.pipeline_mode<synchronous>, transform_indices = @transform_14, window_bounds = array<i64: 1, 64>}, {pipeline_mode = #tpu.pipeline_mode<synchronous>, transform_indices = @transform_15, window_bounds = array<i64: 64, 128>}, {pipeline_mode = #tpu.pipeline_mode<synchronous>, transform_indices = @transform_16, window_bounds = array<i64: 1, 128>}, {pipeline_mode = #tpu.pipeline_mode<synchronous>, transform_indices = @transform_17, window_bounds = array<i64: 8, 128>}, {pipeline_mode = #tpu.pipeline_mode<synchronous>, transform_indices = @transform_18, window_bounds = array<i64: 8, 128>}, {transform_indices = @transform_19, window_bounds = array<i64: 1, 8, 128>}]} {
    %c0 = arith.constant 0 : index
    %c0_0 = arith.constant 0 : index
    %c0_1 = arith.constant 0 : index
    %0 = vector.load %arg2[%c0, %c0_0, %c0_1] : memref<1x8x128xf32, #tpu.memory_space<vmem>>, vector<1x8x128xf32>
    %1 = vector.shape_cast %0 : vector<1x8x128xf32> to vector<8x128xf32>
    %c0_2 = arith.constant 0 : index
    %c0_3 = arith.constant 0 : index
    %c0_4 = arith.constant 0 : index
    %2 = vector.load %arg3[%c0_2, %c0_3, %c0_4] : memref<1x8x128xf32, #tpu.memory_space<vmem>>, vector<1x8x128xf32>
    %3 = vector.shape_cast %2 : vector<1x8x128xf32> to vector<8x128xf32>
    %4 = arith.addf %1, %3 : vector<8x128xf32>
    %c0_5 = arith.constant 0 : index
    %c0_6 = arith.constant 0 : index
    %5 = vector.load %arg4[%c0_5, %c0_6] : memref<8x128xf32, #tpu.memory_space<vmem>>, vector<8x128xf32>
    %6 = arith.addf %4, %5 : vector<8x128xf32>
    %cst = arith.constant dense<0.000000e+00> : vector<8xf32>
    %7 = vector.multi_reduction <add>, %6, %cst [1] : vector<8x128xf32> to vector<8xf32>
    %8 = vector.shape_cast %7 : vector<8xf32> to vector<8x1xf32>
    %cst_7 = arith.constant 1.280000e+02 : f32
    %9 = vector.broadcast %cst_7 : f32 to vector<8x1xf32>
    %10 = arith.divf %8, %9 : vector<8x1xf32>
    %11 = vector.broadcast %10 : vector<8x1xf32> to vector<8x128xf32>
    %12 = arith.subf %6, %11 : vector<8x128xf32>
    %13 = arith.mulf %12, %12 : vector<8x128xf32>
    %cst_8 = arith.constant dense<0.000000e+00> : vector<8xf32>
    %14 = vector.multi_reduction <add>, %13, %cst_8 [1] : vector<8x128xf32> to vector<8xf32>
    %15 = vector.shape_cast %14 : vector<8xf32> to vector<8x1xf32>
    %cst_9 = arith.constant 1.280000e+02 : f32
    %16 = vector.broadcast %cst_9 : f32 to vector<8x1xf32>
    %17 = arith.divf %15, %16 : vector<8x1xf32>
    %18 = vector.broadcast %10 : vector<8x1xf32> to vector<8x128xf32>
    %19 = arith.subf %6, %18 : vector<8x128xf32>
    %cst_10 = arith.constant 9.99999996E-13 : f32
    %20 = vector.broadcast %cst_10 : f32 to vector<8x1xf32>
    %21 = arith.addf %17, %20 : vector<8x1xf32>
    %22 = math.rsqrt %21 : vector<8x1xf32>
    %23 = vector.broadcast %22 : vector<8x1xf32> to vector<8x128xf32>
    %24 = arith.mulf %19, %23 : vector<8x128xf32>
    %c0_11 = arith.constant 0 : index
    %c0_12 = arith.constant 0 : index
    %25 = vector.load %arg5[%c0_11, %c0_12] : memref<1x128xf32, #tpu.memory_space<vmem>>, vector<1x128xf32>
    %26 = vector.broadcast %25 : vector<1x128xf32> to vector<8x128xf32>
    %27 = arith.mulf %24, %26 : vector<8x128xf32>
    %c0_13 = arith.constant 0 : index
    %c0_14 = arith.constant 0 : index
    %28 = vector.load %arg6[%c0_13, %c0_14] : memref<1x128xf32, #tpu.memory_space<vmem>>, vector<1x128xf32>
    %29 = vector.broadcast %28 : vector<1x128xf32> to vector<8x128xf32>
    %30 = arith.addf %27, %29 : vector<8x128xf32>
    %c0_15 = arith.constant 0 : index
    %c0_16 = arith.constant 0 : index
    %c0_17 = arith.constant 0 : index
    %31 = vector.load %arg1[%c0_15, %c0_16, %c0_17] : memref<1x8x1xi32, #tpu.memory_space<vmem>>, vector<1x8x1xi32>
    %32 = vector.shape_cast %31 : vector<1x8x1xi32> to vector<8x1xi32>
    %c1014_i32 = arith.constant 1014 : i32
    %33 = vector.broadcast %c1014_i32 : i32 to vector<8x1xi32>
    %34 = arith.cmpi eq, %32, %33 : vector<8x1xi32>
    %c1015_i32 = arith.constant 1015 : i32
    %35 = vector.broadcast %c1015_i32 : i32 to vector<8x1xi32>
    %36 = arith.cmpi eq, %32, %35 : vector<8x1xi32>
    %37 = arith.ori %34, %36 : vector<8x1xi1>
    %38 = arith.extui %37 : vector<8x1xi1> to vector<8x1xi32>
    %39 = arith.sitofp %38 : vector<8x1xi32> to vector<8x1xf32>
    %cst_18 = arith.constant 1.000000e+00 : f32
    %40 = vector.broadcast %cst_18 : f32 to vector<8x1xf32>
    %41 = arith.subf %40, %39 : vector<8x1xf32>
    %42 = vector.broadcast %41 : vector<8x1xf32> to vector<8x128xf32>
    %43 = arith.mulf %30, %42 : vector<8x128xf32>
    %c0_19 = arith.constant 0 : index
    %c0_20 = arith.constant 0 : index
    %c0_21 = arith.constant 0 : index
    %44 = vector.load %arg7[%c0_19, %c0_20, %c0_21] : memref<1x2048x27xf32, #tpu.memory_space<vmem>>, vector<1x2048x27xf32>
    %45 = vector.shape_cast %44 : vector<1x2048x27xf32> to vector<2048x27xf32>
    %c0_22 = arith.constant 0 : index
    %c0_23 = arith.constant 0 : index
    %46 = vector.load %arg9[%c0_22, %c0_23] : memref<27x8xf32, #tpu.memory_space<vmem>>, vector<27x8xf32>
    %cst_24 = arith.constant dense<0.000000e+00> : vector<2048x8xf32>
    %47 = tpu.matmul %45, %46, %cst_24 {dimension_numbers = #tpu.dot_dimension_numbers<[1], [0], [0], [1], [0, 0, 1, 1], [], []>} : vector<2048x27xf32>, vector<27x8xf32>, vector<2048x8xf32> -> vector<2048x8xf32>
    %c0_25 = arith.constant 0 : index
    %c0_26 = arith.constant 0 : index
    %48 = vector.load %arg10[%c0_25, %c0_26] : memref<1x8xf32, #tpu.memory_space<vmem>>, vector<1x8xf32>
    %49 = vector.broadcast %48 : vector<1x8xf32> to vector<2048x8xf32>
    %50 = arith.addf %47, %49 : vector<2048x8xf32>
    %cst_27 = arith.constant 0.000000e+00 : f32
    %51 = vector.broadcast %cst_27 : f32 to vector<2048x8xf32>
    %52 = arith.maximumf %50, %51 : vector<2048x8xf32>
    %c0_28 = arith.constant 0 : index
    %c0_29 = arith.constant 0 : index
    %53 = vector.load %arg8[%c0_28, %c0_29] : memref<8x2048xf32, #tpu.memory_space<vmem>>, vector<8x2048xf32>
    %cst_30 = arith.constant dense<0.000000e+00> : vector<8x8xf32>
    %54 = tpu.matmul %53, %52, %cst_30 {dimension_numbers = #tpu.dot_dimension_numbers<[1], [0], [0], [1], [0, 0, 1, 1], [], []>} : vector<8x2048xf32>, vector<2048x8xf32>, vector<8x8xf32> -> vector<8x8xf32>
    %c0_31 = arith.constant 0 : index
    %c0_32 = arith.constant 0 : index
    %55 = vector.load %arg11[%c0_31, %c0_32] : memref<8x128xf32, #tpu.memory_space<vmem>>, vector<8x128xf32>
    %cst_33 = arith.constant dense<0.000000e+00> : vector<8x128xf32>
    %56 = tpu.matmul %54, %55, %cst_33 {dimension_numbers = #tpu.dot_dimension_numbers<[1], [0], [0], [1], [0, 0, 1, 1], [], []>} : vector<8x8xf32>, vector<8x128xf32>, vector<8x128xf32> -> vector<8x128xf32>
    %c0_34 = arith.constant 0 : index
    %c0_35 = arith.constant 0 : index
    %57 = vector.load %arg12[%c0_34, %c0_35] : memref<1x128xf32, #tpu.memory_space<vmem>>, vector<1x128xf32>
    %58 = vector.broadcast %57 : vector<1x128xf32> to vector<8x128xf32>
    %59 = arith.addf %56, %58 : vector<8x128xf32>
    %c0_36 = arith.constant 0 : index
    %c0_37 = arith.constant 0 : index
    %c0_38 = arith.constant 0 : index
    %60 = vector.load %arg13[%c0_36, %c0_37, %c0_38] : memref<1x8x5xf32, #tpu.memory_space<vmem>>, vector<1x8x5xf32>
    %61 = vector.shape_cast %60 : vector<1x8x5xf32> to vector<8x5xf32>
    %c0_39 = arith.constant 0 : index
    %c0_40 = arith.constant 0 : index
    %62 = vector.load %arg14[%c0_39, %c0_40] : memref<5x64xf32, #tpu.memory_space<vmem>>, vector<5x64xf32>
    %cst_41 = arith.constant dense<0.000000e+00> : vector<8x64xf32>
    %63 = tpu.matmul %61, %62, %cst_41 {dimension_numbers = #tpu.dot_dimension_numbers<[1], [0], [0], [1], [0, 0, 1, 1], [], []>} : vector<8x5xf32>, vector<5x64xf32>, vector<8x64xf32> -> vector<8x64xf32>
    %c0_42 = arith.constant 0 : index
    %c0_43 = arith.constant 0 : index
    %64 = vector.load %arg15[%c0_42, %c0_43] : memref<1x64xf32, #tpu.memory_space<vmem>>, vector<1x64xf32>
    %65 = vector.broadcast %64 : vector<1x64xf32> to vector<8x64xf32>
    %66 = arith.addf %63, %65 : vector<8x64xf32>
    %cst_44 = arith.constant 0.000000e+00 : f32
    %67 = vector.broadcast %cst_44 : f32 to vector<8x64xf32>
    %68 = arith.maximumf %66, %67 : vector<8x64xf32>
    %c0_45 = arith.constant 0 : index
    %c0_46 = arith.constant 0 : index
    %69 = vector.load %arg16[%c0_45, %c0_46] : memref<64x128xf32, #tpu.memory_space<vmem>>, vector<64x128xf32>
    %cst_47 = arith.constant dense<0.000000e+00> : vector<8x128xf32>
    %70 = tpu.matmul %68, %69, %cst_47 {dimension_numbers = #tpu.dot_dimension_numbers<[1], [0], [0], [1], [0, 0, 1, 1], [], []>} : vector<8x64xf32>, vector<64x128xf32>, vector<8x128xf32> -> vector<8x128xf32>
    %c0_48 = arith.constant 0 : index
    %c0_49 = arith.constant 0 : index
    %71 = vector.load %arg17[%c0_48, %c0_49] : memref<1x128xf32, #tpu.memory_space<vmem>>, vector<1x128xf32>
    %72 = vector.broadcast %71 : vector<1x128xf32> to vector<8x128xf32>
    %73 = arith.addf %70, %72 : vector<8x128xf32>
    %cst_50 = arith.constant 0.000000e+00 : f32
    %74 = vector.broadcast %cst_50 : f32 to vector<8x128xf32>
    %75 = arith.maximumf %73, %74 : vector<8x128xf32>
    %c0_51 = arith.constant 0 : index
    %c0_52 = arith.constant 0 : index
    %76 = vector.load %arg18[%c0_51, %c0_52] : memref<8x128xf32, #tpu.memory_space<vmem>>, vector<8x128xf32>
    %c0_53 = arith.constant 0 : index
    %c0_54 = arith.constant 0 : index
    %77 = vector.load %arg19[%c0_53, %c0_54] : memref<8x128xf32, #tpu.memory_space<vmem>>, vector<8x128xf32>
    %78 = vector.shape_cast %43 : vector<8x128xf32> to vector<1x8x128xf32>
    %cst_55 = arith.constant dense<0.000000e+00> : vector<1xf32>
    %79 = vector.multi_reduction <add>, %78, %cst_55 [1, 2] : vector<1x8x128xf32> to vector<1xf32>
    %80 = vector.shape_cast %79 : vector<1xf32> to vector<1x1x1xf32>
    %81 = vector.extract %80[0, 0, 0] : f32 from vector<1x1x1xf32>
    %82 = vector.broadcast %81 : f32 to vector<1x1xf32>
    %cst_56 = arith.constant 1.024000e+03 : f32
    %83 = vector.broadcast %cst_56 : f32 to vector<1x1xf32>
    %84 = arith.divf %82, %83 : vector<1x1xf32>
    %85 = vector.broadcast %84 : vector<1x1xf32> to vector<8x128xf32>
    %86 = arith.subf %43, %85 : vector<8x128xf32>
    %87 = arith.mulf %86, %86 : vector<8x128xf32>
    %88 = vector.shape_cast %87 : vector<8x128xf32> to vector<1x8x128xf32>
    %cst_57 = arith.constant dense<0.000000e+00> : vector<1xf32>
    %89 = vector.multi_reduction <add>, %88, %cst_57 [1, 2] : vector<1x8x128xf32> to vector<1xf32>
    %90 = vector.shape_cast %89 : vector<1xf32> to vector<1x1x1xf32>
    %91 = vector.extract %90[0, 0, 0] : f32 from vector<1x1x1xf32>
    %92 = vector.broadcast %91 : f32 to vector<1x1xf32>
    %cst_58 = arith.constant 1.024000e+03 : f32
    %93 = vector.broadcast %cst_58 : f32 to vector<1x1xf32>
    %94 = arith.divf %92, %93 : vector<1x1xf32>
    %95 = vector.broadcast %84 : vector<1x1xf32> to vector<8x128xf32>
    %96 = arith.subf %43, %95 : vector<8x128xf32>
    %cst_59 = arith.constant 9.99999974E-6 : f32
    %97 = vector.broadcast %cst_59 : f32 to vector<1x1xf32>
    %98 = arith.addf %94, %97 : vector<1x1xf32>
    %99 = math.rsqrt %98 : vector<1x1xf32>
    %100 = vector.broadcast %99 : vector<1x1xf32> to vector<8x128xf32>
    %101 = arith.mulf %96, %100 : vector<8x128xf32>
    %102 = arith.mulf %101, %76 : vector<8x128xf32>
    %103 = arith.addf %102, %77 : vector<8x128xf32>
    %104 = vector.shape_cast %59 : vector<8x128xf32> to vector<1x8x128xf32>
    %cst_60 = arith.constant dense<0.000000e+00> : vector<1xf32>
    %105 = vector.multi_reduction <add>, %104, %cst_60 [1, 2] : vector<1x8x128xf32> to vector<1xf32>
    %106 = vector.shape_cast %105 : vector<1xf32> to vector<1x1x1xf32>
    %107 = vector.extract %106[0, 0, 0] : f32 from vector<1x1x1xf32>
    %108 = vector.broadcast %107 : f32 to vector<1x1xf32>
    %cst_61 = arith.constant 1.024000e+03 : f32
    %109 = vector.broadcast %cst_61 : f32 to vector<1x1xf32>
    %110 = arith.divf %108, %109 : vector<1x1xf32>
    %111 = vector.broadcast %110 : vector<1x1xf32> to vector<8x128xf32>
    %112 = arith.subf %59, %111 : vector<8x128xf32>
    %113 = arith.mulf %112, %112 : vector<8x128xf32>
    %114 = vector.shape_cast %113 : vector<8x128xf32> to vector<1x8x128xf32>
    %cst_62 = arith.constant dense<0.000000e+00> : vector<1xf32>
    %115 = vector.multi_reduction <add>, %114, %cst_62 [1, 2] : vector<1x8x128xf32> to vector<1xf32>
    %116 = vector.shape_cast %115 : vector<1xf32> to vector<1x1x1xf32>
    %117 = vector.extract %116[0, 0, 0] : f32 from vector<1x1x1xf32>
    %118 = vector.broadcast %117 : f32 to vector<1x1xf32>
    %cst_63 = arith.constant 1.024000e+03 : f32
    %119 = vector.broadcast %cst_63 : f32 to vector<1x1xf32>
    %120 = arith.divf %118, %119 : vector<1x1xf32>
    %121 = vector.broadcast %110 : vector<1x1xf32> to vector<8x128xf32>
    %122 = arith.subf %59, %121 : vector<8x128xf32>
    %cst_64 = arith.constant 9.99999974E-6 : f32
    %123 = vector.broadcast %cst_64 : f32 to vector<1x1xf32>
    %124 = arith.addf %120, %123 : vector<1x1xf32>
    %125 = math.rsqrt %124 : vector<1x1xf32>
    %126 = vector.broadcast %125 : vector<1x1xf32> to vector<8x128xf32>
    %127 = arith.mulf %122, %126 : vector<8x128xf32>
    %128 = arith.mulf %127, %76 : vector<8x128xf32>
    %129 = arith.addf %128, %77 : vector<8x128xf32>
    %130 = arith.addf %103, %129 : vector<8x128xf32>
    %131 = vector.shape_cast %75 : vector<8x128xf32> to vector<1x8x128xf32>
    %cst_65 = arith.constant dense<0.000000e+00> : vector<1xf32>
    %132 = vector.multi_reduction <add>, %131, %cst_65 [1, 2] : vector<1x8x128xf32> to vector<1xf32>
    %133 = vector.shape_cast %132 : vector<1xf32> to vector<1x1x1xf32>
    %134 = vector.extract %133[0, 0, 0] : f32 from vector<1x1x1xf32>
    %135 = vector.broadcast %134 : f32 to vector<1x1xf32>
    %cst_66 = arith.constant 1.024000e+03 : f32
    %136 = vector.broadcast %cst_66 : f32 to vector<1x1xf32>
    %137 = arith.divf %135, %136 : vector<1x1xf32>
    %138 = vector.broadcast %137 : vector<1x1xf32> to vector<8x128xf32>
    %139 = arith.subf %75, %138 : vector<8x128xf32>
    %140 = arith.mulf %139, %139 : vector<8x128xf32>
    %141 = vector.shape_cast %140 : vector<8x128xf32> to vector<1x8x128xf32>
    %cst_67 = arith.constant dense<0.000000e+00> : vector<1xf32>
    %142 = vector.multi_reduction <add>, %141, %cst_67 [1, 2] : vector<1x8x128xf32> to vector<1xf32>
    %143 = vector.shape_cast %142 : vector<1xf32> to vector<1x1x1xf32>
    %144 = vector.extract %143[0, 0, 0] : f32 from vector<1x1x1xf32>
    %145 = vector.broadcast %144 : f32 to vector<1x1xf32>
    %cst_68 = arith.constant 1.024000e+03 : f32
    %146 = vector.broadcast %cst_68 : f32 to vector<1x1xf32>
    %147 = arith.divf %145, %146 : vector<1x1xf32>
    %148 = vector.broadcast %137 : vector<1x1xf32> to vector<8x128xf32>
    %149 = arith.subf %75, %148 : vector<8x128xf32>
    %cst_69 = arith.constant 9.99999974E-6 : f32
    %150 = vector.broadcast %cst_69 : f32 to vector<1x1xf32>
    %151 = arith.addf %147, %150 : vector<1x1xf32>
    %152 = math.rsqrt %151 : vector<1x1xf32>
    %153 = vector.broadcast %152 : vector<1x1xf32> to vector<8x128xf32>
    %154 = arith.mulf %149, %153 : vector<8x128xf32>
    %155 = arith.mulf %154, %76 : vector<8x128xf32>
    %156 = arith.addf %155, %77 : vector<8x128xf32>
    %157 = arith.addf %130, %156 : vector<8x128xf32>
    %c0_70 = arith.constant 0 : index
    %c0_71 = arith.constant 0 : index
    %c0_72 = arith.constant 0 : index
    %158 = vector.load %arg20[%c0_70, %c0_71, %c0_72] : memref<1x8x128xf32, #tpu.memory_space<vmem>>, vector<1x8x128xf32>
    %159 = vector.shape_cast %158 : vector<1x8x128xf32> to vector<8x128xf32>
    %160 = vector.shape_cast %157 : vector<8x128xf32> to vector<1x8x128xf32>
    tpu.vector_store %arg20[%c0_70, %c0_71, %c0_72], %160 {strides = array<i32>} : memref<1x8x128xf32, #tpu.memory_space<vmem>>, vector<1x8x128xf32>,
    return
  }
  func.func @transform_0(%arg0: i32) -> (i32, i32, i32) {
    %c0_i32 = arith.constant 0 : i32
    %c0_i32_0 = arith.constant 0 : i32
    %c0_i32_1 = arith.constant 0 : i32
    return %arg0, %c0_i32, %c0_i32_0 : i32, i32, i32
  }
  func.func @transform_1(%arg0: i32) -> (i32, i32, i32) {
    %c0_i32 = arith.constant 0 : i32
    %c0_i32_0 = arith.constant 0 : i32
    %c0_i32_1 = arith.constant 0 : i32
    return %arg0, %c0_i32, %c0_i32_0 : i32, i32, i32
  }
  func.func @transform_2(%arg0: i32) -> (i32, i32, i32) {
    %c0_i32 = arith.constant 0 : i32
    %c0_i32_0 = arith.constant 0 : i32
    %c0_i32_1 = arith.constant 0 : i32
    return %arg0, %c0_i32, %c0_i32_0 : i32, i32, i32
  }
  func.func @transform_3(%arg0: i32) -> (i32, i32) {
    %c0_i32 = arith.constant 0 : i32
    %c0_i32_0 = arith.constant 0 : i32
    %c0_i32_1 = arith.constant 0 : i32
    return %c0_i32, %c0_i32_0 : i32, i32
  }
  func.func @transform_4(%arg0: i32) -> (i32, i32) {
    %c0_i32 = arith.constant 0 : i32
    %c0_i32_0 = arith.constant 0 : i32
    %c0_i32_1 = arith.constant 0 : i32
    return %c0_i32, %c0_i32_0 : i32, i32
  }
  func.func @transform_5(%arg0: i32) -> (i32, i32) {
    %c0_i32 = arith.constant 0 : i32
    %c0_i32_0 = arith.constant 0 : i32
    %c0_i32_1 = arith.constant 0 : i32
    return %c0_i32, %c0_i32_0 : i32, i32
  }
  func.func @transform_6(%arg0: i32) -> (i32, i32, i32) {
    %c0_i32 = arith.constant 0 : i32
    %c0_i32_0 = arith.constant 0 : i32
    %c0_i32_1 = arith.constant 0 : i32
    return %arg0, %c0_i32, %c0_i32_0 : i32, i32, i32
  }
  func.func @transform_7(%arg0: i32) -> (i32, i32) {
    %c0_i32 = arith.constant 0 : i32
    %c0_i32_0 = arith.constant 0 : i32
    %c0_i32_1 = arith.constant 0 : i32
    return %c0_i32, %c0_i32_0 : i32, i32
  }
  func.func @transform_8(%arg0: i32) -> (i32, i32) {
    %c0_i32 = arith.constant 0 : i32
    %c0_i32_0 = arith.constant 0 : i32
    %c0_i32_1 = arith.constant 0 : i32
    return %c0_i32, %c0_i32_0 : i32, i32
  }
  func.func @transform_9(%arg0: i32) -> (i32, i32) {
    %c0_i32 = arith.constant 0 : i32
    %c0_i32_0 = arith.constant 0 : i32
    %c0_i32_1 = arith.constant 0 : i32
    return %c0_i32, %c0_i32_0 : i32, i32
  }
  func.func @transform_10(%arg0: i32) -> (i32, i32) {
    %c0_i32 = arith.constant 0 : i32
    %c0_i32_0 = arith.constant 0 : i32
    %c0_i32_1 = arith.constant 0 : i32
    return %c0_i32, %c0_i32_0 : i32, i32
  }
  func.func @transform_11(%arg0: i32) -> (i32, i32) {
    %c0_i32 = arith.constant 0 : i32
    %c0_i32_0 = arith.constant 0 : i32
    %c0_i32_1 = arith.constant 0 : i32
    return %c0_i32, %c0_i32_0 : i32, i32
  }
  func.func @transform_12(%arg0: i32) -> (i32, i32, i32) {
    %c0_i32 = arith.constant 0 : i32
    %c0_i32_0 = arith.constant 0 : i32
    %c0_i32_1 = arith.constant 0 : i32
    return %arg0, %c0_i32, %c0_i32_0 : i32, i32, i32
  }
  func.func @transform_13(%arg0: i32) -> (i32, i32) {
    %c0_i32 = arith.constant 0 : i32
    %c0_i32_0 = arith.constant 0 : i32
    %c0_i32_1 = arith.constant 0 : i32
    return %c0_i32, %c0_i32_0 : i32, i32
  }
  func.func @transform_14(%arg0: i32) -> (i32, i32) {
    %c0_i32 = arith.constant 0 : i32
    %c0_i32_0 = arith.constant 0 : i32
    %c0_i32_1 = arith.constant 0 : i32
    return %c0_i32, %c0_i32_0 : i32, i32
  }
  func.func @transform_15(%arg0: i32) -> (i32, i32) {
    %c0_i32 = arith.constant 0 : i32
    %c0_i32_0 = arith.constant 0 : i32
    %c0_i32_1 = arith.constant 0 : i32
    return %c0_i32, %c0_i32_0 : i32, i32
  }
  func.func @transform_16(%arg0: i32) -> (i32, i32) {
    %c0_i32 = arith.constant 0 : i32
    %c0_i32_0 = arith.constant 0 : i32
    %c0_i32_1 = arith.constant 0 : i32
    return %c0_i32, %c0_i32_0 : i32, i32
  }
  func.func @transform_17(%arg0: i32) -> (i32, i32) {
    %c0_i32 = arith.constant 0 : i32
    %c0_i32_0 = arith.constant 0 : i32
    %c0_i32_1 = arith.constant 0 : i32
    return %c0_i32, %c0_i32_0 : i32, i32
  }
  func.func @transform_18(%arg0: i32) -> (i32, i32) {
    %c0_i32 = arith.constant 0 : i32
    %c0_i32_0 = arith.constant 0 : i32
    %c0_i32_1 = arith.constant 0 : i32
    return %c0_i32, %c0_i32_0 : i32, i32
  }
  func.func @transform_19(%arg0: i32) -> (i32, i32, i32) {
    %c0_i32 = arith.constant 0 : i32
    %c0_i32_0 = arith.constant 0 : i32
    %c0_i32_1 = arith.constant 0 : i32
    return %arg0, %c0_i32, %c0_i32_0 : i32, i32, i32
  }
}

</mosaic_0001>

<bundles_post_ra>
// kernel: bert_nspm_forward.3
= control target key start
LH: loop header
LB: loop body
LE: loop exit
PB: predicated region body
PF: predicated region fallthrough
CT: control target
= control target key end

     0   :  { %s2790_s0 = inlined_call_operand.vmem [shape: f32[2,8,128], index: 0, kind: input, shape index: {}]   ;;  %s2791_s1 = inlined_call_operand.vmem [shape: f32[2,1,8], index: 1, kind: input, shape index: {}]   ;;  %s2792_s2 = inlined_call_operand.vmem [shape: f32[128,384], index: 2, kind: input, shape index: {}]   ;;  %s2793_s3 = inlined_call_operand.vmem [shape: f32[1,384], index: 3, kind: input, shape index: {}]   ;;  %s2794_s4 = inlined_call_operand.vmem [shape: f32[128,128], index: 4, kind: input, shape index: {}]   ;;  %s2795_s5 = inlined_call_operand.vmem [shape: f32[1,128], index: 5, kind: input, shape index: {}]   ;;  %s2796_s6 = inlined_call_operand.vmem [shape: f32[1,128], index: 6, kind: input, shape index: {}]   ;;  %s2797_s7 = inlined_call_operand.vmem [shape: f32[1,128], index: 7, kind: input, shape index: {}]   ;;  %s2798_s8 = inlined_call_operand.vmem [shape: f32[128,512], index: 8, kind: input, shape index: {}]   ;;  %s2799_s9 = inlined_call_operand.vmem [shape: f32[1,512], index: 9, kind: input, shape index: {}]   ;;  %s2800_s10 = inlined_call_operand.vmem [shape: f32[512,128], index: 10, kind: input, shape index: {}]   ;;  %s2801_s11 = inlined_call_operand.vmem [shape: f32[1,128], index: 11, kind: input, shape index: {}]   ;;  %s2802_s12 = inlined_call_operand.vmem [shape: f32[1,128], index: 12, kind: input, shape index: {}]   ;;  %s2803_s13 = inlined_call_operand.vmem [shape: f32[1,128], index: 13, kind: input, shape index: {}]   ;;  %s2804_s14 = inlined_call_operand.vmem [shape: f32[128,128], index: 14, kind: input, shape index: {}]   ;;  %s2805_s15 = inlined_call_operand.vmem [shape: f32[1,128], index: 15, kind: input, shape index: {}]   ;;  %s2806_s16 = inlined_call_operand.vmem [shape: f32[128,128], index: 16, kind: input, shape index: {}]   ;;  %s2807_s17 = inlined_call_operand.vmem [shape: f32[1,128], index: 17, kind: input, shape index: {}]   ;;  %s2808_s18 = inlined_call_operand.hbm [shape: f32[2,1,128], index: 18, kind: output, shape index: {}]  }
   0x1   :  { %2819 = sst [smem:[#allocation12_spill]] %s2790_s0 }
   0x2   :  { %2820 = sst [smem:[#allocation13_spill]] %s2791_s1 }
   0x3   :  { %2821 = sst [smem:[#allocation14_spill]] %s2792_s2 }
   0x4   :  { %2822 = sst [smem:[#allocation15_spill]] %s2793_s3 }
   0x5   :  { %2823 = sst [smem:[#allocation16_spill]] %s2807_s17 }
   0x6   :  { %2824 = sst [smem:[#allocation17_spill]] %s2808_s18 }
   0x7   :  { %23 = vsyncpa [#allocation3], 0 }
   0x8   :  { %25 = vsyncpa [#allocation3 + $0x1], 0  ;;  %s1916_s27 = smov 0   ;;  %s1918_s28 = smov 0  }
   0x9   :  { %s1920_s29 = smov 0   ;;  %s1922_s30 = smov 0  }
   0xa LB: > { %2825 = sst [smem:[#allocation5_spill]] %s1803_s27  ;;  %s1937_s0 = sadd.s32 4294967295, %s1815_s30   ;;  %s1815_s30 = sphi %s1922_s30, %s2844_s30   ;;  %s1811_s29 = sphi %s1920_s29, %s2846_s29   ;;  %s1807_s28 = sphi %s1918_s28, %s2848_s28   ;;  %s1803_s27 = sphi %s1916_s27, %s2847_s27  }
   0xb   : > { %2826 = sst [smem:[#allocation6_spill]] %s1811_s29  ;;  %s1649_s19 = sadd.s32 4294967294, %s1815_s30  }
   0xc   : > { %2827 = sst [smem:[#allocation7_spill]] %s1815_s30  ;;  %s1941_s1 = sadd.s32 1, %s1815_s30  }
   0xd   : > { %2828 = sst [smem:[#allocation8_spill]] %s1941_s1  ;;  %s426_s20 = sadd.s32 1, %s1811_s29 }
   0xe   : > { %s423_s21 = ssub.s32 %s1815_s30, %s1941_s1  ;;  %p436_p0 = scmp.ne.s32.totalorder %s1811_s29, %s1807_s28 }
   0xf   : > { %p424_p1 = scmp.eq.s32.totalorder %s423_s21, 0  ;;  %p437_p2 = scmp.eq.s32.totalorder %s1937_s0, 1 }
  0x10   : > { %p442_p3 = scmp.ne.s32.totalorder %s1807_s28, %s1803_s27  ;;  %p443_p4 = scmp.eq.s32.totalorder %s1649_s19, 1 }
  0x11   : > { %s1952_s22 = scalar_select %p424_p1, %s1811_s29, %s426_s20  }
  0x12   : > { %p1954_p5 = por %p437_p2, %p436_p0  ;;  %p1958_p6 = por %p443_p4, %p442_p3 }
  0x13   : > { %2829 = sst [smem:[#allocation9_spill]] %s1952_s22  ;;  %p1652_p7 = scmp.ge.s32.totalorder %s1815_s30, 1 }
  0x14   : > { %s2830_s2 = scalar_select %p1954_p5, 1, 0 }
  0x15   : > { %s2832_s23 = scalar_select %p1958_p6, 1, 0 }
  0x16   : > { %2831 = sst [smem:[#allocation10_spill]] %s2830_s2  ;;  %p522_p8 = scmp.lt.s32.totalorder %s1815_s30, 3 }
  0x17   : > { %2833 = sst [smem:[#allocation11_spill]] %s2832_s23 }
  0x18   : > { %p523_p9 = pnand %p1652_p7, %p522_p8 }
  0x19   : > { %s2834_s26 = sld [smem:[#allocation14_spill]] (!%p523_p9)  ;;  %p577_p10 = scmp.lt.s32.totalorder (!%p523_p9), %s1937_s0, 1 }
  0x1a   : > { %526 = sbr.rel (%p523_p9) target bundleno = 3011 (0xbc3), region = 92  ;;  %s2835_s2 = sld [smem:[#allocation12_spill]] (!%p523_p9) }
  0x1b   : > { %s2836_s3 = sld [smem:[#allocation15_spill]] (!%p523_p9)  ;;  %s1818_s19 = smov (!%p523_p9), 64  }
  0x1c   : > { %s1819_s20 = smov (!%p523_p9), 32   ;;  %s2837_s29 = sld [smem:[#allocation13_spill]] (!%p523_p9) }
  0x1d   : > { %s2838_s23 = sld [smem:[#allocation17_spill]] (!%p523_p9) }
  0x1e   : > { %s2840_s21 = sld [smem:[#allocation16_spill]] (!%p523_p9) }
  0x1f   : > { %v634_v0 = vld [vmem:[%s2834_s26 + $0x170] sm:$0xff]  ;;  %v631_v1 = vld [vmem:[%s2834_s26 + $0x158] sm:$0xff]  ;;  %v633_v2 = vld [vmem:[%s2834_s26 + $0x168] sm:$0xff]  ;;  %s2047_s22 = scalar_select %p577_p10, %s1937_s0, 1  ;;  %vm721_vm0 = vcmask 261120   ;;  %vm753_vm1 = vcmask 64512  }
  0x20   : > { %664 = vmatpush.msra.mxu1 %v634_v0  ;;  %644 = vmatpush.msra.mxu0 %v633_v2  ;;  %v630_v3 = vld [vmem:[%s2834_s26 + $0x150] sm:$0xff]  ;;  %v628_v4 = vld [vmem:[%s2834_s26 + $0x140] sm:$0xff]  ;;  %v627_v5 = vld [vmem:[%s2834_s26 + $0x138] sm:$0xff] }
  0x21   : > { %v625_v6 = vld [vmem:[%s2834_s26 + $0x128] sm:$0xff]  ;;  %v624_v7 = vld [vmem:[%s2834_s26 + $0x120] sm:$0xff]  ;;  %v622_v8 = vld [vmem:[%s2834_s26 + $0x110] sm:$0xff]  ;;  %s1653_s1 = sshll.u32 %s2047_s22, 3 }
  0x22   : > { %665 = vmatpush.msra.mxu1 %v631_v1  ;;  %645 = vmatpush.msra.mxu0 %v630_v3  ;;  %v621_v9 = vld [vmem:[%s2834_s26 + $0x108] sm:$0xff]  ;;  %v619_v10 = vld [vmem:[%s2834_s26 + $0xf8] sm:$0xff]  ;;  %v618_v11 = vld [vmem:[%s2834_s26 + $0xf0] sm:$0xff]  ;;  %s580_s25 = scalar_lea.vmem %s2835_s2, %s1653_s1  ;;  %s1817_s1 = smov 96  }
  0x23   : > { %v616_v12 = vld [vmem:[%s2834_s26 + $0xe0] sm:$0xff]  ;;  %v615_v13 = vld [vmem:[%s2834_s26 + $0xd8] sm:$0xff]  ;;  %v613_v16 = vld [vmem:[%s2834_s26 + $0xc8] sm:$0xff]  ;;  %s583_s2 = scalar_lea.vmem %s2837_s29, %s2047_s22  ;;  %s1581_s24 = scalar_lea.hbm %s2838_s23, %s1937_s0 }
  0x24   : > { %666 = vmatpush.msra.mxu1 %v628_v4  ;;  %646 = vmatpush.msra.mxu0 %v627_v5  ;;  %v635_v14 = vld [vmem:[%s2834_s26 + $0x178] sm:$0xff]  ;;  %v632_v15 = vld [vmem:[%s2834_s26 + $0x160] sm:$0xff]  ;;  %v629_v18 = vld [vmem:[%s2834_s26 + $0x148] sm:$0xff]  ;;  %s1773_s27 = scalar_lea.hbm %s2838_s23, 2 }
  0x25   : > { %v612_v17 = vld [vmem:[%s2834_s26 + $0xc0] sm:$0xff]  ;;  %684 = vmatpush.msra.mxu2 %v635_v14  ;;  %v610_v19 = vld [vmem:[%s2834_s26 + $0xb0] sm:$0xff]  ;;  %v609_v20 = vld [vmem:[%s2834_s26 + $0xa8] sm:$0xff] }
  0x26   : > { %667 = vmatpush.msra.mxu1 %v625_v6  ;;  %647 = vmatpush.msra.mxu0 %v624_v7  ;;  %v607_v21 = vld [vmem:[%s2834_s26 + $0x98] sm:$0xff]  ;;  %v626_v22 = vld [vmem:[%s2834_s26 + $0x130] sm:$0xff]  ;;  %v604_v23 = vld [vmem:[%s2834_s26 + $0x80] sm:$0xff] }
  0x27   : > { %685 = vmatpush.msra.mxu2 %v632_v15  ;;  %v606_v24 = vld [vmem:[%s2834_s26 + $0x90] sm:$0xff]  ;;  %v603_v25 = vld [vmem:[%s2834_s26 + $0x78] sm:$0xff]  ;;  %v620_v27 = vld [vmem:[%s2834_s26 + $0x100] sm:$0xff] }
  0x28   : > { %668 = vmatpush.msra.mxu1 %v622_v8  ;;  %648 = vmatpush.msra.mxu0 %v621_v9  ;;  %v623_v26 = vld [vmem:[%s2834_s26 + $0x118] sm:$0xff]  ;;  %v601_v28 = vld [vmem:[%s2834_s26 + $0x68] sm:$0xff]  ;;  %v600_v29 = vld [vmem:[%s2834_s26 + $0x60] sm:$0xff] }
  0x29   : > { %686 = vmatpush.msra.mxu2 %v629_v18  ;;  %v617_v30 = vld [vmem:[%s2834_s26 + $0xe8] sm:$0xff]  ;;  %v598_v31 = vld [vmem:[%s2834_s26 + $0x50] sm:$0xff]  ;;  %v595_v34 = vld [vmem:[%s2834_s26 + $0x38] sm:$0xff] }
  0x2a   : > { %669 = vmatpush.msra.mxu1 %v619_v10  ;;  %649 = vmatpush.msra.mxu0 %v618_v11  ;;  %v597_v32 = vld [vmem:[%s2834_s26 + $0x48] sm:$0xff]  ;;  %v614_v33 = vld [vmem:[%s2834_s26 + $0xd0] sm:$0xff]  ;;  %v611_v36 = vld [vmem:[%s2834_s26 + $0xb8] sm:$0xff] }
  0x2b   : > { %687 = vmatpush.msra.mxu2 %v626_v22  ;;  %v594_v35 = vld [vmem:[%s2834_s26 + $0x30] sm:$0xff]  ;;  %v592_v37 = vld [vmem:[%s2834_s26 + $0x20] sm:$0xff]  ;;  %v591_v38 = vld [vmem:[%s2834_s26 + $0x18] sm:$0xff] }
  0x2c   : > { %670 = vmatpush.msra.mxu1 %v616_v12  ;;  %650 = vmatpush.msra.mxu0 %v615_v13  ;;  %v608_v39 = vld [vmem:[%s2834_s26 + $0xa0] sm:$0xff]  ;;  %v589_v40 = vld [vmem:[%s2834_s26 + $0x8] sm:$0xff]  ;;  %v602_v44 = vld [vmem:[%s2834_s26 + $0x70] sm:$0xff] }
  0x2d   : > { %688 = vmatpush.msra.mxu2 %v623_v26  ;;  %v588_v41 = vld [vmem:[%s2834_s26] sm:$0xff]  ;;  %v605_v43 = vld [vmem:[%s2834_s26 + $0x88] sm:$0xff]  ;;  %v599_v45 = vld [vmem:[%s2834_s26 + $0x58] sm:$0xff] }
  0x2e   : > { %671 = vmatpush.msra.mxu1 %v613_v16  ;;  %651 = vmatpush.msra.mxu0 %v612_v17  ;;  %v2098_v42 = vld [vmem:[%s580_s25] sm:$0xff]  ;;  %v593_v47 = vld [vmem:[%s2834_s26 + $0x28] sm:$0xff]  ;;  %v590_v48 = vld [vmem:[%s2834_s26 + $0x10] sm:$0xff] }
  0x2f   : > { %689 = vmatpush.msra.mxu2 %v620_v27  ;;  %v596_v46 = vld [vmem:[%s2834_s26 + $0x40] sm:$0xff]  ;;  %v707_v56 = vld [vmem:[%s2794_s4 + $0x18] sm:$0xff]  ;;  %v706_v57 = vld [vmem:[%s2794_s4 + $0x10] sm:$0xff] }
  0x30   : > { %672 = vmatpush.msra.mxu1 %v610_v19  ;;  %652 = vmatpush.msra.mxu0 %v609_v20  ;;  %v636_v49 = vld [vmem:[%s2836_s3] sm:$0x7]  ;;  %v705_v58 = vld [vmem:[%s2794_s4 + $0x8] sm:$0xff]  ;;  %v711_v60 = vld [vmem:[%s2794_s4 + $0x38] sm:$0xff] }
  0x31   : > { %690 = vmatpush.msra.mxu2 %v617_v30  ;;  %v639_v50 = vperm.slane %v636_v49, 1  ;;  %v638_v51 = vperm.slane %v636_v49, 0  ;;  %803 = vmatpush.msra.mxu3 %v707_v56  ;;  %v704_v59 = vld [vmem:[%s2794_s4] sm:$0xff]  ;;  %v640_v61 = vperm.slane %v636_v49, 2  ;;  %v710_v63 = vld [vmem:[%s2794_s4 + $0x30] sm:$0xff]  ;;  %v709_v1 = vld [vmem:[%s2794_s4 + $0x28] sm:$0xff] }
  0x32   : > { %673 = vmatpush.msra.mxu1 %v607_v21  ;;  %653 = vmatpush.msra.mxu0 %v606_v24  ;;  %v708_v2 = vld [vmem:[%s2794_s4 + $0x20] sm:$0xff] }
  0x33   : > { %691 = vmatpush.msra.mxu2 %v614_v33  ;;  %804 = vmatpush.msra.mxu3 %v706_v57  ;;  %v585_v4 = vld [vmem:[%s583_s2] sm:$0x1]  ;;  %s1585_s2 = sshll.u32 %s1581_s24, 4  ;;  %s1586_s2 = int_to_ptr.hbm [resolvable:$true] %s1585_s2 }
  0x34   : > { %674 = vmatpush.msra.mxu1 %v604_v23  ;;  %654 = vmatpush.msra.mxu0 %v603_v25  ;;  %v586_v6 = vsub.f32 1.0, %v585_v4  ;;  %v713_v4 = vld [vmem:[%s2794_s4 + $0x48] sm:$0xff] }
  0x35   : > { %692 = vmatpush.msra.mxu2 %v611_v36  ;;  %805 = vmatpush.msra.mxu3 %v705_v58 }
  0x36   : > { %675 = vmatpush.msra.mxu1 %v601_v28  ;;  %655 = vmatpush.msra.mxu0 %v600_v29  ;;  %v587_v7 = vmul.f32 -10000.0, %v586_v6 }
  0x37   : > { %693 = vmatpush.msra.mxu2 %v608_v39  ;;  %806 = vmatpush.msra.mxu3 %v704_v59 }
  0x38   : > { %676 = vmatpush.msra.mxu1 %v598_v31  ;;  %656 = vmatpush.msra.mxu0 %v597_v32  ;;  %v2169_v9 = vperm.slane %v587_v7, 0 }
  0x39   : > { %694 = vmatpush.msra.mxu2 %v605_v43 }
  0x3a   : > { %677 = vmatpush.msra.mxu1 %v595_v34  ;;  %657 = vmatpush.msra.mxu0 %v594_v35 }
  0x3b   : > { %695 = vmatpush.msra.mxu2 %v602_v44 }
  0x3c   : > { %678 = vmatpush.msra.mxu1 %v592_v37  ;;  %658 = vmatpush.msra.mxu0 %v591_v38 }
  0x3d   : > { %696 = vmatpush.msra.mxu2 %v599_v45 }
  0x3e   : > { %679 = vmatpush.msra.mxu1 %v589_v40  ;;  %659 = vmatpush.msra.mxu0 %v588_v41  ;;  %v1715_v41 = vld [vmem:[%s2795_s5] ss:$0 sm:$0xff] }
  0x3f   : > { %680 = vmatmul.f32.vlgmr.msra.gmra.mxu1 %v2098_v42  ;;  %660 = vmatmul.f32.vlgmr.msra.gmra.mxu0 %v2098_v42 }
  0x40   : > { %697 = vmatpush.msra.mxu2 %v596_v46  ;;  %898 = vmatpush.msrb.mxu1 %v711_v60 }
  0x42   : > { %698 = vmatpush.msra.mxu2 %v593_v47  ;;  %899 = vmatpush.msrb.mxu1 %v710_v63 }
  0x44   : > { %699 = vmatpush.msra.mxu2 %v590_v48  ;;  %900 = vmatpush.msrb.mxu1 %v709_v1 }
  0x45   : > { %700 = vmatmul.f32.vlgmr.msra.gmra.mxu2 %v2098_v42 }
  0x46   : > { %901 = vmatpush.msrb.mxu1 %v708_v2  ;;  %v715_v2 = vld [vmem:[%s2794_s4 + $0x58] sm:$0xff] }
  0xbc   : > { %v681_v52 = vpop.f32.mrf.mxu1  ;;  %v661_v53 = vpop.f32.mrf.mxu0 }
  0xbd   : > { %v682_v54 = vadd.f32 %v681_v52, %v639_v50  ;;  %v2124_v55 = vadd.f32 %v661_v53, %v638_v51 }
  0xbf   : > { %817 = vrot.lane.b32.xlu1 %v682_v54, %s1817_s1  ;;  %1654 = vmatpush.xpose.msk.msrb.mxu2 %vm721_vm0, %v682_v54 }
  0xc2   : > { %1655 = vmatmul.msk.f32.vlgmr.msrb.gmra.mxu2 %vm721_vm0, %v2124_v55 }
  0xc7   : > { %815 = vrot.lane.b32.xlu1 %v2124_v55, %s1817_s1 }
  0xc8   : > { %v701_v62 = vpop.f32.mrf.mxu2 }
  0xc9   : > { %v2154_v0 = vadd.f32 %v701_v62, %v640_v61 }
  0xcb   : > { %783 = vmatpush.msra.mxu2 %v2154_v0 }
  0xcf   : > { %909 = vrot.lane.b32.xlu1 %v682_v54, %s1818_s19 }
  0xd7   : > { %1000 = vrot.lane.b32.xlu1 %v682_v54, %s1819_s20 }
  0xdf   : > { %998 = vrot.lane.b32.xlu1 %v2124_v55, %s1819_s20 }
 0x131   : > { %v818_v3 = vpop.permute.xlu1 %817 }
 0x132   : > { %1658 = vmatpush.xpose.msk.msrb.mxu3 %vm721_vm0, %v818_v3  ;;  %v714_v3 = vld [vmem:[%s2794_s4 + $0x50] sm:$0xff] }
 0x139   : > { %v816_v5 = vpop.permute.xlu1 %815 }
 0x141   : > { %v910_v8 = vpop.permute.xlu1 %909 }
 0x142   : > { %1662 = vmatpush.xpose.msk.msra.mxu1 %vm721_vm0, %v910_v8 }
 0x145   : > { %v745_v10 = vpop.f32.mrf.mxu2 }
 0x146   : > { %v748_v11 = vmul.f32 0.17677669, %v745_v10  ;;  %v718_v10 = vld [vmem:[%s2794_s4 + $0x70] sm:$0xff] }
 0x148   : > { %v752_v12 = vadd.f32 %v2169_v9, %v748_v11 }
 0x149   : > { %v1001_v38 = vpop.permute.xlu1 %1000 }
 0x14a   : > { %v754_v13 = vsel %vm753_vm1, %v752_v12, -inf }
 0x14b   : > { %755 = vmax.xlane.f32.xlu0 %v754_v13  ;;  %v712_v13 = vld [vmem:[%s2794_s4 + $0x40] sm:$0xff] }
 0x151   : > { %v999_v40 = vpop.permute.xlu1 %998 }
 0x1be   : > { %v756_v14 = vpop.xlane.xlu0 %755 }
 0x1bf   : > { %v757_v15 = vsub.f32 %v752_v12, %v756_v14  ;;  %v717_v14 = vld [vmem:[%s2794_s4 + $0x68] sm:$0xff] }
 0x1c1   : > { %v758_v16 = vmul.f32 1.442695, %v757_v15  ;;  %v716_v15 = vld [vmem:[%s2794_s4 + $0x60] sm:$0xff] }
 0x1c3   : > { %1721 = vpow2.f32 %v758_v16 }
 0x1c9   : > { %v1722_v17 = vpop.eup %1721 }
 0x1ca   : > { %v760_v18 = vsel %vm753_vm1, %v1722_v17, 0.0 }
 0x1cb   : > { %761 = vadd.xlane.f32.xlu0 %v760_v18 }
 0x1df   : > { %857 = vrot.lane.b32.xlu0 %v2154_v0, %s1817_s1  ;;  %s1767_s1 = sshra.s32 %s1586_s2, 4  ;;  %s1768_s1 = int_to_ptr.hbm [resolvable:$true] %s1767_s1 }
 0x1e0   : > { %s1769_s3 = scalar_lea.hbm %s1768_s1, 1  ;;  %p1774_p0 = scmp.lt.s32.totalorder %s1768_s1, %s2838_s23 }
 0x1e1   : > { %p1770_p11 = scmp.ne.s32.totalorder %s1768_s1, %s1769_s3  ;;  %p1775_p1 = scmp.lt.s32.totalorder %s1773_s27, %s1769_s3 }
 0x1e3   : > { %p1771_p12 = pnand %p1770_p11, %p1954_p5  ;;  %p1776_p2 = por %p1775_p1, %p1774_p0 }
 0x1e5   : > { %p1772_p13 = pneg %p1771_p12 }
 0x1e7   : > { %p1777_p3 = pnand %p1776_p2, %p1772_p13 }
 0x23e   : > { %v762_v19 = vpop.xlane.xlu0 %761 }
 0x23f   : > { %1723 = vrcp.f32 %v762_v19 }
 0x245   : > { %v1724_v20 = vpop.eup %1723 }
 0x246   : > { %v764_v21 = vmul.f32 %v1724_v20, %v1722_v17 }
 0x248   : > { %1656 = vmatmul.msk.f32.vlgmr.msra.gmra.mxu2 %vm753_vm1, %v764_v21 }
 0x251   : > { %v858_v23 = vpop.permute.xlu0 %857 }
 0x2cb   : > { %v785_v22 = vpop.f32.mrf.mxu2 }
 0x2cc   : > { %1657 = vmatmul.msk.f32.vlgmr.msra.gmra.mxu3 %vm721_vm0, %v785_v22 }
 0x2cd   : > { %878 = vmatpush.msra.mxu3 %v858_v23  ;;  %v1820_v23 = vmov 128.0  }
 0x2d4   : > { %1659 = vmatmul.msk.f32.vlgmr.msrb.gmra.mxu3 %vm721_vm0, %v816_v5 }
 0x2d5   : > { %989 = vmatpush.msrb.mxu3 %v715_v2  ;;  %v1162_v2 = vld [vmem:[%s2798_s8 + $0x118] sm:$0xff] }
 0x2d7   : > { %990 = vmatpush.msrb.mxu3 %v714_v3  ;;  %v1155_v3 = vld [vmem:[%s2798_s8 + $0xe0] sm:$0xff] }
 0x2d9   : > { %991 = vmatpush.msrb.mxu3 %v713_v4  ;;  %v1156_v4 = vld [vmem:[%s2798_s8 + $0xe8] sm:$0xff] }
 0x2db   : > { %992 = vmatpush.msrb.mxu3 %v712_v13  ;;  %v1150_v13 = vld [vmem:[%s2798_s8 + $0xb8] sm:$0xff] }
 0x34f   : > { %v808_v24 = vpop.f32.mrf.mxu3 }
 0x350   : > { %v814_v43 = vadd.f32 %v1715_v41, %v808_v24  ;;  %v1187_v24 = vld [vmem:[%s2798_s8 + $0x1e0] sm:$0xff] }
 0x351   : > { %v1179_v41 = vld [vmem:[%s2798_s8 + $0x1a0] sm:$0xff] }
 0x357   : > { %v840_v25 = vpop.f32.mrf.mxu3 }
 0x358   : > { %v843_v26 = vmul.f32 0.17677669, %v840_v25  ;;  %v1188_v25 = vld [vmem:[%s2798_s8 + $0x1e8] sm:$0xff] }
 0x359   : > { %1221 = vmatpush.msrb.mxu0 %v1188_v25  ;;  %v1138_v25 = vld [vmem:[%s2798_s8 + $0x58] sm:$0xff] }
 0x35a   : > { %v844_v27 = vadd.f32 %v843_v26, %v2169_v9  ;;  %v1189_v26 = vld [vmem:[%s2798_s8 + $0x1f0] sm:$0xff] }
 0x35c   : > { %v845_v28 = vsel %vm753_vm1, %v844_v27, -inf }
 0x35d   : > { %846 = vmax.xlane.f32.xlu2 %v845_v28  ;;  %v1184_v28 = vld [vmem:[%s2798_s8 + $0x1c8] sm:$0xff] }
 0x35e   : > { %1222 = vmatpush.msrb.mxu0 %v1184_v28  ;;  %v1134_v28 = vld [vmem:[%s2798_s8 + $0x38] sm:$0xff] }
 0x3d0   : > { %v847_v29 = vpop.xlane.xlu2 %846 }
 0x3d1   : > { %v848_v30 = vsub.f32 %v844_v27, %v847_v29  ;;  %v1183_v27 = vld [vmem:[%s2798_s8 + $0x1c0] sm:$0xff]  ;;  %v1185_v29 = vld [vmem:[%s2798_s8 + $0x1d0] sm:$0xff] }
 0x3d3   : > { %v849_v31 = vmul.f32 1.442695, %v848_v30  ;;  %v1186_v30 = vld [vmem:[%s2798_s8 + $0x1d8] sm:$0xff] }
 0x3d5   : > { %1725 = vpow2.f32 %v849_v31 }
 0x3db   : > { %v1726_v32 = vpop.eup %1725 }
 0x3dc   : > { %v851_v33 = vsel %vm753_vm1, %v1726_v32, 0.0 }
 0x3dd   : > { %852 = vadd.xlane.f32.xlu2 %v851_v33 }
 0x3f5   : > { %907 = vrot.lane.b32.xlu2 %v2124_v55, %s1818_s19 }
 0x450   : > { %v853_v34 = vpop.xlane.xlu2 %852 }
 0x451   : > { %1727 = vrcp.f32 %v853_v34 }
 0x457   : > { %v1728_v35 = vpop.eup %1727 }
 0x458   : > { %v855_v36 = vmul.f32 %v1728_v35, %v1726_v32  ;;  %v908_v39 = vpop.permute.xlu2 %907 }
 0x45a   : > { %1660 = vmatmul.msk.f32.vlgmr.msra.gmra.mxu3 %vm753_vm1, %v855_v36 }
 0x45b   : > { %1201 = vmatpush.msra.mxu3 %v1187_v24  ;;  %v1137_v24 = vld [vmem:[%s2798_s8 + $0x50] sm:$0xff] }
 0x45d   : > { %1202 = vmatpush.msra.mxu3 %v1183_v27  ;;  %v1133_v27 = vld [vmem:[%s2798_s8 + $0x30] sm:$0xff] }
 0x45f   : > { %1203 = vmatpush.msra.mxu3 %v1179_v41  ;;  %v1362_v41 = vld [vmem:[%s2800_s10 + $0x168] sm:$0xff] }
 0x4dd   : > { %v880_v37 = vpop.f32.mrf.mxu3 }
 0x4de   : > { %1661 = vmatmul.msk.f32.vlgmr.msrb.gmra.mxu1 %vm721_vm0, %v880_v37 }
 0x4df   : > { %1666 = vmatpush.xpose.msk.msrb.mxu1 %vm721_vm0, %v1001_v38 }
 0x4e6   : > { %1663 = vmatmul.msk.f32.vlgmr.msra.gmra.mxu1 %vm721_vm0, %v908_v39 }
 0x4ee   : > { %1667 = vmatmul.msk.f32.vlgmr.msrb.gmra.mxu1 %vm721_vm0, %v999_v40 }
 0x55b   : > { %v903_v44 = vpop.f32.mrf.mxu1 }
 0x55c   : > { %v906_v45 = vadd.f32 %v903_v44, %v814_v43  ;;  %v1180_v43 = vld [vmem:[%s2798_s8 + $0x1a8] sm:$0xff]  ;;  %v1181_v44 = vld [vmem:[%s2798_s8 + $0x1b0] sm:$0xff] }
 0x55d   : > { %1223 = vmatpush.msrb.mxu0 %v1180_v43 }
 0x563   : > { %v932_v46 = vpop.f32.mrf.mxu1 }
 0x564   : > { %v935_v47 = vmul.f32 0.17677669, %v932_v46  ;;  %v1175_v46 = vld [vmem:[%s2798_s8 + $0x180] sm:$0xff] }
 0x565   : > { %1204 = vmatpush.msra.mxu3 %v1175_v46 }
 0x566   : > { %v936_v48 = vadd.f32 %v935_v47, %v2169_v9  ;;  %v1176_v47 = vld [vmem:[%s2798_s8 + $0x188] sm:$0xff] }
 0x567   : > { %1224 = vmatpush.msrb.mxu0 %v1176_v47 }
 0x568   : > { %v937_v49 = vsel %vm753_vm1, %v936_v48, -inf }
 0x569   : > { %938 = vmax.xlane.f32.xlu0 %v937_v49  ;;  %v1178_v49 = vld [vmem:[%s2798_s8 + $0x198] sm:$0xff] }
 0x56b   : > { %v1023_v50 = vpop.f32.mrf.mxu1 }
 0x56c   : > { %v1026_v51 = vmul.f32 0.17677669, %v1023_v50  ;;  %v1171_v50 = vld [vmem:[%s2798_s8 + $0x160] sm:$0xff] }
 0x56d   : > { %1205 = vmatpush.msra.mxu3 %v1171_v50 }
 0x56e   : > { %v1027_v52 = vadd.f32 %v1026_v51, %v2169_v9  ;;  %v719_v9 = vld [vmem:[%s2794_s4 + $0x78] sm:$0xff]  ;;  %v1172_v51 = vld [vmem:[%s2798_s8 + $0x168] sm:$0xff] }
 0x56f   : > { %1225 = vmatpush.msrb.mxu0 %v1172_v51  ;;  %v1716_v51 = vld [vmem:[%s2796_s6] ss:$0 sm:$0xff] }
 0x570   : > { %v1028_v53 = vsel %vm753_vm1, %v1027_v52, -inf }
 0x571   : > { %1029 = vmax.xlane.f32.xlu1 %v1028_v53  ;;  %v1174_v53 = vld [vmem:[%s2798_s8 + $0x178] sm:$0xff] }
 0x58a   : > { %1039 = vrot.lane.b32.xlu1 %v2154_v0, %s1819_s20  ;;  %s575_s20 = sand.u32 1, %s1807_s28  }
 0x58b   : > { %s576_s30 = scalar_lea.vmem [#allocation2], %s575_s20  ;;  %s1573_s22 = scalar_lea.sflag [#allocation3], %s575_s20 }
 0x58c   : > { %s1583_s29 = sshll.u32 %s576_s30, 4  ;;  %s1584_s29 = int_to_ptr.vmem [resolvable:$true] %s1583_s29 }
 0x5dc   : > { %v939_v54 = vpop.xlane.xlu0 %938 }
 0x5dd   : > { %v940_v55 = vsub.f32 %v936_v48, %v939_v54  ;;  %v1177_v48 = vld [vmem:[%s2798_s8 + $0x190] sm:$0xff]  ;;  %v1167_v54 = vld [vmem:[%s2798_s8 + $0x140] sm:$0xff] }
 0x5de   : > { %1206 = vmatpush.msra.mxu3 %v1167_v54  ;;  %v1717_v54 = vld [vmem:[%s2797_s7] ss:$0 sm:$0xff] }
 0x5df   : > { %v941_v56 = vmul.f32 1.442695, %v940_v55  ;;  %v1168_v55 = vld [vmem:[%s2798_s8 + $0x148] sm:$0xff] }
 0x5e0   : > { %1226 = vmatpush.msrb.mxu0 %v1168_v55 }
 0x5e1   : > { %1729 = vpow2.f32 %v941_v56  ;;  %v1169_v56 = vld [vmem:[%s2798_s8 + $0x150] sm:$0xff] }
 0x5e4   : > { %v1030_v57 = vpop.xlane.xlu1 %1029 }
 0x5e5   : > { %v1031_v58 = vsub.f32 %v1027_v52, %v1030_v57  ;;  %v1173_v52 = vld [vmem:[%s2798_s8 + $0x170] sm:$0xff]  ;;  %v1170_v57 = vld [vmem:[%s2798_s8 + $0x158] sm:$0xff] }
 0x5e7   : > { %v1730_v59 = vpop.eup %1729  ;;  %v1032_v60 = vmul.f32 1.442695, %v1031_v58  ;;  %v1163_v58 = vld [vmem:[%s2798_s8 + $0x120] sm:$0xff] }
 0x5e8   : > { %v943_v61 = vsel %vm753_vm1, %v1730_v59, 0.0  ;;  %1207 = vmatpush.msra.mxu3 %v1163_v58  ;;  %v1361_v58 = vld [vmem:[%s2800_s10 + $0x160] sm:$0xff] }
 0x5e9   : > { %1731 = vpow2.f32 %v1032_v60  ;;  %944 = vadd.xlane.f32.xlu2 %v943_v61  ;;  %v1165_v60 = vld [vmem:[%s2798_s8 + $0x130] sm:$0xff]  ;;  %v1166_v61 = vld [vmem:[%s2798_s8 + $0x138] sm:$0xff] }
 0x5ef   : > { %v1732_v62 = vpop.eup %1731 }
 0x5f0   : > { %v1034_v63 = vsel %vm753_vm1, %v1732_v62, 0.0 }
 0x5f1   : > { %1035 = vadd.xlane.f32.xlu0 %v1034_v63  ;;  %v1160_v63 = vld [vmem:[%s2798_s8 + $0x108] sm:$0xff] }
 0x5fc   : > { %v1040_v1 = vpop.permute.xlu1 %1039 }
 0x5fd   : > { %1060 = vmatpush.msra.mxu1 %v1040_v1  ;;  %v1161_v1 = vld [vmem:[%s2798_s8 + $0x110] sm:$0xff] }
 0x5ff   : > { %1241 = vmatpush.msrb.mxu1 %v1189_v26  ;;  %v1131_v26 = vld [vmem:[%s2798_s8 + $0x20] sm:$0xff] }
 0x601   : > { %948 = vrot.lane.b32.xlu2 %v2154_v0, %s1818_s19  ;;  %1242 = vmatpush.msrb.mxu1 %v1185_v29  ;;  %v1127_v29 = vld [vmem:[%s2798_s8] sm:$0xff] }
 0x603   : > { %1243 = vmatpush.msrb.mxu1 %v1181_v44 }
 0x605   : > { %1244 = vmatpush.msrb.mxu1 %v1177_v48 }
 0x607   : > { %1245 = vmatpush.msrb.mxu1 %v1173_v52 }
 0x609   : > { %1246 = vmatpush.msrb.mxu1 %v1169_v56 }
 0x60b   : > { %1247 = vmatpush.msrb.mxu1 %v1165_v60  ;;  %v1331_v60 = vld [vmem:[%s2800_s10 + $0x70] sm:$0xff] }
 0x60d   : > { %1248 = vmatpush.msrb.mxu1 %v1161_v1  ;;  %v1330_v1 = vld [vmem:[%s2800_s10 + $0x68] sm:$0xff] }
 0x65c   : > { %v945_v5 = vpop.xlane.xlu2 %944 }
 0x65d   : > { %1733 = vrcp.f32 %v945_v5  ;;  %v1157_v5 = vld [vmem:[%s2798_s8 + $0xf0] sm:$0xff] }
 0x65e   : > { %1249 = vmatpush.msrb.mxu1 %v1157_v5  ;;  %v1329_v5 = vld [vmem:[%s2800_s10 + $0x60] sm:$0xff] }
 0x663   : > { %v1734_v6 = vpop.eup %1733 }
 0x664   : > { %v947_v7 = vmul.f32 %v1734_v6, %v1730_v59  ;;  %v949_v0 = vpop.permute.xlu2 %948  ;;  %v1036_v8 = vpop.xlane.xlu0 %1035  ;;  %v1164_v59 = vld [vmem:[%s2798_s8 + $0x128] sm:$0xff]  ;;  %v1158_v6 = vld [vmem:[%s2798_s8 + $0xf8] sm:$0xff] }
 0x665   : > { %1735 = vrcp.f32 %v1036_v8  ;;  %969 = vmatpush.msrb.mxu2 %v949_v0  ;;  %1227 = vmatpush.msrb.mxu0 %v1164_v59  ;;  %v1152_v0 = vld [vmem:[%s2798_s8 + $0xc8] sm:$0xff]  ;;  %v1153_v8 = vld [vmem:[%s2798_s8 + $0xd0] sm:$0xff]  ;;  %v1380_v59 = vld [vmem:[%s2800_s10 + $0x1f8] sm:$0xff] }
 0x666   : > { %1664 = vmatmul.msk.f32.vlgmr.msrb.gmra.mxu2 %vm753_vm1, %v947_v7  ;;  %1737 = vrcp.f32 %v1820_v23  ;;  %v1151_v7 = vld [vmem:[%s2798_s8 + $0xc0] sm:$0xff]  ;;  %1250 = vmatpush.msrb.mxu1 %v1153_v8  ;;  %v1136_v23 = vld [vmem:[%s2798_s8 + $0x48] sm:$0xff]  ;;  %v1328_v8 = vld [vmem:[%s2800_s10 + $0x58] sm:$0xff] }
 0x667   : > { %1080 = vmatpush.msra.mxu2 %v719_v9  ;;  %1228 = vmatpush.msrb.mxu0 %v1160_v63  ;;  %v1154_v9 = vld [vmem:[%s2798_s8 + $0xd8] sm:$0xff]  ;;  %v1379_v63 = vld [vmem:[%s2800_s10 + $0x1f0] sm:$0xff] }
 0x669   : > { %1081 = vmatpush.msra.mxu2 %v718_v10  ;;  %1229 = vmatpush.msrb.mxu0 %v1156_v4  ;;  %v1147_v10 = vld [vmem:[%s2798_s8 + $0xa0] sm:$0xff]  ;;  %v1378_v4 = vld [vmem:[%s2800_s10 + $0x1e8] sm:$0xff] }
 0x66b   : > { %v1736_v11 = vpop.eup %1735  ;;  %1082 = vmatpush.msra.mxu2 %v717_v14  ;;  %1230 = vmatpush.msrb.mxu0 %v1152_v0  ;;  %v1143_v14 = vld [vmem:[%s2798_s8 + $0x80] sm:$0xff] }
 0x66c   : > { %v1038_v12 = vmul.f32 %v1736_v11, %v1732_v62  ;;  %v1738_v31 = vpop.eup %1737  ;;  %v1159_v62 = vld [vmem:[%s2798_s8 + $0x100] sm:$0xff]  ;;  %v1148_v11 = vld [vmem:[%s2798_s8 + $0xa8] sm:$0xff] }
 0x66d   : > { %1083 = vmatpush.msra.mxu2 %v716_v15  ;;  %v1095_v32 = vmul.f32 128.0, %v1738_v31  ;;  %vm1099_vm2 = vweird.f32 %v1738_v31  ;;  %1208 = vmatpush.msra.mxu3 %v1159_v62  ;;  %v1144_v15 = vld [vmem:[%s2798_s8 + $0x88] sm:$0xff]  ;;  %v1360_v62 = vld [vmem:[%s2800_s10 + $0x158] sm:$0xff]  ;;  %v1377_v0 = vld [vmem:[%s2800_s10 + $0x1e0] sm:$0xff] }
 0x66e   : > { %1668 = vmatmul.msk.f32.vlgmr.msra.gmra.mxu1 %vm753_vm1, %v1038_v12  ;;  %v1149_v12 = vld [vmem:[%s2798_s8 + $0xb0] sm:$0xff]  ;;  %1231 = vmatpush.msrb.mxu0 %v1148_v11  ;;  %v1376_v11 = vld [vmem:[%s2800_s10 + $0x1d8] sm:$0xff] }
 0x66f   : > { %v1096_v33 = vsub.f32 1.0, %v1095_v32  ;;  %1209 = vmatpush.msra.mxu3 %v1155_v3  ;;  %1251 = vmatpush.msrb.mxu1 %v1149_v12  ;;  %v1130_v32 = vld [vmem:[%s2798_s8 + $0x18] sm:$0xff]  ;;  %v1359_v3 = vld [vmem:[%s2800_s10 + $0x150] sm:$0xff] }
 0x670   : > { %1232 = vmatpush.msrb.mxu0 %v1144_v15  ;;  %v1327_v12 = vld [vmem:[%s2800_s10 + $0x50] sm:$0xff] }
 0x671   : > { %v1097_v34 = vmul.f32 %v1738_v31, %v1096_v33  ;;  %1210 = vmatpush.msra.mxu3 %v1151_v7  ;;  %v1348_v33 = vld [vmem:[%s2800_s10 + $0xf8] sm:$0xff]  ;;  %v1358_v7 = vld [vmem:[%s2800_s10 + $0x148] sm:$0xff]  ;;  %v1375_v15 = vld [vmem:[%s2800_s10 + $0x1d0] sm:$0xff] }
 0x673   : > { %v1098_v35 = vadd.f32 %v1738_v31, %v1097_v34  ;;  %1211 = vmatpush.msra.mxu3 %v1147_v10  ;;  %v1364_v34 = vld [vmem:[%s2800_s10 + $0x178] sm:$0xff]  ;;  %v1357_v10 = vld [vmem:[%s2800_s10 + $0x140] sm:$0xff] }
 0x675   : > { %v2255_v36 = vsel %vm1099_vm2, %v1738_v31, %v1098_v35  ;;  %1212 = vmatpush.msra.mxu3 %v1143_v14  ;;  %v1129_v31 = vld [vmem:[%s2798_s8 + $0x10] sm:$0xff]  ;;  %v1356_v14 = vld [vmem:[%s2800_s10 + $0x138] sm:$0xff] }
 0x676   : > { %v1347_v35 = vld [vmem:[%s2800_s10 + $0xf0] sm:$0xff] }
 0x6e9   : > { %v971_v16 = vpop.f32.mrf.mxu2 }
 0x6ea   : > { %1665 = vmatmul.msk.f32.vlgmr.msrb.gmra.mxu3 %vm721_vm0, %v971_v16  ;;  %v1145_v16 = vld [vmem:[%s2798_s8 + $0x90] sm:$0xff] }
 0x6eb   : > { %v1062_v17 = vpop.f32.mrf.mxu1  ;;  %1252 = vmatpush.msrb.mxu1 %v1145_v16  ;;  %v1326_v16 = vld [vmem:[%s2800_s10 + $0x48] sm:$0xff] }
 0x6ec   : > { %1669 = vmatmul.msk.f32.vlgmr.msra.gmra.mxu2 %vm721_vm0, %v1062_v17  ;;  %v1146_v17 = vld [vmem:[%s2798_s8 + $0x98] sm:$0xff] }
 0x76d   : > { %v994_v18 = vpop.f32.mrf.mxu3 }
 0x76e   : > { %v997_v19 = vadd.f32 %v994_v18, %v906_v45  ;;  %v1182_v45 = vld [vmem:[%s2798_s8 + $0x1b8] sm:$0xff]  ;;  %v1139_v18 = vld [vmem:[%s2798_s8 + $0x60] sm:$0xff] }
 0x76f   : > { %v1085_v20 = vpop.f32.mrf.mxu2  ;;  %1213 = vmatpush.msra.mxu3 %v1139_v18  ;;  %v1355_v18 = vld [vmem:[%s2800_s10 + $0x130] sm:$0xff] }
 0x770   : > { %v1088_v21 = vadd.f32 %v1085_v20, %v997_v19  ;;  %v1140_v19 = vld [vmem:[%s2798_s8 + $0x68] sm:$0xff]  ;;  %v1141_v20 = vld [vmem:[%s2798_s8 + $0x70] sm:$0xff] }
 0x771   : > { %1233 = vmatpush.msrb.mxu0 %v1140_v19  ;;  %1253 = vmatpush.msrb.mxu1 %v1141_v20  ;;  %v1374_v19 = vld [vmem:[%s2800_s10 + $0x1c8] sm:$0xff]  ;;  %v1325_v20 = vld [vmem:[%s2800_s10 + $0x40] sm:$0xff] }
 0x772   : > { %v1089_v22 = vadd.f32 %v1088_v21, %v2098_v42  ;;  %v1190_v42 = vld [vmem:[%s2798_s8 + $0x1f8] sm:$0xff] }
 0x773   : > { %1261 = vmatpush.msrb.mxu2 %v1190_v42  ;;  %v1142_v21 = vld [vmem:[%s2798_s8 + $0x78] sm:$0xff]  ;;  %1234 = vmatpush.msrb.mxu0 %v1136_v23  ;;  %v1132_v42 = vld [vmem:[%s2798_s8 + $0x28] sm:$0xff]  ;;  %v1373_v23 = vld [vmem:[%s2800_s10 + $0x1c0] sm:$0xff] }
 0x774   : > { %1092 = vadd.xlane.f32.xlu0 %v1089_v22  ;;  %1254 = vmatpush.msrb.mxu1 %v1137_v24  ;;  %v1324_v24 = vld [vmem:[%s2800_s10 + $0x38] sm:$0xff] }
 0x775   : > { %1262 = vmatpush.msrb.mxu2 %v1186_v30  ;;  %1235 = vmatpush.msrb.mxu0 %v1132_v42  ;;  %v1128_v30 = vld [vmem:[%s2798_s8 + $0x8] sm:$0xff]  ;;  %v1372_v42 = vld [vmem:[%s2800_s10 + $0x1b8] sm:$0xff] }
 0x776   : > { %1255 = vmatpush.msrb.mxu1 %v1133_v27  ;;  %v1323_v27 = vld [vmem:[%s2800_s10 + $0x30] sm:$0xff] }
 0x777   : > { %1263 = vmatpush.msrb.mxu2 %v1182_v45  ;;  %1236 = vmatpush.msrb.mxu0 %v1128_v30  ;;  %v1371_v30 = vld [vmem:[%s2800_s10 + $0x1b0] sm:$0xff] }
 0x778   : > { %1256 = vmatpush.msrb.mxu1 %v1129_v31  ;;  %v1322_v31 = vld [vmem:[%s2800_s10 + $0x28] sm:$0xff] }
 0x779   : > { %1264 = vmatpush.msrb.mxu2 %v1178_v49  ;;  %1405 = vmatpush.msra.mxu0 %v1348_v33  ;;  %v1351_v33 = vld [vmem:[%s2800_s10 + $0x110] sm:$0xff] }
 0x77a   : > { %1425 = vmatpush.msra.mxu1 %v1364_v34  ;;  %v1370_v34 = vld [vmem:[%s2800_s10 + $0x1a8] sm:$0xff] }
 0x77b   : > { %1265 = vmatpush.msrb.mxu2 %v1174_v53  ;;  %1406 = vmatpush.msra.mxu0 %v1347_v35  ;;  %v1321_v35 = vld [vmem:[%s2800_s10 + $0x20] sm:$0xff] }
 0x77d   : > { %1266 = vmatpush.msrb.mxu2 %v1170_v57  ;;  %v1332_v57 = vld [vmem:[%s2800_s10 + $0x78] sm:$0xff] }
 0x77f   : > { %1267 = vmatpush.msrb.mxu2 %v1166_v61  ;;  %v1344_v61 = vld [vmem:[%s2800_s10 + $0xd8] sm:$0xff] }
 0x781   : > { %1268 = vmatpush.msrb.mxu2 %v1162_v2  ;;  %v1343_v2 = vld [vmem:[%s2800_s10 + $0xd0] sm:$0xff] }
 0x783   : > { %1269 = vmatpush.msrb.mxu2 %v1158_v6  ;;  %v1342_v6 = vld [vmem:[%s2800_s10 + $0xc8] sm:$0xff] }
 0x785   : > { %1270 = vmatpush.msrb.mxu2 %v1154_v9  ;;  %v1341_v9 = vld [vmem:[%s2800_s10 + $0xc0] sm:$0xff] }
 0x787   : > { %1271 = vmatpush.msrb.mxu2 %v1150_v13  ;;  %v1340_v13 = vld [vmem:[%s2800_s10 + $0xb8] sm:$0xff] }
 0x789   : > { %1272 = vmatpush.msrb.mxu2 %v1146_v17  ;;  %v1339_v17 = vld [vmem:[%s2800_s10 + $0xb0] sm:$0xff] }
 0x78b   : > { %1273 = vmatpush.msrb.mxu2 %v1142_v21  ;;  %v1338_v21 = vld [vmem:[%s2800_s10 + $0xa8] sm:$0xff] }
 0x78d   : > { %1274 = vmatpush.msrb.mxu2 %v1138_v25  ;;  %v1337_v25 = vld [vmem:[%s2800_s10 + $0xa0] sm:$0xff] }
 0x78f   : > { %1275 = vmatpush.msrb.mxu2 %v1134_v28  ;;  %v1336_v28 = vld [vmem:[%s2800_s10 + $0x98] sm:$0xff] }
 0x791   : > { %1276 = vmatpush.msrb.mxu2 %v1130_v32  ;;  %v1335_v32 = vld [vmem:[%s2800_s10 + $0x90] sm:$0xff] }
 0x793   : > { %1445 = vmatpush.msra.mxu2 %v1380_v59 }
 0x795   : > { %1446 = vmatpush.msra.mxu2 %v1379_v63 }
 0x797   : > { %1447 = vmatpush.msra.mxu2 %v1378_v4 }
 0x799   : > { %1448 = vmatpush.msra.mxu2 %v1377_v0 }
 0x79b   : > { %1449 = vmatpush.msra.mxu2 %v1376_v11 }
 0x79d   : > { %1450 = vmatpush.msra.mxu2 %v1375_v15 }
 0x79f   : > { %1451 = vmatpush.msra.mxu2 %v1374_v19 }
 0x7a1   : > { %1452 = vmatpush.msra.mxu2 %v1373_v23 }
 0x7a3   : > { %1453 = vmatpush.msra.mxu2 %v1372_v42 }
 0x7a5   : > { %1454 = vmatpush.msra.mxu2 %v1371_v30 }
 0x7a7   : > { %1455 = vmatpush.msra.mxu2 %v1370_v34 }
 0x7e7   : > { %v1093_v37 = vpop.xlane.xlu0 %1092 }
 0x7e8   : > { %v1101_v38 = vmul.f32 %v2255_v36, %v1093_v37  ;;  %v1363_v37 = vld [vmem:[%s2800_s10 + $0x170] sm:$0xff] }
 0x7e9   : > { %1426 = vmatpush.msra.mxu1 %v1363_v37  ;;  %v1334_v37 = vld [vmem:[%s2800_s10 + $0x88] sm:$0xff] }
 0x7ea   : > { %v2258_v39 = vsub.f32 %v1089_v22, %v1101_v38  ;;  %v1135_v22 = vld [vmem:[%s2798_s8 + $0x40] sm:$0xff] }
 0x7eb   : > { %1214 = vmatpush.msra.mxu3 %v1135_v22  ;;  %1427 = vmatpush.msra.mxu1 %v1362_v41  ;;  %v1354_v22 = vld [vmem:[%s2800_s10 + $0x128] sm:$0xff]  ;;  %v1320_v41 = vld [vmem:[%s2800_s10 + $0x18] sm:$0xff] }
 0x7ec   : > { %v1103_v40 = vmul.f32 %v2258_v39, %v2258_v39 }
 0x7ed   : > { %1215 = vmatpush.msra.mxu3 %v1131_v26  ;;  %1428 = vmatpush.msra.mxu1 %v1361_v58  ;;  %v1353_v26 = vld [vmem:[%s2800_s10 + $0x120] sm:$0xff] }
 0x7ee   : > { %1104 = vadd.xlane.f32.xlu0 %v1103_v40  ;;  %v1346_v40 = vld [vmem:[%s2800_s10 + $0xe8] sm:$0xff] }
 0x7ef   : > { %1216 = vmatpush.msra.mxu3 %v1127_v29  ;;  %1407 = vmatpush.msra.mxu0 %v1346_v40  ;;  %v1352_v29 = vld [vmem:[%s2800_s10 + $0x118] sm:$0xff]  ;;  %v1369_v40 = vld [vmem:[%s2800_s10 + $0x1a0] sm:$0xff] }
 0x7f0   : > { %1429 = vmatpush.msra.mxu1 %v1360_v62  ;;  %1456 = vmatpush.msra.mxu2 %v1369_v40 }
 0x7f1   : > { %1385 = vmatpush.msrb.mxu3 %v1332_v57 }
 0x7f2   : > { %1430 = vmatpush.msra.mxu1 %v1359_v3 }
 0x7f3   : > { %1386 = vmatpush.msrb.mxu3 %v1331_v60 }
 0x7f4   : > { %1431 = vmatpush.msra.mxu1 %v1358_v7 }
 0x7f5   : > { %1387 = vmatpush.msrb.mxu3 %v1330_v1 }
 0x7f6   : > { %1432 = vmatpush.msra.mxu1 %v1357_v10 }
 0x7f7   : > { %1388 = vmatpush.msrb.mxu3 %v1329_v5 }
 0x7f8   : > { %1433 = vmatpush.msra.mxu1 %v1356_v14 }
 0x7f9   : > { %1389 = vmatpush.msrb.mxu3 %v1328_v8 }
 0x7fa   : > { %1434 = vmatpush.msra.mxu1 %v1355_v18 }
 0x7fb   : > { %1390 = vmatpush.msrb.mxu3 %v1327_v12 }
 0x7fc   : > { %1435 = vmatpush.msra.mxu1 %v1354_v22 }
 0x7fd   : > { %1391 = vmatpush.msrb.mxu3 %v1326_v16 }
 0x7fe   : > { %1436 = vmatpush.msra.mxu1 %v1353_v26 }
 0x7ff   : > { %1392 = vmatpush.msrb.mxu3 %v1325_v20 }
 0x800   : > { %1437 = vmatpush.msra.mxu1 %v1352_v29 }
 0x801   : > { %1393 = vmatpush.msrb.mxu3 %v1324_v24 }
 0x802   : > { %1438 = vmatpush.msra.mxu1 %v1351_v33 }
 0x803   : > { %1394 = vmatpush.msrb.mxu3 %v1323_v27 }
 0x805   : > { %1395 = vmatpush.msrb.mxu3 %v1322_v31 }
 0x807   : > { %1396 = vmatpush.msrb.mxu3 %v1321_v35 }
 0x809   : > { %1397 = vmatpush.msrb.mxu3 %v1320_v41 }
 0x861   : > { %v1105_v38 = vpop.xlane.xlu0 %1104 }
 0x862   : > { %v1106_v43 = vmul.f32 %v1105_v38, %v2255_v36  ;;  %v1350_v38 = vld [vmem:[%s2800_s10 + $0x108] sm:$0xff] }
 0x863   : > { %1439 = vmatpush.msra.mxu1 %v1350_v38 }
 0x864   : > { %v1107_v44 = vadd.f32 1e-12, %v1106_v43  ;;  %v1333_v43 = vld [vmem:[%s2800_s10 + $0x80] sm:$0xff] }
 0x866   : > { %1739 = vrsqrt.f32 %v1107_v44  ;;  %vm1114_vm4 = vweird.f32 %v1107_v44 }
 0x86c   : > { %v1740_v45 = vpop.eup %1739 }
 0x86d   : > { %v1109_v46 = vmul.f32 %v1740_v45, %v1107_v44  ;;  %vm1115_vm3 = vweird.f32 %v1740_v45  ;;  %v1349_v44 = vld [vmem:[%s2800_s10 + $0x100] sm:$0xff] }
 0x86e   : > { %vm1116_vm5 = vmor %vm1114_vm4, %vm1115_vm3  ;;  %1440 = vmatpush.msra.mxu1 %v1349_v44 }
 0x86f   : > { %v1110_v47 = vmul.f32 %v1740_v45, %v1109_v46  ;;  %v1191_v46 = vld [vmem:[%s2799_s9] sm:$0xf] }
 0x870   : > { %v1193_v60 = vperm.slane %v1191_v46, 0  ;;  %v1196_v62 = vperm.slane %v1191_v46, 3 }
 0x871   : > { %v1111_v48 = vmul.f32 0.5, %v1110_v47  ;;  %v1319_v47 = vld [vmem:[%s2800_s10 + $0x10] sm:$0xff] }
 0x872   : > { %1398 = vmatpush.msrb.mxu3 %v1319_v47 }
 0x873   : > { %v1112_v49 = vsub.f32 1.5, %v1111_v48  ;;  %v1367_v48 = vld [vmem:[%s2800_s10 + $0x190] sm:$0xff] }
 0x875   : > { %v1113_v50 = vmul.f32 %v1740_v45, %v1112_v49  ;;  %v1318_v49 = vld [vmem:[%s2800_s10 + $0x8] sm:$0xff] }
 0x876   : > { %1399 = vmatpush.msrb.mxu3 %v1318_v49  ;;  %v1511_v49 = vld [vmem:[%s2804_s14 + $0x78] sm:$0xff] }
 0x877   : > { %v1117_v52 = vsel %vm1116_vm5, %v1740_v45, %v1113_v50  ;;  %v1368_v45 = vld [vmem:[%s2800_s10 + $0x198] sm:$0xff]  ;;  %v1366_v50 = vld [vmem:[%s2800_s10 + $0x188] sm:$0xff] }
 0x878   : > { %v1118_v53 = vmul.f32 %v1117_v52, %v2258_v39  ;;  %v1345_v39 = vld [vmem:[%s2800_s10 + $0xe0] sm:$0xff]  ;;  %1457 = vmatpush.msra.mxu2 %v1368_v45 }
 0x879   : > { %1408 = vmatpush.msra.mxu0 %v1345_v39  ;;  %v1317_v52 = vld [vmem:[%s2800_s10] sm:$0xff] }
 0x87a   : > { %v1122_v55 = vmul.f32 %v1716_v51, %v1118_v53  ;;  %v1194_v51 = vperm.slane %v1191_v46, 1  ;;  %1458 = vmatpush.msra.mxu2 %v1367_v48  ;;  %v1195_v53 = vperm.slane %v1191_v46, 2  ;;  %1400 = vmatpush.msrb.mxu3 %v1317_v52 }
 0x87b   : > { %1409 = vmatpush.msra.mxu0 %v1344_v61 }
 0x87c   : > { %v2456_v56 = vadd.f32 %v1717_v54, %v1122_v55  ;;  %v1365_v54 = vld [vmem:[%s2800_s10 + $0x180] sm:$0xff]  ;;  %1459 = vmatpush.msra.mxu2 %v1366_v50  ;;  %v1510_v50 = vld [vmem:[%s2804_s14 + $0x70] sm:$0xff] }
 0x87d   : > { %1410 = vmatpush.msra.mxu0 %v1343_v2 }
 0x87e   : > { %1217 = vmatmul.f32.vlgmr.msra.gmra.mxu3 %v2456_v56  ;;  %1237 = vmatmul.f32.vlgmr.msrb.gmra.mxu0 %v2456_v56 }
 0x87f   : > { %1257 = vmatmul.f32.vlgmr.msrb.gmra.mxu1 %v2456_v56  ;;  %1277 = vmatmul.f32.vlgmr.msrb.gmra.mxu2 %v2456_v56 }
 0x880   : > { %1411 = vmatpush.msra.mxu0 %v1342_v6  ;;  %1460 = vmatpush.msra.mxu2 %v1365_v54 }
 0x881   : > { %1513 = vmatpush.msra.mxu3 %v1511_v49 }
 0x882   : > { %1412 = vmatpush.msra.mxu0 %v1341_v9 }
 0x883   : > { %1514 = vmatpush.msra.mxu3 %v1510_v50 }
 0x884   : > { %1413 = vmatpush.msra.mxu0 %v1340_v13 }
 0x886   : > { %1414 = vmatpush.msra.mxu0 %v1339_v17 }
 0x888   : > { %1415 = vmatpush.msra.mxu0 %v1338_v21 }
 0x88a   : > { %1416 = vmatpush.msra.mxu0 %v1337_v25 }
 0x88c   : > { %1417 = vmatpush.msra.mxu0 %v1336_v28 }
 0x88e   : > { %1418 = vmatpush.msra.mxu0 %v1335_v32 }
 0x890   : > { %1419 = vmatpush.msra.mxu0 %v1334_v37  ;;  %v1718_v37 = vld [vmem:[%s2801_s11] ss:$0 sm:$0xff] }
 0x892   : > { %1420 = vmatpush.msra.mxu0 %v1333_v43 }
 0x8fb   : > { %v1238_v55 = vpop.f32.mrf.mxu0 }
 0x8fc   : > { %v1239_v57 = vadd.f32 %v1238_v55, %v1194_v51  ;;  %v1258_v39 = vpop.f32.mrf.mxu1  ;;  %v1508_v55 = vld [vmem:[%s2804_s14 + $0x60] sm:$0xff] }
 0x8fd   : > { %v1259_v58 = vadd.f32 %v1258_v39, %v1195_v53  ;;  %v1506_v39 = vld [vmem:[%s2804_s14 + $0x50] sm:$0xff] }
 0x8fe   : > { %v1282_v59 = vmul.f32 %v1239_v57, %v1239_v57 }
 0x8ff   : > { %v1283_v61 = vmul.f32 %v1259_v58, %v1259_v58 }
 0x900   : > { %v1286_v63 = vmul.f32 %v1282_v59, %v1239_v57  ;;  %v1504_v59 = vld [vmem:[%s2804_s14 + $0x40] sm:$0xff] }
 0x901   : > { %v1287_v1 = vmul.f32 %v1283_v61, %v1259_v58  ;;  %v1218_v2 = vpop.f32.mrf.mxu3  ;;  %v1502_v61 = vld [vmem:[%s2804_s14 + $0x30] sm:$0xff] }
 0x902   : > { %v1290_v3 = vmul.f32 0.044715, %v1286_v63  ;;  %v1219_v4 = vadd.f32 %v1218_v2, %v1193_v60  ;;  %v1278_v5 = vpop.f32.mrf.mxu2  ;;  %v1503_v60 = vld [vmem:[%s2804_s14 + $0x38] sm:$0xff]  ;;  %v1500_v63 = vld [vmem:[%s2804_s14 + $0x20] sm:$0xff]  ;;  %v1498_v2 = vld [vmem:[%s2804_s14 + $0x10] sm:$0xff] }
 0x903   : > { %v1291_v6 = vmul.f32 0.044715, %v1287_v1  ;;  %v1279_v7 = vadd.f32 %v1278_v5, %v1196_v62  ;;  %v1501_v62 = vld [vmem:[%s2804_s14 + $0x28] sm:$0xff]  ;;  %v1499_v1 = vld [vmem:[%s2804_s14 + $0x18] sm:$0xff] }
 0x904   : > { %v1294_v0 = vadd.f32 %v1290_v3, %v1239_v57  ;;  %v1281_v8 = vmul.f32 %v1219_v4, %v1219_v4  ;;  %v1497_v3 = vld [vmem:[%s2804_s14 + $0x8] sm:$0xff]  ;;  %v1549_v5 = vld [vmem:[%s2806_s16 + $0x78] sm:$0xff] }
 0x905   : > { %v1295_v9 = vadd.f32 %v1291_v6, %v1259_v58  ;;  %v1284_v10 = vmul.f32 %v1279_v7, %v1279_v7  ;;  %v1548_v6 = vld [vmem:[%s2806_s16 + $0x70] sm:$0xff]  ;;  %1551 = vmatpush.msrb.mxu0 %v1549_v5 }
 0x906   : > { %v1298_v11 = vmul.f32 0.7978846, %v1294_v0  ;;  %v1285_v12 = vmul.f32 %v1281_v8, %v1219_v4 }
 0x907   : > { %v1299_v13 = vmul.f32 0.7978846, %v1295_v9  ;;  %v1288_v14 = vmul.f32 %v1284_v10, %v1279_v7  ;;  %1552 = vmatpush.msrb.mxu0 %v1548_v6  ;;  %v1546_v9 = vld [vmem:[%s2806_s16 + $0x60] sm:$0xff] }
 0x908   : > { %1741 = vtanh.f32 %v1298_v11  ;;  %v1289_v15 = vmul.f32 0.044715, %v1285_v12  ;;  %v1545_v11 = vld [vmem:[%s2806_s16 + $0x58] sm:$0xff]  ;;  %v1544_v12 = vld [vmem:[%s2806_s16 + $0x50] sm:$0xff] }
 0x909   : > { %1743 = vtanh.f32 %v1299_v13  ;;  %v1292_v16 = vmul.f32 0.044715, %v1288_v14  ;;  %v1542_v13 = vld [vmem:[%s2806_s16 + $0x40] sm:$0xff] }
 0x90a   : > { %v1293_v17 = vadd.f32 %v1289_v15, %v1219_v4  ;;  %v1541_v15 = vld [vmem:[%s2806_s16 + $0x38] sm:$0xff] }
 0x90b   : > { %v1296_v18 = vadd.f32 %v1292_v16, %v1279_v7 }
 0x90c   : > { %v1297_v19 = vmul.f32 0.7978846, %v1293_v17  ;;  %v1540_v17 = vld [vmem:[%s2806_s16 + $0x30] sm:$0xff] }
 0x90d   : > { %v1300_v20 = vmul.f32 0.7978846, %v1296_v18 }
 0x90e   : > { %v1742_v21 = vpop.eup %1741  ;;  %1745 = vtanh.f32 %v1297_v19  ;;  %v1539_v19 = vld [vmem:[%s2806_s16 + $0x28] sm:$0xff] }
 0x90f   : > { %v1744_v22 = vpop.eup %1743  ;;  %1747 = vtanh.f32 %v1300_v20  ;;  %v1306_v23 = vadd.f32 1.0, %v1742_v21 }
 0x910   : > { %v1307_v24 = vadd.f32 1.0, %v1744_v22 }
 0x911   : > { %v1310_v25 = vmul.f32 0.5, %v1306_v23  ;;  %v1719_v23 = vld [vmem:[%s2802_s12] ss:$0 sm:$0xff] }
 0x912   : > { %v1311_v26 = vmul.f32 0.5, %v1307_v24 }
 0x913   : > { %v1314_v42 = vmul.f32 %v1310_v25, %v1239_v57  ;;  %v1507_v57 = vld [vmem:[%s2804_s14 + $0x58] sm:$0xff] }
 0x914   : > { %v1746_v27 = vpop.eup %1745  ;;  %v1315_v28 = vmul.f32 %v1311_v26, %v1259_v58  ;;  %v1505_v58 = vld [vmem:[%s2804_s14 + $0x48] sm:$0xff]  ;;  %v1720_v26 = vld [vmem:[%s2803_s13] ss:$0 sm:$0xff] }
 0x915   : > { %v1748_v29 = vpop.eup %1747  ;;  %1421 = vmatmul.f32.vlgmr.msra.gmra.mxu0 %v1314_v42  ;;  %v1305_v30 = vadd.f32 1.0, %v1746_v27 }
 0x916   : > { %1441 = vmatmul.f32.vlgmr.msra.gmra.mxu1 %v1315_v28  ;;  %v1308_v31 = vadd.f32 1.0, %v1748_v29  ;;  %v1538_v28 = vld [vmem:[%s2806_s16 + $0x20] sm:$0xff]  ;;  %v1537_v29 = vld [vmem:[%s2806_s16 + $0x18] sm:$0xff] }
 0x917   : > { %v1309_v32 = vmul.f32 0.5, %v1305_v30  ;;  %v1536_v30 = vld [vmem:[%s2806_s16 + $0x10] sm:$0xff] }
 0x918   : > { %v1312_v33 = vmul.f32 0.5, %v1308_v31  ;;  %v1535_v31 = vld [vmem:[%s2806_s16 + $0x8] sm:$0xff] }
 0x919   : > { %v1313_v34 = vmul.f32 %v1309_v32, %v1219_v4  ;;  %v1496_v4 = vld [vmem:[%s2804_s14] sm:$0xff] }
 0x91a   : > { %v1316_v35 = vmul.f32 %v1312_v33, %v1279_v7  ;;  %v1547_v7 = vld [vmem:[%s2806_s16 + $0x68] sm:$0xff]  ;;  %v1534_v32 = vld [vmem:[%s2806_s16] sm:$0xff] }
 0x91b   : > { %1401 = vmatmul.f32.vlgmr.msrb.gmra.mxu3 %v1313_v34  ;;  %1553 = vmatpush.msrb.mxu0 %v1547_v7  ;;  %v1512_v33 = vld [vmem:[%s2805_s15] sm:$0x1] }
 0x91c   : > { %1461 = vmatmul.f32.vlgmr.msra.gmra.mxu2 %v1316_v35 }
 0x91d   : > { %1554 = vmatpush.msrb.mxu0 %v1546_v9 }
 0x91f   : > { %1555 = vmatpush.msrb.mxu0 %v1545_v11 }
 0x921   : > { %1556 = vmatpush.msrb.mxu0 %v1544_v12 }
 0x992   : > { %v1422_v41 = vpop.f32.mrf.mxu0 }
 0x993   : > { %v1442_v44 = vpop.f32.mrf.mxu1 }
 0x99e   : > { %v1402_v38 = vpop.f32.mrf.mxu3 }
 0x99f   : > { %v1403_v40 = vadd.f32 %v1718_v37, %v1402_v38  ;;  %v1462_v46 = vpop.f32.mrf.mxu2  ;;  %v1550_v38 = vld [vmem:[%s2840_s21] sm:$0x1] }
 0x9a1   : > { %v1423_v43 = vadd.f32 %v1422_v41, %v1403_v40 }
 0x9a3   : > { %v1443_v45 = vadd.f32 %v1442_v44, %v1423_v43 }
 0x9a5   : > { %v1463_v47 = vadd.f32 %v1462_v46, %v1443_v45 }
 0x9a7   : > { %v1465_v48 = vadd.f32 %v1463_v47, %v2456_v56  ;;  %v1509_v56 = vld [vmem:[%s2804_s14 + $0x68] sm:$0xff] }
 0x9a8   : > { %1515 = vmatpush.msra.mxu3 %v1509_v56 }
 0x9a9   : > { %1468 = vadd.xlane.f32.xlu0 %v1465_v48 }
 0x9aa   : > { %1516 = vmatpush.msra.mxu3 %v1508_v55 }
 0x9ac   : > { %1517 = vmatpush.msra.mxu3 %v1507_v57 }
 0x9ae   : > { %1518 = vmatpush.msra.mxu3 %v1506_v39 }
 0x9b0   : > { %1519 = vmatpush.msra.mxu3 %v1505_v58 }
 0x9b2   : > { %1520 = vmatpush.msra.mxu3 %v1504_v59 }
 0x9b4   : > { %1521 = vmatpush.msra.mxu3 %v1503_v60 }
 0x9b6   : > { %1522 = vmatpush.msra.mxu3 %v1502_v61 }
 0x9b8   : > { %1523 = vmatpush.msra.mxu3 %v1501_v62 }
 0x9ba   : > { %1524 = vmatpush.msra.mxu3 %v1500_v63 }
 0x9bc   : > { %1525 = vmatpush.msra.mxu3 %v1499_v1 }
 0x9be   : > { %1526 = vmatpush.msra.mxu3 %v1498_v2 }
 0x9c0   : > { %1527 = vmatpush.msra.mxu3 %v1497_v3 }
 0x9c2   : > { %1528 = vmatpush.msra.mxu3 %v1496_v4 }
 0xa1c   : > { %v1469_v51 = vpop.xlane.xlu0 %1468 }
 0xa1d   : > { %v1470_v52 = vmul.f32 %v1469_v51, %v2255_v36 }
 0xa1f   : > { %v2650_v53 = vsub.f32 %v1465_v48, %v1470_v52 }
 0xa21   : > { %v1472_v54 = vmul.f32 %v2650_v53, %v2650_v53 }
 0xa23   : > { %1473 = vadd.xlane.f32.xlu2 %v1472_v54 }
 0xa96   : > { %v1474_v0 = vpop.xlane.xlu2 %1473 }
 0xa97   : > { %v1475_v8 = vmul.f32 %v1474_v0, %v2255_v36  ;;  %v1543_v36 = vld [vmem:[%s2806_s16 + $0x48] sm:$0xff] }
 0xa98   : > { %1557 = vmatpush.msrb.mxu0 %v1543_v36 }
 0xa99   : > { %v1476_v10 = vadd.f32 1e-12, %v1475_v8 }
 0xa9a   : > { %1558 = vmatpush.msrb.mxu0 %v1542_v13 }
 0xa9b   : > { %1749 = vrsqrt.f32 %v1476_v10  ;;  %vm1483_vm7 = vweird.f32 %v1476_v10 }
 0xa9c   : > { %1559 = vmatpush.msrb.mxu0 %v1541_v15 }
 0xa9e   : > { %1560 = vmatpush.msrb.mxu0 %v1540_v17 }
 0xaa0   : > { %1561 = vmatpush.msrb.mxu0 %v1539_v19 }
 0xaa1   : > { %v1750_v14 = vpop.eup %1749 }
 0xaa2   : > { %v1478_v16 = vmul.f32 %v1750_v14, %v1476_v10  ;;  %vm1484_vm6 = vweird.f32 %v1750_v14  ;;  %1562 = vmatpush.msrb.mxu0 %v1538_v28 }
 0xaa3   : > { %vm1485_vm8 = vmor %vm1483_vm7, %vm1484_vm6 }
 0xaa4   : > { %v1479_v18 = vmul.f32 %v1750_v14, %v1478_v16  ;;  %1563 = vmatpush.msrb.mxu0 %v1537_v29 }
 0xaa6   : > { %v1480_v20 = vmul.f32 0.5, %v1479_v18  ;;  %1564 = vmatpush.msrb.mxu0 %v1536_v30 }
 0xaa8   : > { %v1481_v21 = vsub.f32 1.5, %v1480_v20  ;;  %1565 = vmatpush.msrb.mxu0 %v1535_v31 }
 0xaaa   : > { %v1482_v22 = vmul.f32 %v1750_v14, %v1481_v21  ;;  %1566 = vmatpush.msrb.mxu0 %v1534_v32 }
 0xaac   : > { %v1486_v24 = vsel %vm1485_vm8, %v1750_v14, %v1482_v22 }
 0xaad   : > { %v1487_v25 = vmul.f32 %v1486_v24, %v2650_v53 }
 0xaaf   : > { %v1491_v42 = vmul.f32 %v1719_v23, %v1487_v25 }
 0xab1   : > { %v1495_v27 = vadd.f32 %v1720_v26, %v1491_v42 }
 0xab3   : > { %1529 = vmatmul.f32.vlgmr.msra.gmra.mxu3 %v1495_v27 }
 0xb36   : > { %v1530_v34 = vpop.f32.mrf.mxu3 }
 0xb37   : > { %v1531_v35 = vadd.f32 %v1530_v34, %v1512_v33 }
 0xb39   : > { %1751 = vtanh.f32 %v1531_v35 }
 0xb3f   : > { %v1752_v37 = vpop.eup %1751 }
 0xb40   : > { %1567 = vmatmul.f32.vlgmr.msrb.gmra.mxu0 %v1752_v37 }
 0xbbd   : > { %v1568_v40 = vpop.f32.mrf.mxu0 }
 0xbbe   : > { %v1569_v41 = vadd.f32 %v1568_v40, %v1550_v38 }
 0xbc0   : > { %1571 = vst [vmem:[%s576_s30] sm:$0x1] %v1569_v41 }
 0xbc1   : > { %1780 = shalt.err (!%p1777_p3)
}
 0xbc2   : > { %1672 = dma.vmem_to_hbm [thread:$0]  (%p1954_p5), %s1584_s29, 16, %s1586_s2, %s1573_s22  }
 0xbc3 PF: > { %s2841_s20 = sld [smem:[#allocation7_spill]] }
 0xbc4   : > { %s2842_s24 = sld [smem:[#allocation5_spill]] }
 0xbc9   : > { %p1678_p4 = scmp.ge.s32.totalorder %s2841_s20, 2 }
 0xbca   : > { %s1597_s30 = sand.u32 1, %s2842_s24  }
 0xbcb   : > { %p1675_p7 = pnand %p1678_p4, %p1958_p6  ;;  %s1598_s0 = scalar_lea.sflag [#allocation3], %s1597_s30 }
 0xbcd   : > { %p1676_p8 = pneg %p1675_p7 }
 0xbcf   : > { %1798 = dma.done.wait (%p1676_p8), %s1598_s0, 16  }
 0xbd0   : > { %1800 = vsyncadd (%p1676_p8), %s1598_s0, 4294967280  ;;  %s2844_s30 = sld [smem:[#allocation8_spill]]  ;;  %s2847_s27 = smov %s1807_s28 }
 0xbd1   : > { %s2845_s3 = sld [smem:[#allocation6_spill]] }
 0xbd2   : > { %s2846_s29 = sld [smem:[#allocation9_spill]] }
 0xbd6   : > { %p28_p9 = scmp.ge.s32.totalorder %s2844_s30, 4  }
 0xbd7   : > { %s2848_s28 = smov %s2845_s3 }
 0xbd8   :  { %30 = sbr.rel (!%p28_p9) target bundleno = 10 (0xa), region = 130 }
 0xbdd   :  { %1603 = vsyncpa [#allocation3], 1 }
 0xbde   :  { %1605 = vsyncpa [#allocation3 + $0x1], 1 }

// kernel: bert_nspm_forward.2
= control target key start
LH: loop header
LB: loop body
LE: loop exit
PB: predicated region body
PF: predicated region fallthrough
CT: control target
= control target key end

     0   :  { %s5579_s0 = inlined_call_operand.vmem [shape: s32[2,8,1], index: 0, kind: input, shape index: {}]   ;;  %s5580_s1 = inlined_call_operand.vmem [shape: f32[2,8,128], index: 1, kind: input, shape index: {}]   ;;  %s5581_s2 = inlined_call_operand.vmem [shape: f32[2,8,128], index: 2, kind: input, shape index: {}]   ;;  %s5582_s3 = inlined_call_operand.vmem [shape: f32[8,128], index: 3, kind: input, shape index: {}]   ;;  %s5583_s4 = inlined_call_operand.vmem [shape: f32[1,128], index: 4, kind: input, shape index: {}]   ;;  %s5584_s5 = inlined_call_operand.vmem [shape: f32[1,128], index: 5, kind: input, shape index: {}]   ;;  %s5585_s6 = inlined_call_operand.vmem [shape: f32[2,2048,27], index: 6, kind: input, shape index: {}]   ;;  %s5586_s7 = inlined_call_operand.vmem [shape: f32[8,2048], index: 7, kind: input, shape index: {}]   ;;  %s5587_s8 = inlined_call_operand.vmem [shape: f32[27,8], index: 8, kind: input, shape index: {}]   ;;  %s5588_s9 = inlined_call_operand.vmem [shape: f32[1,8], index: 9, kind: input, shape index: {}]   ;;  %s5589_s10 = inlined_call_operand.vmem [shape: f32[8,128], index: 10, kind: input, shape index: {}]   ;;  %s5590_s11 = inlined_call_operand.vmem [shape: f32[1,128], index: 11, kind: input, shape index: {}]   ;;  %s5591_s12 = inlined_call_operand.vmem [shape: f32[2,8,5], index: 12, kind: input, shape index: {}]   ;;  %s5592_s13 = inlined_call_operand.vmem [shape: f32[5,64], index: 13, kind: input, shape index: {}]   ;;  %s5593_s14 = inlined_call_operand.vmem [shape: f32[1,64], index: 14, kind: input, shape index: {}]   ;;  %s5594_s15 = inlined_call_operand.vmem [shape: f32[64,128], index: 15, kind: input, shape index: {}]   ;;  %s5595_s16 = inlined_call_operand.vmem [shape: f32[1,128], index: 16, kind: input, shape index: {}]   ;;  %s5596_s17 = inlined_call_operand.vmem [shape: f32[8,128], index: 17, kind: input, shape index: {}]   ;;  %s5597_s18 = inlined_call_operand.vmem [shape: f32[8,128], index: 18, kind: input, shape index: {}]   ;;  %s5598_s19 = inlined_call_operand.vmem [shape: f32[2,8,128], index: 19, kind: output, shape index: {}]  }
   0x1   :  { %5602 = sst [smem:[#allocation97_spill]] %s5579_s0  ;;  %s3913_s0 = smov 0  }
   0x2   :  { %5603 = sst [smem:[#allocation98_spill]] %s5580_s1 }
   0x3   :  { %5604 = sst [smem:[#allocation99_spill]] %s5581_s2 }
   0x4   :  { %5605 = sst [smem:[#allocation100_spill]] %s5582_s3 }
   0x5 LB: > { %s3466_s30 = sadd.s32 4294967295, %s3807_s0   ;;  %p3470_p0 = scmp.ge.s32.totalorder %s3807_s0, 1  ;;  %s3807_s0 = sphi %s3913_s0, %s29_s0  }
   0x6   : > { %p573_p1 = scmp.lt.s32.totalorder %s3807_s0, 3 }
   0x8   : > { %p574_p2 = pnand %p3470_p0, %p573_p1 }
   0xa   : > { %577 = sbr.rel (%p574_p2) target bundleno = 1766 (0x6e6), region = 96 }
   0xf   : > { %v983_v0 = vld [vmem:[%s5587_s8 + $0x18] sm:$0x7]  ;;  %vm1757_vm0 = vcmask 1042432   ;;  %v982_v1 = vld [vmem:[%s5587_s8 + $0x10] sm:$0xff]  ;;  %p644_p3 = scmp.lt.s32.totalorder %s3466_s30, 1  ;;  %v981_v2 = vld [vmem:[%s5587_s8 + $0x8] sm:$0xff] }
  0x10   : > { %3479 = vmatpush.msk.msra.mxu0 %vm1757_vm0, %v983_v0  ;;  %3744 = vmatpush.msk.msra.mxu2 %vm1757_vm0, %v983_v0  ;;  %v980_v3 = vld [vmem:[%s5587_s8] sm:$0xff]  ;;  %vm988_vm1 = vcmask 220160   ;;  %s5606_s1 = sld [smem:[#allocation98_spill]]  ;;  %vm3177_vm10 = vcmask 1044480   ;;  %vm3173_vm11 = vcmask 39936   ;;  %vm3143_vm12 = vcmask 64512  }
  0x11   : > { %s5801_s30 = smov (!%p644_p3, %s3466_s30), 1  ;;  %3743 = vmatpush.msk.msra.mxu1 %vm1757_vm0, %v983_v0  ;;  %3745 = vmatpush.msk.msra.mxu3 %vm1757_vm0, %v983_v0  ;;  %s5607_s24 = sld [smem:[#allocation99_spill]]  ;;  %vm3214_vm13 = vcmask 523264  }
  0x12   : > { %1774 = vmatpush.msra.mxu0 %v982_v1  ;;  %3747 = vmatpush.msra.mxu2 %v982_v1  ;;  %s3742_s3 = sshll.u32 %s5801_s30, 11  ;;  %s3989_s29 = sshll.u32 %s5801_s30, 3 }
  0x13   : > { %3746 = vmatpush.msra.mxu1 %v982_v1  ;;  %3748 = vmatpush.msra.mxu3 %v982_v1  ;;  %s3939_s28 = scalar_lea.vmem %s5585_s6, %s3742_s3  ;;  %s5608_s26 = sld [smem:[#allocation100_spill]] }
  0x14   : > { %1775 = vmatpush.msra.mxu0 %v981_v2  ;;  %3750 = vmatpush.msra.mxu2 %v981_v2  ;;  %v724_v4 = vld [vmem:[%s3939_s28] sm:$0xff]  ;;  %v725_v5 = vld [vmem:[%s3939_s28 + $0x8] sm:$0xff]  ;;  %v726_v6 = vld [vmem:[%s3939_s28 + $0x10] sm:$0xff]  ;;  %s664_s3 = scalar_lea.vmem %s5591_s12, %s3989_s29  ;;  %s668_s30 = scalar_lea.vmem %s5598_s19, %s3989_s29 }
  0x15   : > { %3749 = vmatpush.msra.mxu1 %v981_v2  ;;  %3751 = vmatpush.msra.mxu3 %v981_v2  ;;  %v727_v7 = vld [vmem:[%s3939_s28 + $0x18] sm:$0xff]  ;;  %v728_v8 = vld [vmem:[%s3939_s28 + $0x20] sm:$0xff]  ;;  %v729_v9 = vld [vmem:[%s3939_s28 + $0x28] sm:$0xff] }
  0x16   : > { %1776 = vmatpush.msra.mxu0 %v980_v3  ;;  %3753 = vmatpush.msra.mxu2 %v980_v3  ;;  %v730_v10 = vld [vmem:[%s3939_s28 + $0x30] sm:$0xff]  ;;  %v731_v11 = vld [vmem:[%s3939_s28 + $0x38] sm:$0xff]  ;;  %v732_v12 = vld [vmem:[%s3939_s28 + $0x40] sm:$0xff]  ;;  %s651_s22 = scalar_lea.vmem %s5606_s1, %s3989_s29 }
  0x17   : > { %3480 = vmatmul.msk.f32.vlgmr.msra.gmra.mxu0 %vm988_vm1, %v724_v4  ;;  %3752 = vmatpush.msra.mxu1 %v980_v3  ;;  %v733_v13 = vld [vmem:[%s3939_s28 + $0x48] sm:$0xff]  ;;  %v734_v14 = vld [vmem:[%s3939_s28 + $0x50] sm:$0xff]  ;;  %v735_v15 = vld [vmem:[%s3939_s28 + $0x58] sm:$0xff]  ;;  %s655_s25 = scalar_lea.vmem %s5607_s24, %s3989_s29 }
  0x18   : > { %3754 = vmatpush.msra.mxu3 %v980_v3  ;;  %v736_v16 = vld [vmem:[%s3939_s28 + $0x60] sm:$0xff]  ;;  %v737_v17 = vld [vmem:[%s3939_s28 + $0x68] sm:$0xff]  ;;  %v918_v18 = vld [vmem:[%s3939_s28 + $0x610] sm:$0xff] }
  0x19   : > { %3674 = vmatmul.msk.f32.vlgmr.msra.gmra.mxu3 %vm988_vm1, %v918_v18  ;;  %v738_v19 = vld [vmem:[%s3939_s28 + $0x70] sm:$0xff]  ;;  %v919_v20 = vld [vmem:[%s3939_s28 + $0x618] sm:$0xff]  ;;  %v920_v22 = vld [vmem:[%s3939_s28 + $0x620] sm:$0xff] }
  0x1a   : > { %v739_v21 = vld [vmem:[%s3939_s28 + $0x78] sm:$0xff]  ;;  %v740_v25 = vld [vmem:[%s3939_s28 + $0x80] sm:$0xff]  ;;  %v921_v26 = vld [vmem:[%s3939_s28 + $0x628] sm:$0xff] }
  0x1b   : > { %v859_v23 = vld [vmem:[%s3939_s28 + $0x438] sm:$0xff]  ;;  %v860_v27 = vld [vmem:[%s3939_s28 + $0x440] sm:$0xff]  ;;  %v741_v29 = vld [vmem:[%s3939_s28 + $0x88] sm:$0xff] }
  0x1c   : > { %3615 = vmatmul.msk.f32.vlgmr.msra.gmra.mxu2 %vm988_vm1, %v859_v23  ;;  %v922_v30 = vld [vmem:[%s3939_s28 + $0x630] sm:$0xff]  ;;  %v669_v31 = vld [vmem:[%s651_s22] sm:$0xff]  ;;  %v861_v34 = vld [vmem:[%s3939_s28 + $0x448] sm:$0xff]  ;;  %s5620_s22 = sld [smem:[#allocation97_spill]] }
  0x1d   : > { %v670_v32 = vld [vmem:[%s655_s25] sm:$0xff]  ;;  %v742_v38 = vld [vmem:[%s3939_s28 + $0x90] sm:$0xff]  ;;  %v923_v39 = vld [vmem:[%s3939_s28 + $0x638] sm:$0xff] }
  0x1e   : > { %v671_v33 = vadd.f32 %v670_v32, %v669_v31  ;;  %v672_v35 = vld [vmem:[%s5608_s26] sm:$0xff]  ;;  %v862_v40 = vld [vmem:[%s3939_s28 + $0x450] sm:$0xff]  ;;  %v743_v42 = vld [vmem:[%s3939_s28 + $0x98] sm:$0xff] }
  0x1f   : > { %3481 = vmatmul.msk.f32.gmra.mxu0 %vm988_vm1, %v725_v5  ;;  %v924_v43 = vld [vmem:[%s3939_s28 + $0x640] sm:$0xff]  ;;  %v863_v44 = vld [vmem:[%s3939_s28 + $0x458] sm:$0xff]  ;;  %v925_v47 = vld [vmem:[%s3939_s28 + $0x648] sm:$0xff] }
  0x20   : > { %v4011_v36 = vadd.f32 %v672_v35, %v671_v33  ;;  %v744_v46 = vld [vmem:[%s3939_s28 + $0xa0] sm:$0xff]  ;;  %v745_v50 = vld [vmem:[%s3939_s28 + $0xa8] sm:$0xff]  ;;  %v926_v51 = vld [vmem:[%s3939_s28 + $0x650] sm:$0xff] }
  0x21   : > { %3675 = vmatmul.msk.f32.gmra.mxu3 %vm988_vm1, %v919_v20  ;;  %v864_v48 = vld [vmem:[%s3939_s28 + $0x460] sm:$0xff]  ;;  %v865_v52 = vld [vmem:[%s3939_s28 + $0x468] sm:$0xff]  ;;  %v746_v54 = vld [vmem:[%s3939_s28 + $0xb0] sm:$0xff] }
  0x22   : > { %674 = vadd.xlane.f32.xlu0 %v4011_v36  ;;  %v927_v55 = vld [vmem:[%s3939_s28 + $0x658] sm:$0xff]  ;;  %v866_v56 = vld [vmem:[%s3939_s28 + $0x470] sm:$0xff]  ;;  %v928_v59 = vld [vmem:[%s3939_s28 + $0x660] sm:$0xff]  ;;  %s647_s2 = scalar_lea.vmem %s5620_s22, %s3989_s29 }
  0x23   : > { %v747_v58 = vld [vmem:[%s3939_s28 + $0xb8] sm:$0xff]  ;;  %v748_v62 = vld [vmem:[%s3939_s28 + $0xc0] sm:$0xff]  ;;  %v929_v63 = vld [vmem:[%s3939_s28 + $0x668] sm:$0xff] }
  0x24   : > { %3616 = vmatmul.msk.f32.gmra.mxu2 %vm988_vm1, %v860_v27  ;;  %v867_v60 = vld [vmem:[%s3939_s28 + $0x478] sm:$0xff]  ;;  %v868_v0 = vld [vmem:[%s3939_s28 + $0x480] sm:$0xff]  ;;  %v749_v2 = vld [vmem:[%s3939_s28 + $0xc8] sm:$0xff] }
  0x25   : > { %v930_v3 = vld [vmem:[%s3939_s28 + $0x670] sm:$0xff]  ;;  %v805_v4 = vld [vmem:[%s3939_s28 + $0x288] sm:$0xff]  ;;  %v872_v20 = vld [vmem:[%s3939_s28 + $0x4a0] sm:$0xff] }
  0x26   : > { %3561 = vmatmul.msk.f32.vlgmr.msra.gmra.mxu1 %vm988_vm1, %v805_v4  ;;  %v869_v5 = vld [vmem:[%s3939_s28 + $0x488] sm:$0xff]  ;;  %v934_v23 = vld [vmem:[%s3939_s28 + $0x690] sm:$0xff]  ;;  %v935_v31 = vld [vmem:[%s3939_s28 + $0x698] sm:$0xff] }
  0x27   : > { %3482 = vmatmul.msk.f32.gmra.mxu0 %vm988_vm1, %v726_v6  ;;  %v933_v18 = vld [vmem:[%s3939_s28 + $0x688] sm:$0xff]  ;;  %v810_v32 = vld [vmem:[%s3939_s28 + $0x2b0] sm:$0xff] }
  0x28   : > { %v873_v27 = vld [vmem:[%s3939_s28 + $0x4a8] sm:$0xff]  ;;  %v874_v35 = vld [vmem:[%s3939_s28 + $0x4b0] sm:$0xff] }
  0x29   : > { %3676 = vmatmul.msk.f32.gmra.mxu3 %vm988_vm1, %v920_v22  ;;  %v753_v22 = vld [vmem:[%s3939_s28 + $0xe8] sm:$0xff] }
  0x2c   : > { %3617 = vmatmul.msk.f32.gmra.mxu2 %vm988_vm1, %v861_v34  ;;  %v3809_v34 = vmov 128.0  }
  0x2d   : > { %3787 = vrcp.f32 %v3809_v34 }
  0x2f   : > { %3483 = vmatmul.msk.f32.gmra.mxu0 %vm988_vm1, %v727_v7  ;;  %v750_v7 = vld [vmem:[%s3939_s28 + $0xd0] sm:$0xff] }
  0x31   : > { %3677 = vmatmul.msk.f32.gmra.mxu3 %vm988_vm1, %v921_v26 }
  0x34   : > { %3618 = vmatmul.msk.f32.gmra.mxu2 %vm988_vm1, %v862_v40  ;;  %v755_v40 = vld [vmem:[%s3939_s28 + $0xf8] sm:$0xff] }
  0x37   : > { %3484 = vmatmul.msk.f32.gmra.mxu0 %vm988_vm1, %v728_v8  ;;  %v931_v8 = vld [vmem:[%s3939_s28 + $0x678] sm:$0xff] }
  0x39   : > { %3678 = vmatmul.msk.f32.gmra.mxu3 %vm988_vm1, %v922_v30  ;;  %v754_v30 = vld [vmem:[%s3939_s28 + $0xf0] sm:$0xff] }
  0x3c   : > { %3619 = vmatmul.msk.f32.gmra.mxu2 %vm988_vm1, %v863_v44 }
  0x3f   : > { %3485 = vmatmul.msk.f32.gmra.mxu0 %vm988_vm1, %v729_v9  ;;  %v806_v9 = vld [vmem:[%s3939_s28 + $0x290] sm:$0xff] }
  0x40   : > { %3562 = vmatmul.msk.f32.gmra.mxu1 %vm988_vm1, %v806_v9 }
  0x41   : > { %3679 = vmatmul.msk.f32.gmra.mxu3 %vm988_vm1, %v923_v39 }
  0x44   : > { %3620 = vmatmul.msk.f32.gmra.mxu2 %vm988_vm1, %v864_v48 }
  0x47   : > { %3486 = vmatmul.msk.f32.gmra.mxu0 %vm988_vm1, %v730_v10  ;;  %v870_v10 = vld [vmem:[%s3939_s28 + $0x490] sm:$0xff] }
  0x49   : > { %3680 = vmatmul.msk.f32.gmra.mxu3 %vm988_vm1, %v924_v43 }
  0x4c   : > { %3621 = vmatmul.msk.f32.gmra.mxu2 %vm988_vm1, %v865_v52 }
  0x4f   : > { %3487 = vmatmul.msk.f32.gmra.mxu0 %vm988_vm1, %v731_v11 }
  0x51   : > { %3681 = vmatmul.msk.f32.gmra.mxu3 %vm988_vm1, %v925_v47 }
  0x54   : > { %3622 = vmatmul.msk.f32.gmra.mxu2 %vm988_vm1, %v866_v56  ;;  %v875_v56 = vld [vmem:[%s3939_s28 + $0x4b8] sm:$0xff] }
  0x57   : > { %3488 = vmatmul.msk.f32.gmra.mxu0 %vm988_vm1, %v732_v12  ;;  %v751_v12 = vld [vmem:[%s3939_s28 + $0xd8] sm:$0xff] }
  0x59   : > { %3682 = vmatmul.msk.f32.gmra.mxu3 %vm988_vm1, %v926_v51 }
  0x5c   : > { %3623 = vmatmul.msk.f32.gmra.mxu2 %vm988_vm1, %v867_v60 }
  0x5f   : > { %3489 = vmatmul.msk.f32.gmra.mxu0 %vm988_vm1, %v733_v13  ;;  %v932_v13 = vld [vmem:[%s3939_s28 + $0x680] sm:$0xff] }
  0x61   : > { %3683 = vmatmul.msk.f32.gmra.mxu3 %vm988_vm1, %v927_v55 }
  0x64   : > { %3624 = vmatmul.msk.f32.gmra.mxu2 %vm988_vm1, %v868_v0  ;;  %v756_v0 = vld [vmem:[%s3939_s28 + $0x100] sm:$0xff] }
  0x67   : > { %3490 = vmatmul.msk.f32.gmra.mxu0 %vm988_vm1, %v734_v14  ;;  %v807_v14 = vld [vmem:[%s3939_s28 + $0x298] sm:$0xff] }
  0x68   : > { %3563 = vmatmul.msk.f32.gmra.mxu1 %vm988_vm1, %v807_v14 }
  0x69   : > { %3684 = vmatmul.msk.f32.gmra.mxu3 %vm988_vm1, %v928_v59 }
  0x6c   : > { %3625 = vmatmul.msk.f32.gmra.mxu2 %vm988_vm1, %v869_v5 }
  0x6f   : > { %3491 = vmatmul.msk.f32.gmra.mxu0 %vm988_vm1, %v735_v15  ;;  %v871_v15 = vld [vmem:[%s3939_s28 + $0x498] sm:$0xff] }
  0x71   : > { %3685 = vmatmul.msk.f32.gmra.mxu3 %vm988_vm1, %v929_v63 }
  0x74   : > { %3626 = vmatmul.msk.f32.gmra.mxu2 %vm988_vm1, %v870_v10  ;;  %v812_v10 = vld [vmem:[%s3939_s28 + $0x2c0] sm:$0xff] }
  0x77   : > { %3492 = vmatmul.msk.f32.gmra.mxu0 %vm988_vm1, %v736_v16 }
  0x79   : > { %3686 = vmatmul.msk.f32.gmra.mxu3 %vm988_vm1, %v930_v3 }
  0x7c   : > { %3627 = vmatmul.msk.f32.gmra.mxu2 %vm988_vm1, %v871_v15  ;;  %v876_v15 = vld [vmem:[%s3939_s28 + $0x4c0] sm:$0xff] }
  0x7f   : > { %3493 = vmatmul.msk.f32.gmra.mxu0 %vm988_vm1, %v737_v17  ;;  %v752_v17 = vld [vmem:[%s3939_s28 + $0xe0] sm:$0xff] }
  0x81   : > { %3687 = vmatmul.msk.f32.gmra.mxu3 %vm988_vm1, %v931_v8 }
  0x84   : > { %3628 = vmatmul.msk.f32.gmra.mxu2 %vm988_vm1, %v872_v20  ;;  %v757_v20 = vld [vmem:[%s3939_s28 + $0x108] sm:$0xff] }
  0x87   : > { %3494 = vmatmul.msk.f32.gmra.mxu0 %vm988_vm1, %v738_v19  ;;  %v808_v19 = vld [vmem:[%s3939_s28 + $0x2a0] sm:$0xff] }
  0x88   : > { %3564 = vmatmul.msk.f32.gmra.mxu1 %vm988_vm1, %v808_v19 }
  0x89   : > { %3688 = vmatmul.msk.f32.gmra.mxu3 %vm988_vm1, %v932_v13 }
  0x8c   : > { %3629 = vmatmul.msk.f32.gmra.mxu2 %vm988_vm1, %v873_v27  ;;  %v813_v27 = vld [vmem:[%s3939_s28 + $0x2c8] sm:$0xff] }
  0x8f   : > { %3495 = vmatmul.msk.f32.gmra.mxu0 %vm988_vm1, %v739_v21 }
  0x91   : > { %3689 = vmatmul.msk.f32.gmra.mxu3 %vm988_vm1, %v933_v18 }
  0x94   : > { %v3981_v24 = vpop.f32.mrf.mxu0  ;;  %3630 = vmatmul.msk.f32.gmra.mxu2 %vm988_vm1, %v874_v35  ;;  %v758_v35 = vld [vmem:[%s3939_s28 + $0x110] sm:$0xff] }
  0x97   : > { %3496 = vmatmul.msk.f32.gmra.mxu0 %vm988_vm1, %v740_v25  ;;  %v809_v25 = vld [vmem:[%s3939_s28 + $0x2a8] sm:$0xff] }
  0x98   : > { %3565 = vmatmul.msk.f32.gmra.mxu1 %vm988_vm1, %v809_v25 }
  0x99   : > { %3690 = vmatmul.msk.f32.gmra.mxu3 %vm988_vm1, %v934_v23 }
  0x9c   : > { %v3992_v28 = vpop.f32.mrf.mxu0  ;;  %v4112_v26 = vpop.f32.mrf.mxu3  ;;  %3631 = vmatmul.msk.f32.gmra.mxu2 %vm988_vm1, %v875_v56 }
  0x9d   : > { %5609 = vst [vmem:[#allocation2_spill] sm:$0xff] %v4112_v26 }
  0x9f   : > { %3497 = vmatmul.msk.f32.gmra.mxu0 %vm988_vm1, %v741_v29  ;;  %v4152_v5 = vpop.f32.mrf.mxu2 }
  0xa0   : > { %3566 = vmatmul.msk.f32.gmra.mxu1 %vm988_vm1, %v810_v32  ;;  %5612 = vst [vmem:[#allocation5_spill] sm:$0xff] %v4152_v5  ;;  %v891_v5 = vld [vmem:[%s3939_s28 + $0x538] sm:$0xff] }
  0xa1   : > { %3691 = vmatmul.msk.f32.gmra.mxu3 %vm988_vm1, %v935_v31  ;;  %v877_v31 = vld [vmem:[%s3939_s28 + $0x4c8] sm:$0xff] }
  0xa4   : > { %v4013_v37 = vpop.f32.mrf.mxu0  ;;  %v4122_v33 = vpop.f32.mrf.mxu3  ;;  %3632 = vmatmul.msk.f32.gmra.mxu2 %vm988_vm1, %v876_v15  ;;  %v942_v15 = vld [vmem:[%s3939_s28 + $0x6d0] sm:$0xff] }
  0xa5   : > { %5610 = vst [vmem:[#allocation3_spill] sm:$0xff] %v4122_v33  ;;  %v963_v33 = vld [vmem:[%s3939_s28 + $0x778] sm:$0xff] }
  0xa7   : > { %3498 = vmatmul.msk.f32.gmra.mxu0 %vm988_vm1, %v742_v38  ;;  %v4129_v38 = vld [vmem:[%s5588_s9] ss:$0 sm:$0xff]  ;;  %v4182_v23 = vpop.f32.mrf.mxu2 }
  0xa8   : > { %5614 = vst [vmem:[#allocation7_spill] sm:$0xff] %v4182_v23 }
  0xac   : > { %v4022_v41 = vpop.f32.mrf.mxu0  ;;  %v4140_v52 = vpop.f32.mrf.mxu3  ;;  %3633 = vmatmul.msk.f32.gmra.mxu2 %vm988_vm1, %v877_v31  ;;  %v763_v31 = vld [vmem:[%s3939_s28 + $0x138] sm:$0xff] }
  0xad   : > { %5611 = vst [vmem:[#allocation4_spill] sm:$0xff] %v4140_v52 }
  0xaf   : > { %3499 = vmatmul.msk.f32.gmra.mxu0 %vm988_vm1, %v743_v42  ;;  %v936_v42 = vld [vmem:[%s3939_s28 + $0x6a0] sm:$0xff] }
  0xb0   : > { %3692 = vmatmul.msk.f32.gmra.mxu3 %vm988_vm1, %v936_v42  ;;  %v4204_v42 = vpop.f32.mrf.mxu2 }
  0xb1   : > { %5616 = vst [vmem:[#allocation9_spill] sm:$0xff] %v4204_v42 }
  0xb4   : > { %v4030_v45 = vpop.f32.mrf.mxu0 }
  0xb7   : > { %3500 = vmatmul.msk.f32.gmra.mxu0 %vm988_vm1, %v744_v46  ;;  %v3788_v46 = vpop.eup %3787 }
  0xb8   : > { %v677_v51 = vmul.f32 128.0, %v3788_v46  ;;  %vm681_vm2 = vweird.f32 %v3788_v46  ;;  %v4222_v56 = vpop.f32.mrf.mxu2 }
  0xb9   : > { %5618 = vst [vmem:[#allocation11_spill] sm:$0xff] %v4222_v56 }
  0xbc   : > { %v4038_v49 = vpop.f32.mrf.mxu0 }
  0xbf   : > { %3501 = vmatmul.msk.f32.gmra.mxu0 %vm988_vm1, %v745_v50  ;;  %v811_v50 = vld [vmem:[%s3939_s28 + $0x2b8] sm:$0xff] }
  0xc0   : > { %3567 = vmatmul.msk.f32.gmra.mxu1 %vm988_vm1, %v811_v50 }
  0xc4   : > { %v4046_v53 = vpop.f32.mrf.mxu0 }
  0xc7   : > { %3502 = vmatmul.msk.f32.gmra.mxu0 %vm988_vm1, %v746_v54 }
  0xc8   : > { %3568 = vmatmul.msk.f32.gmra.mxu1 %vm988_vm1, %v812_v10  ;;  %v880_v10 = vld [vmem:[%s3939_s28 + $0x4e0] sm:$0xff] }
  0xcc   : > { %v4054_v57 = vpop.f32.mrf.mxu0 }
  0xcf   : > { %3503 = vmatmul.msk.f32.gmra.mxu0 %vm988_vm1, %v747_v58  ;;  %v678_v58 = vsub.f32 1.0, %v677_v51  ;;  %v759_v51 = vld [vmem:[%s3939_s28 + $0x118] sm:$0xff] }
  0xd0   : > { %3569 = vmatmul.msk.f32.gmra.mxu1 %vm988_vm1, %v813_v27 }
  0xd4   : > { %v4062_v61 = vpop.f32.mrf.mxu0 }
  0xd5   : > { %v1803_v14 = vadd.f32 %v4129_v38, %v4062_v61 }
  0xd7   : > { %3504 = vmatmul.msk.f32.gmra.mxu0 %vm988_vm1, %v748_v62  ;;  %v679_v62 = vmul.f32 %v3788_v46, %v678_v58 }
  0xdc   : > { %v4070_v1 = vpop.f32.mrf.mxu0 }
  0xdd   : > { %v1806_v8 = vadd.f32 %v4129_v38, %v4070_v1 }
  0xdf   : > { %3505 = vmatmul.msk.f32.gmra.mxu0 %vm988_vm1, %v749_v2  ;;  %v937_v2 = vld [vmem:[%s3939_s28 + $0x6a8] sm:$0xff]  ;;  %v2555_v18 = vmax.f32 %v1806_v8, 0.0  ;;  %v3810_v8 = vmov 0.0  }
  0xe0   : > { %3693 = vmatmul.msk.f32.gmra.mxu3 %vm988_vm1, %v937_v2  ;;  %v4240_v2 = vpop.f32.mrf.mxu2 }
  0xe1   : > { %5621 = vst [vmem:[#allocation13_spill] sm:$0xff] %v4240_v2  ;;  %v780_v2 = vld [vmem:[%s3939_s28 + $0x1c0] sm:$0xff] }
  0xe4   : > { %v4080_v6 = vpop.f32.mrf.mxu0 }
  0xe5   : > { %v1809_v3 = vadd.f32 %v4129_v38, %v4080_v6  ;;  %v675_v6 = vpop.xlane.xlu0 %674 }
  0xe7   : > { %3506 = vmatmul.msk.f32.gmra.mxu0 %vm988_vm1, %v750_v7  ;;  %v680_v7 = vadd.f32 %v3788_v46, %v679_v62  ;;  %v2556_v1 = vmax.f32 %v1809_v3, 0.0  ;;  %v760_v62 = vld [vmem:[%s3939_s28 + $0x120] sm:$0xff] }
  0xe8   : > { %v711_v3 = vld [vmem:[%s647_s2] sm:$0xff] }
  0xe9   : > { %vm712_vm3 = vcmp.eq.s32.totalorder %v711_v3, 1014  ;;  %vm713_vm4 = vcmp.eq.s32.totalorder %v711_v3, 1015 }
  0xea   : > { %vm714_vm5 = vmor %vm712_vm3, %vm713_vm4 }
  0xec   : > { %v1811_v11 = vpop.f32.mrf.mxu0 }
  0xed   : > { %v1812_v59 = vadd.f32 %v4129_v38, %v1811_v11  ;;  %v4159_v11 = vsel %vm681_vm2, %v3788_v46, %v680_v7 }
  0xee   : > { %v683_v13 = vmul.f32 %v4159_v11, %v675_v6 }
  0xef   : > { %3507 = vmatmul.msk.f32.gmra.mxu0 %vm988_vm1, %v751_v12  ;;  %v2557_v9 = vmax.f32 %v1812_v59, 0.0  ;;  %v4162_v12 = vpop.f32.mrf.mxu3  ;;  %v879_v59 = vld [vmem:[%s3939_s28 + $0x4d8] sm:$0xff] }
  0xf0   : > { %5613 = vst [vmem:[#allocation6_spill] sm:$0xff] %v4162_v12  ;;  %v964_v12 = vld [vmem:[%s3939_s28 + $0x780] sm:$0xff] }
  0xf4   : > { %v1814_v16 = vpop.f32.mrf.mxu0 }
  0xf5   : > { %v1815_v54 = vadd.f32 %v4129_v38, %v1814_v16  ;;  %v4170_v16 = vsub.f32 %v4011_v36, %v683_v13  ;;  %v2554_v36 = vmax.f32 %v1803_v14, 0.0  ;;  %v3811_v13 = vmov 0  }
  0xf6   : > { %3779 = vset.pattern.permute.xlu1 %v3811_v13  ;;  %3780 = vset.pattern.permute.xlu0 %v3811_v13 }
  0xf7   : > { %3508 = vmatmul.msk.f32.gmra.mxu0 %vm988_vm1, %v752_v17  ;;  %v2558_v4 = vmax.f32 %v1815_v54, 0.0  ;;  %v1800_v17 = vadd.f32 %v4129_v38, %v4054_v57  ;;  %v685_v61 = vmul.f32 %v4170_v16, %v4170_v16  ;;  %v1794_v57 = vadd.f32 %v4129_v38, %v4038_v49  ;;  %v940_v54 = vld [vmem:[%s3939_s28 + $0x6c0] sm:$0xff] }
  0xf8   : > { %v1788_v49 = vadd.f32 %v4129_v38, %v4022_v41  ;;  %v1782_v41 = vadd.f32 %v4129_v38, %v3992_v28 }
  0xf9   : > { %686 = vadd.xlane.f32.xlu0 %v685_v61  ;;  %v2553_v25 = vmax.f32 %v1800_v17, 0.0  ;;  %v2551_v32 = vmax.f32 %v1794_v57, 0.0  ;;  %v4254_v17 = vpop.f32.mrf.mxu2 }
  0xfa   : > { %v2547_v28 = vmax.f32 %v1782_v41, 0.0  ;;  %5623 = vst [vmem:[#allocation15_spill] sm:$0xff] %v4254_v17  ;;  %v764_v41 = vld [vmem:[%s3939_s28 + $0x140] sm:$0xff]  ;;  %v961_v17 = vld [vmem:[%s3939_s28 + $0x768] sm:$0xff] }
  0xfc   : > { %v1817_v21 = vpop.f32.mrf.mxu0 }
  0xfd   : > { %v1818_v47 = vadd.f32 %v4129_v38, %v1817_v21  ;;  %v938_v21 = vld [vmem:[%s3939_s28 + $0x6b0] sm:$0xff] }
  0xfe   : > { %3694 = vmatmul.msk.f32.gmra.mxu3 %vm988_vm1, %v938_v21  ;;  %v881_v21 = vld [vmem:[%s3939_s28 + $0x4e8] sm:$0xff] }
  0xff   : > { %3509 = vmatmul.msk.f32.gmra.mxu0 %vm988_vm1, %v753_v22  ;;  %v2559_v60 = vmax.f32 %v1818_v47, 0.0  ;;  %v1797_v22 = vadd.f32 %v4129_v38, %v4046_v53  ;;  %v4190_v53 = vpop.f32.mrf.mxu3 }
 0x100   : > { %5615 = vst [vmem:[#allocation8_spill] sm:$0xff] %v4190_v53 }
 0x101   : > { %v4268_v57 = vpop.f32.mrf.mxu2 }
 0x102   : > { %5625 = vst [vmem:[#allocation17_spill] sm:$0xff] %v4268_v57 }
 0x104   : > { %v1820_v29 = vpop.f32.mrf.mxu0 }
 0x105   : > { %v1821_v43 = vadd.f32 %v4129_v38, %v1820_v29  ;;  %v1791_v29 = vadd.f32 %v4129_v38, %v4030_v45 }
 0x107   : > { %3510 = vmatmul.msk.f32.gmra.mxu0 %vm988_vm1, %v754_v30  ;;  %v2560_v55 = vmax.f32 %v1821_v43, 0.0  ;;  %v2552_v30 = vmax.f32 %v1797_v22, 0.0  ;;  %v2550_v45 = vmax.f32 %v1791_v29, 0.0  ;;  %v2549_v43 = vmax.f32 %v1788_v49, 0.0  ;;  %v4212_v46 = vpop.f32.mrf.mxu3  ;;  %v762_v22 = vld [vmem:[%s3939_s28 + $0x130] sm:$0xff]  ;;  %v944_v49 = vld [vmem:[%s3939_s28 + $0x6e0] sm:$0xff] }
 0x108   : > { %5617 = vst [vmem:[#allocation10_spill] sm:$0xff] %v4212_v46  ;;  %v882_v29 = vld [vmem:[%s3939_s28 + $0x4f0] sm:$0xff]  ;;  %v965_v46 = vld [vmem:[%s3939_s28 + $0x788] sm:$0xff] }
 0x10c   : > { %v1823_v39 = vpop.f32.mrf.mxu0 }
 0x10d   : > { %v1824_v44 = vadd.f32 %v4129_v38, %v1823_v39  ;;  %v939_v39 = vld [vmem:[%s3939_s28 + $0x6b8] sm:$0xff] }
 0x10e   : > { %3695 = vmatmul.msk.f32.gmra.mxu3 %vm988_vm1, %v939_v39 }
 0x10f   : > { %3511 = vmatmul.msk.f32.gmra.mxu0 %vm988_vm1, %v755_v40  ;;  %v2561_v48 = vmax.f32 %v1824_v44, 0.0  ;;  %v1785_v40 = vadd.f32 %v4129_v38, %v4013_v37  ;;  %v814_v44 = vld [vmem:[%s3939_s28 + $0x2d0] sm:$0xff]  ;;  %v1779_v37 = vadd.f32 %v4129_v38, %v3981_v24  ;;  %v815_v24 = vld [vmem:[%s3939_s28 + $0x2d8] sm:$0xff]  ;;  %v4228_v58 = vpop.f32.mrf.mxu3 }
 0x110   : > { %3570 = vmatmul.msk.f32.gmra.mxu1 %vm988_vm1, %v814_v44  ;;  %5619 = vst [vmem:[#allocation12_spill] sm:$0xff] %v4228_v58 }
 0x111   : > { %2818 = vmatpush.msrb.mxu1 %v2561_v48  ;;  %v2548_v47 = vmax.f32 %v1785_v40, 0.0  ;;  %v878_v48 = vld [vmem:[%s3939_s28 + $0x4d0] sm:$0xff]  ;;  %v883_v40 = vld [vmem:[%s3939_s28 + $0x4f8] sm:$0xff] }
 0x112   : > { %3634 = vmatmul.msk.f32.gmra.mxu2 %vm988_vm1, %v878_v48  ;;  %v884_v48 = vld [vmem:[%s3939_s28 + $0x500] sm:$0xff] }
 0x113   : > { %2819 = vmatpush.msrb.mxu1 %v2560_v55  ;;  %v2546_v55 = vmax.f32 %v1779_v37, 0.0  ;;  %v820_v37 = vld [vmem:[%s3939_s28 + $0x300] sm:$0xff] }
 0x114   : > { %v4146_v63 = vpop.f32.mrf.mxu0 }
 0x115   : > { %2820 = vmatpush.msrb.mxu1 %v2559_v60 }
 0x116   : > { %3696 = vmatmul.msk.f32.gmra.mxu3 %vm988_vm1, %v940_v54  ;;  %v946_v54 = vld [vmem:[%s3939_s28 + $0x6f0] sm:$0xff] }
 0x117   : > { %3512 = vmatmul.msk.f32.gmra.mxu0 %vm988_vm1, %v756_v0  ;;  %2821 = vmatpush.msrb.mxu1 %v2558_v4  ;;  %v941_v0 = vld [vmem:[%s3939_s28 + $0x6c8] sm:$0xff]  ;;  %v816_v4 = vld [vmem:[%s3939_s28 + $0x2e0] sm:$0xff]  ;;  %v4246_v7 = vpop.f32.mrf.mxu3 }
 0x118   : > { %3571 = vmatmul.msk.f32.gmra.mxu1 %vm988_vm1, %v815_v24  ;;  %5622 = vst [vmem:[#allocation14_spill] sm:$0xff] %v4246_v7  ;;  %v4314_v24 = vpop.f32.mrf.mxu1  ;;  %v966_v7 = vld [vmem:[%s3939_s28 + $0x790] sm:$0xff] }
 0x119   : > { %2822 = vmatpush.msrb.mxu1 %v2557_v9  ;;  %v3478_v9 = vsel %vm714_vm5, 1.0, %v3810_v8  ;;  %v947_v8 = vld [vmem:[%s3939_s28 + $0x6f8] sm:$0xff] }
 0x11a   : > { %3635 = vmatmul.msk.f32.gmra.mxu2 %vm988_vm1, %v879_v59  ;;  %v717_v6 = vsub.f32 1.0, %v3478_v9  ;;  %v821_v59 = vld [vmem:[%s3939_s28 + $0x308] sm:$0xff] }
 0x11b   : > { %2823 = vmatpush.msrb.mxu1 %v2556_v1  ;;  %v761_v1 = vld [vmem:[%s3939_s28 + $0x128] sm:$0xff] }
 0x11c   : > { %v4174_v19 = vpop.f32.mrf.mxu0  ;;  %720 = vperm.xlu1 %3779, %v717_v6   ;;  %v822_v6 = vld [vmem:[%s3939_s28 + $0x310] sm:$0xff] }
 0x11d   : > { %2824 = vmatpush.msrb.mxu1 %v2555_v18  ;;  %v817_v18 = vld [vmem:[%s3939_s28 + $0x2e8] sm:$0xff] }
 0x11e   : > { %3697 = vmatmul.msk.f32.gmra.mxu3 %vm988_vm1, %v941_v0  ;;  %v885_v0 = vld [vmem:[%s3939_s28 + $0x508] sm:$0xff] }
 0x11f   : > { %3513 = vmatmul.msk.f32.gmra.mxu0 %vm988_vm1, %v757_v20  ;;  %2825 = vmatpush.msrb.mxu1 %v2554_v36  ;;  %v4260_v20 = vpop.f32.mrf.mxu3  ;;  %v943_v36 = vld [vmem:[%s3939_s28 + $0x6d8] sm:$0xff] }
 0x120   : > { %3572 = vmatmul.msk.f32.gmra.mxu1 %vm988_vm1, %v816_v4  ;;  %5624 = vst [vmem:[#allocation16_spill] sm:$0xff] %v4260_v20  ;;  %v766_v4 = vld [vmem:[%s3939_s28 + $0x150] sm:$0xff] }
 0x121   : > { %2826 = vmatpush.msrb.mxu1 %v2553_v25  ;;  %v818_v25 = vld [vmem:[%s3939_s28 + $0x2f0] sm:$0xff] }
 0x122   : > { %3636 = vmatmul.msk.f32.gmra.mxu2 %vm988_vm1, %v880_v10  ;;  %v4330_v10 = vpop.f32.mrf.mxu1 }
 0x123   : > { %2827 = vmatpush.msrb.mxu1 %v2552_v30 }
 0x124   : > { %v4198_v34 = vpop.f32.mrf.mxu0 }
 0x125   : > { %2828 = vmatpush.msrb.mxu1 %v2551_v32  ;;  %v4282_v32 = vpop.f32.mrf.mxu2 }
 0x126   : > { %3698 = vmatmul.msk.f32.gmra.mxu3 %vm988_vm1, %v942_v15  ;;  %5627 = vst [vmem:[#allocation19_spill] sm:$0xff] %v4282_v32  ;;  %v781_v32 = vld [vmem:[%s3939_s28 + $0x1c8] sm:$0xff] }
 0x127   : > { %3514 = vmatmul.msk.f32.gmra.mxu0 %vm988_vm1, %v758_v35  ;;  %2829 = vmatpush.msrb.mxu1 %v2550_v45  ;;  %v4274_v27 = vpop.f32.mrf.mxu3  ;;  %v819_v35 = vld [vmem:[%s3939_s28 + $0x2f8] sm:$0xff] }
 0x128   : > { %3573 = vmatmul.msk.f32.gmra.mxu1 %vm988_vm1, %v817_v18  ;;  %5626 = vst [vmem:[#allocation18_spill] sm:$0xff] %v4274_v27  ;;  %v767_v18 = vld [vmem:[%s3939_s28 + $0x158] sm:$0xff] }
 0x129   : > { %2830 = vmatpush.msrb.mxu1 %v2549_v43  ;;  %v945_v43 = vld [vmem:[%s3939_s28 + $0x6e8] sm:$0xff]  ;;  %v967_v27 = vld [vmem:[%s3939_s28 + $0x798] sm:$0xff] }
 0x12a   : > { %3637 = vmatmul.msk.f32.gmra.mxu2 %vm988_vm1, %v881_v21  ;;  %v948_v21 = vld [vmem:[%s3939_s28 + $0x700] sm:$0xff] }
 0x12b   : > { %2831 = vmatpush.msrb.mxu1 %v2548_v47 }
 0x12c   : > { %v4218_v50 = vpop.f32.mrf.mxu0 }
 0x12d   : > { %2832 = vmatpush.msrb.mxu1 %v2547_v28  ;;  %v4296_v44 = vpop.f32.mrf.mxu2 }
 0x12e   : > { %3699 = vmatmul.msk.f32.gmra.mxu3 %vm988_vm1, %v943_v36  ;;  %5629 = vst [vmem:[#allocation21_spill] sm:$0xff] %v4296_v44  ;;  %v4346_v36 = vpop.f32.mrf.mxu1  ;;  %v962_v44 = vld [vmem:[%s3939_s28 + $0x770] sm:$0xff] }
 0x12f   : > { %3515 = vmatmul.msk.f32.gmra.mxu0 %vm988_vm1, %v759_v51  ;;  %2833 = vmatpush.msrb.mxu1 %v2546_v55  ;;  %v4288_v39 = vpop.f32.mrf.mxu3  ;;  %v765_v51 = vld [vmem:[%s3939_s28 + $0x148] sm:$0xff] }
 0x130   : > { %3574 = vmatmul.msk.f32.gmra.mxu1 %vm988_vm1, %v818_v25  ;;  %5628 = vst [vmem:[#allocation20_spill] sm:$0xff] %v4288_v39  ;;  %v823_v25 = vld [vmem:[%s3939_s28 + $0x318] sm:$0xff] }
 0x132   : > { %3638 = vmatmul.msk.f32.gmra.mxu2 %vm988_vm1, %v882_v29 }
 0x134   : > { %v4236_v60 = vpop.f32.mrf.mxu0 }
 0x135   : > { %v4310_v55 = vpop.f32.mrf.mxu2 }
 0x136   : > { %3700 = vmatmul.msk.f32.gmra.mxu3 %vm988_vm1, %v944_v49  ;;  %5631 = vst [vmem:[#allocation23_spill] sm:$0xff] %v4310_v55  ;;  %v843_v55 = vld [vmem:[%s3939_s28 + $0x3b8] sm:$0xff] }
 0x137   : > { %3516 = vmatmul.msk.f32.gmra.mxu0 %vm988_vm1, %v760_v62  ;;  %v4302_v47 = vpop.f32.mrf.mxu3 }
 0x138   : > { %3575 = vmatmul.msk.f32.gmra.mxu1 %vm988_vm1, %v819_v35  ;;  %5630 = vst [vmem:[#allocation22_spill] sm:$0xff] %v4302_v47  ;;  %v768_v35 = vld [vmem:[%s3939_s28 + $0x160] sm:$0xff]  ;;  %v787_v47 = vld [vmem:[%s3939_s28 + $0x1f8] sm:$0xff] }
 0x13a   : > { %3639 = vmatmul.msk.f32.gmra.mxu2 %vm988_vm1, %v883_v40  ;;  %v949_v40 = vld [vmem:[%s3939_s28 + $0x708] sm:$0xff] }
 0x13c   : > { %v4250_v14 = vpop.f32.mrf.mxu0 }
 0x13d   : > { %v4326_v9 = vpop.f32.mrf.mxu2 }
 0x13e   : > { %3701 = vmatmul.msk.f32.gmra.mxu3 %vm988_vm1, %v945_v43  ;;  %5633 = vst [vmem:[#allocation25_spill] sm:$0xff] %v4326_v9  ;;  %v4360_v43 = vpop.f32.mrf.mxu1 }
 0x13f   : > { %3517 = vmatmul.msk.f32.gmra.mxu0 %vm988_vm1, %v761_v1  ;;  %v4318_v62 = vpop.f32.mrf.mxu3  ;;  %v886_v1 = vld [vmem:[%s3939_s28 + $0x510] sm:$0xff] }
 0x140   : > { %3576 = vmatmul.msk.f32.gmra.mxu1 %vm988_vm1, %v820_v37  ;;  %5632 = vst [vmem:[#allocation24_spill] sm:$0xff] %v4318_v62  ;;  %v824_v37 = vld [vmem:[%s3939_s28 + $0x320] sm:$0xff] }
 0x141   : > { %v968_v62 = vld [vmem:[%s3939_s28 + $0x7a0] sm:$0xff] }
 0x142   : > { %3640 = vmatmul.msk.f32.gmra.mxu2 %vm988_vm1, %v884_v48 }
 0x144   : > { %v4264_v61 = vpop.f32.mrf.mxu0 }
 0x146   : > { %3702 = vmatmul.msk.f32.gmra.mxu3 %vm988_vm1, %v946_v54 }
 0x147   : > { %3518 = vmatmul.msk.f32.gmra.mxu0 %vm988_vm1, %v762_v22  ;;  %v4334_v13 = vpop.f32.mrf.mxu3  ;;  %v4342_v22 = vpop.f32.mrf.mxu2 }
 0x148   : > { %3577 = vmatmul.msk.f32.gmra.mxu1 %vm988_vm1, %v821_v59  ;;  %5634 = vst [vmem:[#allocation26_spill] sm:$0xff] %v4334_v13  ;;  %v769_v59 = vld [vmem:[%s3939_s28 + $0x168] sm:$0xff] }
 0x149   : > { %5635 = vst [vmem:[#allocation27_spill] sm:$0xff] %v4342_v22  ;;  %v969_v22 = vld [vmem:[%s3939_s28 + $0x7a8] sm:$0xff] }
 0x14a   : > { %3641 = vmatmul.msk.f32.gmra.mxu2 %vm988_vm1, %v885_v0  ;;  %v950_v0 = vld [vmem:[%s3939_s28 + $0x710] sm:$0xff] }
 0x14c   : > { %v4278_v30 = vpop.f32.mrf.mxu0 }
 0x14e   : > { %3703 = vmatmul.msk.f32.gmra.mxu3 %vm988_vm1, %v947_v8  ;;  %v4374_v8 = vpop.f32.mrf.mxu1 }
 0x14f   : > { %3519 = vmatmul.msk.f32.gmra.mxu0 %vm988_vm1, %v763_v31  ;;  %v4350_v29 = vpop.f32.mrf.mxu3  ;;  %v887_v31 = vld [vmem:[%s3939_s28 + $0x518] sm:$0xff] }
 0x150   : > { %3578 = vmatmul.msk.f32.gmra.mxu1 %vm988_vm1, %v822_v6  ;;  %5636 = vst [vmem:[#allocation28_spill] sm:$0xff] %v4350_v29  ;;  %v825_v6 = vld [vmem:[%s3939_s28 + $0x328] sm:$0xff] }
 0x152   : > { %3642 = vmatmul.msk.f32.gmra.mxu2 %vm988_vm1, %v886_v1 }
 0x154   : > { %v4292_v45 = vpop.f32.mrf.mxu0 }
 0x156   : > { %3704 = vmatmul.msk.f32.gmra.mxu3 %vm988_vm1, %v948_v21 }
 0x157   : > { %3520 = vmatmul.msk.f32.gmra.mxu0 %vm988_vm1, %v764_v41  ;;  %v4356_v41 = vpop.f32.mrf.mxu2  ;;  %v4364_v48 = vpop.f32.mrf.mxu3 }
 0x158   : > { %3579 = vmatmul.msk.f32.gmra.mxu1 %vm988_vm1, %v823_v25  ;;  %5637 = vst [vmem:[#allocation29_spill] sm:$0xff] %v4364_v48  ;;  %v770_v25 = vld [vmem:[%s3939_s28 + $0x170] sm:$0xff] }
 0x15a   : > { %3643 = vmatmul.msk.f32.gmra.mxu2 %vm988_vm1, %v887_v31  ;;  %v951_v31 = vld [vmem:[%s3939_s28 + $0x718] sm:$0xff] }
 0x15c   : > { %v4306_v28 = vpop.f32.mrf.mxu0 }
 0x15e   : > { %3705 = vmatmul.msk.f32.gmra.mxu3 %vm988_vm1, %v949_v40  ;;  %v4388_v40 = vpop.f32.mrf.mxu1 }
 0x15f   : > { %3521 = vmatmul.msk.f32.gmra.mxu0 %vm988_vm1, %v765_v51  ;;  %v888_v51 = vld [vmem:[%s3939_s28 + $0x520] sm:$0xff]  ;;  %v4378_v1 = vpop.f32.mrf.mxu3 }
 0x160   : > { %3580 = vmatmul.msk.f32.gmra.mxu1 %vm988_vm1, %v824_v37  ;;  %5638 = vst [vmem:[#allocation30_spill] sm:$0xff] %v4378_v1  ;;  %v826_v37 = vld [vmem:[%s3939_s28 + $0x330] sm:$0xff] }
 0x162   : > { %3644 = vmatmul.msk.f32.gmra.mxu2 %vm988_vm1, %v888_v51 }
 0x164   : > { %v4322_v3 = vpop.f32.mrf.mxu0 }
 0x166   : > { %3706 = vmatmul.msk.f32.gmra.mxu3 %vm988_vm1, %v950_v0  ;;  %v4405_v1 = vpop.f32.mrf.mxu1 }
 0x167   : > { %3522 = vmatmul.msk.f32.gmra.mxu0 %vm988_vm1, %v766_v4  ;;  %v4370_v4 = vpop.f32.mrf.mxu2  ;;  %v4392_v51 = vpop.f32.mrf.mxu3 }
 0x168   : > { %3581 = vmatmul.msk.f32.gmra.mxu1 %vm988_vm1, %v825_v6  ;;  %5639 = vst [vmem:[#allocation31_spill] sm:$0xff] %v4392_v51  ;;  %v771_v6 = vld [vmem:[%s3939_s28 + $0x178] sm:$0xff] }
 0x16c   : > { %v4338_v15 = vpop.f32.mrf.mxu0 }
 0x16e   : > { %3707 = vmatmul.msk.f32.gmra.mxu3 %vm988_vm1, %v951_v31 }
 0x16f   : > { %3523 = vmatmul.msk.f32.gmra.mxu0 %vm988_vm1, %v767_v18  ;;  %v889_v18 = vld [vmem:[%s3939_s28 + $0x528] sm:$0xff]  ;;  %v4409_v51 = vpop.f32.mrf.mxu3 }
 0x170   : > { %3645 = vmatmul.msk.f32.gmra.mxu2 %vm988_vm1, %v889_v18  ;;  %3582 = vmatmul.msk.f32.gmra.mxu1 %vm988_vm1, %v826_v37  ;;  %v952_v18 = vld [vmem:[%s3939_s28 + $0x720] sm:$0xff]  ;;  %5640 = vst [vmem:[#allocation32_spill] sm:$0xff] %v4409_v51  ;;  %v953_v51 = vld [vmem:[%s3939_s28 + $0x728] sm:$0xff] }
 0x174   : > { %v1862_v49 = vpop.f32.mrf.mxu0 }
 0x176   : > { %3708 = vmatmul.msk.f32.gmra.mxu3 %vm988_vm1, %v952_v18  ;;  %v687_v18 = vpop.xlane.xlu0 %686 }
 0x177   : > { %3524 = vmatmul.msk.f32.gmra.mxu0 %vm988_vm1, %v768_v35  ;;  %v4384_v35 = vpop.f32.mrf.mxu2 }
 0x17c   : > { %v1865_v54 = vpop.f32.mrf.mxu0 }
 0x17d   : > { %v1866_v48 = vadd.f32 %v4129_v38, %v1865_v54  ;;  %v688_v54 = vmul.f32 %v687_v18, %v4159_v11  ;;  %v1854_v11 = vadd.f32 %v4129_v38, %v4306_v28  ;;  %v1848_v28 = vadd.f32 %v4129_v38, %v4278_v30 }
 0x17e   : > { %3709 = vmatmul.msk.f32.gmra.mxu3 %vm988_vm1, %v953_v51  ;;  %v1851_v51 = vadd.f32 %v4129_v38, %v4292_v45 }
 0x17f   : > { %3525 = vmatmul.msk.f32.gmra.mxu0 %vm988_vm1, %v769_v59  ;;  %v890_v59 = vld [vmem:[%s3939_s28 + $0x530] sm:$0xff]  ;;  %v4421_v42 = vadd.f32 1e-12, %v688_v54  ;;  %v2571_v18 = vmax.f32 %v1854_v11, 0.0  ;;  %v1842_v11 = vadd.f32 %v4129_v38, %v4250_v14  ;;  %v893_v14 = vld [vmem:[%s3939_s28 + $0x548] sm:$0xff] }
 0x180   : > { %3646 = vmatmul.msk.f32.gmra.mxu2 %vm988_vm1, %v890_v59  ;;  %v827_v59 = vld [vmem:[%s3939_s28 + $0x338] sm:$0xff]  ;;  %v2570_v45 = vmax.f32 %v1851_v51, 0.0 }
 0x181   : > { %3583 = vmatmul.msk.f32.gmra.mxu1 %vm988_vm1, %v827_v59  ;;  %v772_v59 = vld [vmem:[%s3939_s28 + $0x180] sm:$0xff]  ;;  %3789 = vrsqrt.f32 %v4421_v42  ;;  %vm696_vm6 = vweird.f32 %v4421_v42 }
 0x184   : > { %v1868_v21 = vpop.f32.mrf.mxu0 }
 0x185   : > { %v1869_v29 = vadd.f32 %v4129_v38, %v1868_v21  ;;  %v1863_v21 = vadd.f32 %v4129_v38, %v1862_v49 }
 0x187   : > { %3526 = vmatmul.msk.f32.gmra.mxu0 %vm988_vm1, %v770_v25  ;;  %v4400_v25 = vpop.f32.mrf.mxu2  ;;  %v3790_v54 = vpop.eup %3789 }
 0x188   : > { %3647 = vmatmul.msk.f32.gmra.mxu2 %vm988_vm1, %v891_v5  ;;  %v2574_v5 = vmax.f32 %v1863_v21, 0.0  ;;  %v691_v30 = vmul.f32 %v3790_v54, %v4421_v42  ;;  %vm697_vm7 = vweird.f32 %v3790_v54 }
 0x189   : > { %vm698_vm8 = vmor %vm696_vm6, %vm697_vm7 }
 0x18a   : > { %v692_v51 = vmul.f32 %v3790_v54, %v691_v30 }
 0x18c   : > { %v1871_v0 = vpop.f32.mrf.mxu0 }
 0x18d   : > { %v1872_v31 = vadd.f32 %v4129_v38, %v1871_v0  ;;  %v2576_v0 = vmax.f32 %v1869_v29, 0.0  ;;  %v1857_v29 = vadd.f32 %v4129_v38, %v4322_v3  ;;  %v828_v3 = vld [vmem:[%s3939_s28 + $0x340] sm:$0xff] }
 0x18e   : > { %3584 = vmatmul.msk.f32.gmra.mxu1 %vm988_vm1, %v828_v3 }
 0x18f   : > { %3527 = vmatmul.msk.f32.gmra.mxu0 %vm988_vm1, %v771_v6  ;;  %v2577_v37 = vmax.f32 %v1872_v31, 0.0  ;;  %v1860_v6 = vadd.f32 %v4129_v38, %v4338_v15  ;;  %v2575_v31 = vmax.f32 %v1866_v48, 0.0  ;;  %v4425_v49 = vpop.f32.mrf.mxu2  ;;  %v4432_v48 = vpop.f32.mrf.mxu1  ;;  %v2572_v21 = vmax.f32 %v1857_v29, 0.0 }
 0x191   : > { %2838 = vmatpush.msrb.mxu2 %v2577_v37  ;;  %v2573_v15 = vmax.f32 %v1860_v6, 0.0  ;;  %v4436_v37 = vpop.f32.mrf.mxu3 }
 0x192   : > { %5641 = vst [vmem:[#allocation33_spill] sm:$0xff] %v4436_v37  ;;  %v955_v37 = vld [vmem:[%s3939_s28 + $0x738] sm:$0xff] }
 0x193   : > { %2839 = vmatpush.msrb.mxu2 %v2576_v0  ;;  %v892_v0 = vld [vmem:[%s3939_s28 + $0x540] sm:$0xff] }
 0x194   : > { %v4417_v23 = vpop.f32.mrf.mxu0  ;;  %3648 = vmatmul.msk.f32.gmra.mxu2 %vm988_vm1, %v892_v0  ;;  %v1839_v0 = vadd.f32 %v4129_v38, %v4236_v60  ;;  %v1833_v60 = vadd.f32 %v4129_v38, %v4198_v34  ;;  %v830_v34 = vld [vmem:[%s3939_s28 + $0x350] sm:$0xff] }
 0x195   : > { %2840 = vmatpush.msrb.mxu2 %v2575_v31  ;;  %v773_v31 = vld [vmem:[%s3939_s28 + $0x188] sm:$0xff] }
 0x197   : > { %3528 = vmatmul.msk.f32.gmra.mxu0 %vm988_vm1, %v772_v59  ;;  %2841 = vmatpush.msrb.mxu2 %v2574_v5  ;;  %v954_v59 = vld [vmem:[%s3939_s28 + $0x730] sm:$0xff]  ;;  %v1845_v5 = vadd.f32 %v4129_v38, %v4264_v61  ;;  %v4450_v29 = vpop.f32.mrf.mxu2  ;;  %v4457_v3 = vpop.f32.mrf.mxu1  ;;  %v829_v61 = vld [vmem:[%s3939_s28 + $0x348] sm:$0xff] }
 0x198   : > { %3710 = vmatmul.msk.f32.gmra.mxu3 %vm988_vm1, %v954_v59  ;;  %3585 = vmatmul.msk.f32.gmra.mxu1 %vm988_vm1, %v829_v61  ;;  %v693_v59 = vmul.f32 0.5, %v692_v51  ;;  %v774_v61 = vld [vmem:[%s3939_s28 + $0x190] sm:$0xff] }
 0x199   : > { %2842 = vmatpush.msrb.mxu2 %v2573_v15  ;;  %v2569_v15 = vmax.f32 %v1848_v28, 0.0  ;;  %v1836_v28 = vadd.f32 %v4129_v38, %v4218_v50  ;;  %v1830_v50 = vadd.f32 %v4129_v38, %v4174_v19  ;;  %v1827_v19 = vadd.f32 %v4129_v38, %v4146_v63  ;;  %v956_v38 = vld [vmem:[%s3939_s28 + $0x740] sm:$0xff] }
 0x19b   : > { %2843 = vmatpush.msrb.mxu2 %v2572_v21  ;;  %v4461_v21 = vpop.f32.mrf.mxu3  ;;  %v2562_v63 = vmax.f32 %v1827_v19, 0.0 }
 0x19c   : > { %v4444_v6 = vpop.f32.mrf.mxu0  ;;  %5642 = vst [vmem:[#allocation34_spill] sm:$0xff] %v4461_v21  ;;  %3649 = vmatmul.msk.f32.gmra.mxu2 %vm988_vm1, %v893_v14  ;;  %v2564_v14 = vmax.f32 %v1833_v60, 0.0  ;;  %v959_v21 = vld [vmem:[%s3939_s28 + $0x758] sm:$0xff] }
 0x19d   : > { %2844 = vmatpush.msrb.mxu2 %v2571_v18  ;;  %v2568_v18 = vmax.f32 %v1845_v5, 0.0  ;;  %v2566_v5 = vmax.f32 %v1839_v0, 0.0  ;;  %v3782_v0 = vld [vmem:[%s5583_s4] ss:$0 sm:$0xff] }
 0x19f   : > { %3529 = vmatmul.msk.f32.gmra.mxu0 %vm988_vm1, %v773_v31  ;;  %2845 = vmatpush.msrb.mxu2 %v2570_v45  ;;  %v2567_v31 = vmax.f32 %v1842_v11, 0.0  ;;  %v694_v45 = vsub.f32 1.5, %v693_v59  ;;  %v2565_v11 = vmax.f32 %v1836_v28, 0.0  ;;  %v894_v59 = vld [vmem:[%s3939_s28 + $0x550] sm:$0xff] }
 0x1a0   : > { %3711 = vmatmul.msk.f32.gmra.mxu3 %vm988_vm1, %v955_v37  ;;  %3586 = vmatmul.msk.f32.gmra.mxu1 %vm988_vm1, %v830_v34 }
 0x1a1   : > { %2846 = vmatpush.msrb.mxu2 %v2569_v15  ;;  %v4475_v15 = vpop.f32.mrf.mxu2  ;;  %v695_v51 = vmul.f32 %v3790_v54, %v694_v45 }
 0x1a3   : > { %2847 = vmatpush.msrb.mxu2 %v2568_v18  ;;  %v4482_v18 = vpop.f32.mrf.mxu1  ;;  %v4486_v37 = vpop.f32.mrf.mxu3  ;;  %v699_v42 = vsel %vm698_vm8, %v3790_v54, %v695_v51  ;;  %v2563_v54 = vmax.f32 %v1830_v50, 0.0 }
 0x1a4   : > { %v4469_v30 = vpop.f32.mrf.mxu0  ;;  %5643 = vst [vmem:[#allocation35_spill] sm:$0xff] %v4486_v37  ;;  %v700_v28 = vmul.f32 %v699_v42, %v4170_v16  ;;  %3650 = vmatmul.msk.f32.gmra.mxu2 %vm988_vm1, %v894_v59  ;;  %v721_v51 = vpop.permute.xlu1 %720  ;;  %v957_v59 = vld [vmem:[%s3939_s28 + $0x748] sm:$0xff] }
 0x1a5   : > { %2848 = vmatpush.msrb.mxu2 %v2567_v31  ;;  %v3783_v31 = vld [vmem:[%s5584_s5] ss:$0 sm:$0xff] }
 0x1a6   : > { %v705_v45 = vmul.f32 %v3782_v0, %v700_v28  ;;  %v895_v0 = vld [vmem:[%s3939_s28 + $0x558] sm:$0xff] }
 0x1a7   : > { %3530 = vmatmul.msk.f32.gmra.mxu0 %vm988_vm1, %v774_v61  ;;  %2849 = vmatpush.msrb.mxu2 %v2566_v5  ;;  %v775_v5 = vld [vmem:[%s3939_s28 + $0x198] sm:$0xff] }
 0x1a8   : > { %3712 = vmatmul.msk.f32.gmra.mxu3 %vm988_vm1, %v956_v38  ;;  %v710_v16 = vadd.f32 %v3783_v31, %v705_v45 }
 0x1a9   : > { %2850 = vmatpush.msrb.mxu2 %v2565_v11  ;;  %v4503_v60 = vpop.f32.mrf.mxu2  ;;  %v831_v11 = vld [vmem:[%s3939_s28 + $0x358] sm:$0xff] }
 0x1aa   : > { %v4510_v34 = vmul.f32 %v721_v51, %v710_v16  ;;  %3587 = vmatmul.msk.f32.gmra.mxu1 %vm988_vm1, %v831_v11  ;;  %v958_v16 = vld [vmem:[%s3939_s28 + $0x750] sm:$0xff] }
 0x1ab   : > { %2851 = vmatpush.msrb.mxu2 %v2564_v14  ;;  %v4507_v50 = vpop.f32.mrf.mxu1  ;;  %v4513_v42 = vpop.f32.mrf.mxu3  ;;  %v776_v14 = vld [vmem:[%s3939_s28 + $0x1a0] sm:$0xff] }
 0x1ac   : > { %v4499_v61 = vpop.f32.mrf.mxu0  ;;  %5644 = vst [vmem:[#allocation36_spill] sm:$0xff] %v4513_v42  ;;  %3241 = vadd.xlane.f32.xlu1 %v4510_v34  ;;  %3651 = vmatmul.msk.f32.gmra.mxu2 %vm988_vm1, %v895_v0  ;;  %v833_v0 = vld [vmem:[%s3939_s28 + $0x368] sm:$0xff] }
 0x1ad   : > { %2852 = vmatpush.msrb.mxu2 %v2563_v54  ;;  %v832_v54 = vld [vmem:[%s3939_s28 + $0x360] sm:$0xff] }
 0x1af   : > { %3531 = vmatmul.msk.f32.gmra.mxu0 %vm988_vm1, %v775_v5  ;;  %2853 = vmatpush.msrb.mxu2 %v2562_v63  ;;  %v896_v5 = vld [vmem:[%s3939_s28 + $0x560] sm:$0xff]  ;;  %v777_v63 = vld [vmem:[%s3939_s28 + $0x1a8] sm:$0xff] }
 0x1b0   : > { %3713 = vmatmul.msk.f32.gmra.mxu3 %vm988_vm1, %v957_v59  ;;  %v897_v59 = vld [vmem:[%s3939_s28 + $0x568] sm:$0xff] }
 0x1b1   : > { %v4522_v28 = vpop.f32.mrf.mxu2 }
 0x1b2   : > { %3588 = vmatmul.msk.f32.gmra.mxu1 %vm988_vm1, %v832_v54 }
 0x1b3   : > { %v4526_v31 = vpop.f32.mrf.mxu1  ;;  %v4530_v45 = vpop.f32.mrf.mxu3 }
 0x1b4   : > { %v4518_v19 = vpop.f32.mrf.mxu0  ;;  %5645 = vst [vmem:[#allocation37_spill] sm:$0xff] %v4530_v45  ;;  %3652 = vmatmul.msk.f32.gmra.mxu2 %vm988_vm1, %v896_v5  ;;  %v778_v5 = vld [vmem:[%s3939_s28 + $0x1b0] sm:$0xff]  ;;  %v779_v45 = vld [vmem:[%s3939_s28 + $0x1b8] sm:$0xff] }
 0x1b7   : > { %3532 = vmatmul.msk.f32.gmra.mxu0 %vm988_vm1, %v776_v14 }
 0x1b8   : > { %3714 = vmatmul.msk.f32.gmra.mxu3 %vm988_vm1, %v958_v16 }
 0x1b9   : > { %v4538_v51 = vpop.f32.mrf.mxu2 }
 0x1ba   : > { %3589 = vmatmul.msk.f32.gmra.mxu1 %vm988_vm1, %v833_v0  ;;  %v834_v0 = vld [vmem:[%s3939_s28 + $0x370] sm:$0xff] }
 0x1bb   : > { %v4542_v11 = vpop.f32.mrf.mxu1  ;;  %v4546_v14 = vpop.f32.mrf.mxu3 }
 0x1bc   : > { %v4534_v38 = vpop.f32.mrf.mxu0  ;;  %5646 = vst [vmem:[#allocation38_spill] sm:$0xff] %v4546_v14  ;;  %3653 = vmatmul.msk.f32.gmra.mxu2 %vm988_vm1, %v897_v59  ;;  %v898_v59 = vld [vmem:[%s3939_s28 + $0x570] sm:$0xff]  ;;  %v960_v14 = vld [vmem:[%s3939_s28 + $0x760] sm:$0xff] }
 0x1bf   : > { %3533 = vmatmul.msk.f32.gmra.mxu0 %vm988_vm1, %v777_v63 }
 0x1c0   : > { %3715 = vmatmul.msk.f32.gmra.mxu3 %vm988_vm1, %v959_v21 }
 0x1c1   : > { %v4554_v16 = vpop.f32.mrf.mxu2 }
 0x1c2   : > { %3590 = vmatmul.msk.f32.gmra.mxu1 %vm988_vm1, %v834_v0  ;;  %v835_v0 = vld [vmem:[%s3939_s28 + $0x378] sm:$0xff] }
 0x1c3   : > { %v4558_v63 = vpop.f32.mrf.mxu1  ;;  %v4562_v37 = vpop.f32.mrf.mxu3 }
 0x1c4   : > { %v4550_v54 = vpop.f32.mrf.mxu0  ;;  %5647 = vst [vmem:[#allocation39_spill] sm:$0xff] %v4562_v37  ;;  %3654 = vmatmul.msk.f32.gmra.mxu2 %vm988_vm1, %v898_v59  ;;  %v899_v59 = vld [vmem:[%s3939_s28 + $0x578] sm:$0xff] }
 0x1c7   : > { %3534 = vmatmul.msk.f32.gmra.mxu0 %vm988_vm1, %v778_v5 }
 0x1c8   : > { %3716 = vmatmul.msk.f32.gmra.mxu3 %vm988_vm1, %v960_v14 }
 0x1c9   : > { %v4570_v21 = vpop.f32.mrf.mxu2 }
 0x1ca   : > { %3591 = vmatmul.msk.f32.gmra.mxu1 %vm988_vm1, %v835_v0  ;;  %v836_v0 = vld [vmem:[%s3939_s28 + $0x380] sm:$0xff] }
 0x1cb   : > { %v4574_v5 = vpop.f32.mrf.mxu1  ;;  %v4578_v37 = vpop.f32.mrf.mxu3 }
 0x1cc   : > { %v4566_v42 = vpop.f32.mrf.mxu0  ;;  %5648 = vst [vmem:[#allocation40_spill] sm:$0xff] %v4578_v37  ;;  %3655 = vmatmul.msk.f32.gmra.mxu2 %vm988_vm1, %v899_v59  ;;  %v900_v59 = vld [vmem:[%s3939_s28 + $0x580] sm:$0xff] }
 0x1cf   : > { %3535 = vmatmul.msk.f32.gmra.mxu0 %vm988_vm1, %v779_v45 }
 0x1d0   : > { %3717 = vmatmul.msk.f32.gmra.mxu3 %vm988_vm1, %v961_v17 }
 0x1d1   : > { %v4586_v14 = vpop.f32.mrf.mxu2 }
 0x1d2   : > { %3592 = vmatmul.msk.f32.gmra.mxu1 %vm988_vm1, %v836_v0  ;;  %v837_v0 = vld [vmem:[%s3939_s28 + $0x388] sm:$0xff] }
 0x1d3   : > { %v4590_v45 = vpop.f32.mrf.mxu1  ;;  %v4594_v37 = vpop.f32.mrf.mxu3 }
 0x1d4   : > { %v4582_v56 = vpop.f32.mrf.mxu0  ;;  %5649 = vst [vmem:[#allocation41_spill] sm:$0xff] %v4594_v37  ;;  %3656 = vmatmul.msk.f32.gmra.mxu2 %vm988_vm1, %v900_v59  ;;  %v901_v59 = vld [vmem:[%s3939_s28 + $0x588] sm:$0xff] }
 0x1d7   : > { %3536 = vmatmul.msk.f32.gmra.mxu0 %vm988_vm1, %v780_v2 }
 0x1d8   : > { %3718 = vmatmul.msk.f32.gmra.mxu3 %vm988_vm1, %v962_v44 }
 0x1d9   : > { %v4602_v17 = vpop.f32.mrf.mxu2 }
 0x1da   : > { %5650 = vst [vmem:[#allocation42_spill] sm:$0xff] %v4602_v17  ;;  %3593 = vmatmul.msk.f32.gmra.mxu1 %vm988_vm1, %v837_v0  ;;  %v782_v17 = vld [vmem:[%s3939_s28 + $0x1d0] sm:$0xff] }
 0x1db   : > { %v4606_v2 = vpop.f32.mrf.mxu1  ;;  %v4610_v37 = vpop.f32.mrf.mxu3  ;;  %v838_v0 = vld [vmem:[%s3939_s28 + $0x390] sm:$0xff] }
 0x1dc   : > { %v4598_v57 = vpop.f32.mrf.mxu0  ;;  %5651 = vst [vmem:[#allocation43_spill] sm:$0xff] %v4610_v37  ;;  %3657 = vmatmul.msk.f32.gmra.mxu2 %vm988_vm1, %v901_v59  ;;  %v902_v59 = vld [vmem:[%s3939_s28 + $0x590] sm:$0xff] }
 0x1df   : > { %3537 = vmatmul.msk.f32.gmra.mxu0 %vm988_vm1, %v781_v32 }
 0x1e0   : > { %3719 = vmatmul.msk.f32.gmra.mxu3 %vm988_vm1, %v963_v33 }
 0x1e1   : > { %v4618_v44 = vpop.f32.mrf.mxu2 }
 0x1e2   : > { %5652 = vst [vmem:[#allocation44_spill] sm:$0xff] %v4618_v44  ;;  %3594 = vmatmul.msk.f32.gmra.mxu1 %vm988_vm1, %v838_v0  ;;  %v783_v44 = vld [vmem:[%s3939_s28 + $0x1d8] sm:$0xff] }
 0x1e3   : > { %v4622_v32 = vpop.f32.mrf.mxu1  ;;  %v4626_v37 = vpop.f32.mrf.mxu3  ;;  %v839_v0 = vld [vmem:[%s3939_s28 + $0x398] sm:$0xff] }
 0x1e4   : > { %v4614_v26 = vpop.f32.mrf.mxu0  ;;  %5653 = vst [vmem:[#allocation45_spill] sm:$0xff] %v4626_v37  ;;  %3658 = vmatmul.msk.f32.gmra.mxu2 %vm988_vm1, %v902_v59  ;;  %v903_v59 = vld [vmem:[%s3939_s28 + $0x598] sm:$0xff] }
 0x1e7   : > { %3538 = vmatmul.msk.f32.gmra.mxu0 %vm988_vm1, %v782_v17 }
 0x1e8   : > { %3720 = vmatmul.msk.f32.gmra.mxu3 %vm988_vm1, %v964_v12 }
 0x1e9   : > { %v4634_v33 = vpop.f32.mrf.mxu2 }
 0x1ea   : > { %5654 = vst [vmem:[#allocation46_spill] sm:$0xff] %v4634_v33  ;;  %3595 = vmatmul.msk.f32.gmra.mxu1 %vm988_vm1, %v839_v0  ;;  %v784_v33 = vld [vmem:[%s3939_s28 + $0x1e0] sm:$0xff] }
 0x1eb   : > { %v4638_v17 = vpop.f32.mrf.mxu1  ;;  %v4642_v37 = vpop.f32.mrf.mxu3 }
 0x1ec   : > { %v4630_v52 = vpop.f32.mrf.mxu0  ;;  %5655 = vst [vmem:[#allocation47_spill] sm:$0xff] %v4642_v37  ;;  %3659 = vmatmul.msk.f32.gmra.mxu2 %vm988_vm1, %v903_v59  ;;  %v904_v59 = vld [vmem:[%s3939_s28 + $0x5a0] sm:$0xff] }
 0x1ef   : > { %3539 = vmatmul.msk.f32.gmra.mxu0 %vm988_vm1, %v783_v44  ;;  %v840_v44 = vld [vmem:[%s3939_s28 + $0x3a0] sm:$0xff] }
 0x1f0   : > { %3721 = vmatmul.msk.f32.gmra.mxu3 %vm988_vm1, %v965_v46 }
 0x1f1   : > { %v4648_v58 = vpop.f32.mrf.mxu2 }
 0x1f2   : > { %5656 = vst [vmem:[#allocation48_spill] sm:$0xff] %v4648_v58  ;;  %3596 = vmatmul.msk.f32.gmra.mxu1 %vm988_vm1, %v840_v44  ;;  %v785_v58 = vld [vmem:[%s3939_s28 + $0x1e8] sm:$0xff] }
 0x1f3   : > { %v4652_v12 = vpop.f32.mrf.mxu1  ;;  %v4656_v0 = vpop.f32.mrf.mxu3 }
 0x1f4   : > { %v1910_v53 = vpop.f32.mrf.mxu0  ;;  %5657 = vst [vmem:[#allocation49_spill] sm:$0xff] %v4656_v0  ;;  %3660 = vmatmul.msk.f32.gmra.mxu2 %vm988_vm1, %v904_v59  ;;  %v905_v59 = vld [vmem:[%s3939_s28 + $0x5a8] sm:$0xff] }
 0x1f7   : > { %3540 = vmatmul.msk.f32.gmra.mxu0 %vm988_vm1, %v784_v33  ;;  %v841_v33 = vld [vmem:[%s3939_s28 + $0x3a8] sm:$0xff] }
 0x1f8   : > { %3722 = vmatmul.msk.f32.gmra.mxu3 %vm988_vm1, %v966_v7  ;;  %v842_v7 = vld [vmem:[%s3939_s28 + $0x3b0] sm:$0xff] }
 0x1f9   : > { %v4662_v20 = vpop.f32.mrf.mxu2 }
 0x1fa   : > { %5658 = vst [vmem:[#allocation50_spill] sm:$0xff] %v4662_v20  ;;  %3597 = vmatmul.msk.f32.gmra.mxu1 %vm988_vm1, %v841_v33  ;;  %v786_v20 = vld [vmem:[%s3939_s28 + $0x1f0] sm:$0xff] }
 0x1fb   : > { %v4666_v46 = vpop.f32.mrf.mxu1  ;;  %v4670_v44 = vpop.f32.mrf.mxu3 }
 0x1fc   : > { %v1913_v37 = vpop.f32.mrf.mxu0  ;;  %5659 = vst [vmem:[#allocation51_spill] sm:$0xff] %v4670_v44  ;;  %3661 = vmatmul.msk.f32.gmra.mxu2 %vm988_vm1, %v905_v59  ;;  %v906_v44 = vld [vmem:[%s3939_s28 + $0x5b0] sm:$0xff] }
 0x1ff   : > { %3541 = vmatmul.msk.f32.gmra.mxu0 %vm988_vm1, %v785_v58 }
 0x200   : > { %3723 = vmatmul.msk.f32.gmra.mxu3 %vm988_vm1, %v967_v27  ;;  %v4693_v27 = vld [vmem:[%s5588_s9] ss:$0 sm:$0xff] }
 0x201   : > { %v4676_v39 = vpop.f32.mrf.mxu2 }
 0x202   : > { %5660 = vst [vmem:[#allocation52_spill] sm:$0xff] %v4676_v39  ;;  %3598 = vmatmul.msk.f32.gmra.mxu1 %vm988_vm1, %v842_v7 }
 0x203   : > { %v4680_v58 = vpop.f32.mrf.mxu1  ;;  %v4684_v33 = vpop.f32.mrf.mxu3 }
 0x204   : > { %v1916_v0 = vpop.f32.mrf.mxu0  ;;  %5661 = vst [vmem:[#allocation53_spill] sm:$0xff] %v4684_v33  ;;  %3662 = vmatmul.msk.f32.gmra.mxu2 %vm988_vm1, %v906_v44  ;;  %v1914_v33 = vadd.f32 %v4693_v27, %v1913_v37  ;;  %v788_v37 = vld [vmem:[%s3939_s28 + $0x200] sm:$0xff] }
 0x207   : > { %3542 = vmatmul.msk.f32.gmra.mxu0 %vm988_vm1, %v786_v20  ;;  %v1917_v20 = vadd.f32 %v4693_v27, %v1916_v0  ;;  %v1911_v0 = vadd.f32 %v4693_v27, %v1910_v53 }
 0x208   : > { %3724 = vmatmul.msk.f32.gmra.mxu3 %vm988_vm1, %v968_v62  ;;  %v1908_v62 = vadd.f32 %v4693_v27, %v4630_v52  ;;  %v1902_v52 = vadd.f32 %v4693_v27, %v4598_v57  ;;  %v1896_v57 = vadd.f32 %v4693_v27, %v4566_v42  ;;  %v1890_v42 = vadd.f32 %v4693_v27, %v4534_v38 }
 0x209   : > { %v4697_v7 = vpop.f32.mrf.mxu2  ;;  %v2590_v53 = vmax.f32 %v1911_v0, 0.0  ;;  %v1899_v0 = vadd.f32 %v4693_v27, %v4582_v56  ;;  %v1884_v38 = vadd.f32 %v4693_v27, %v4499_v61  ;;  %v1878_v61 = vadd.f32 %v4693_v27, %v4444_v6  ;;  %v910_v6 = vld [vmem:[%s3939_s28 + $0x5d0] sm:$0xff] }
 0x20a   : > { %5662 = vst [vmem:[#allocation54_spill] sm:$0xff] %v4697_v7  ;;  %3599 = vmatmul.msk.f32.gmra.mxu1 %vm988_vm1, %v843_v55  ;;  %v907_v7 = vld [vmem:[%s3939_s28 + $0x5b8] sm:$0xff]  ;;  %v1905_v55 = vadd.f32 %v4693_v27, %v4614_v26 }
 0x20b   : > { %v4702_v13 = vpop.f32.mrf.mxu1  ;;  %v4706_v9 = vpop.f32.mrf.mxu3  ;;  %v2586_v56 = vmax.f32 %v1899_v0, 0.0  ;;  %v1887_v0 = vadd.f32 %v4693_v27, %v4518_v19 }
 0x20c   : > { %v1919_v59 = vpop.f32.mrf.mxu0  ;;  %5663 = vst [vmem:[#allocation55_spill] sm:$0xff] %v4706_v9  ;;  %3663 = vmatmul.msk.f32.gmra.mxu2 %vm988_vm1, %v907_v7  ;;  %v1881_v9 = vadd.f32 %v4693_v27, %v4469_v30 }
 0x20d   : > { %v1920_v39 = vadd.f32 %v4693_v27, %v1919_v59  ;;  %v2592_v59 = vmax.f32 %v1917_v20, 0.0  ;;  %v2582_v19 = vmax.f32 %v1887_v0, 0.0 }
 0x20f   : > { %3543 = vmatmul.msk.f32.gmra.mxu0 %vm988_vm1, %v787_v47  ;;  %v2593_v44 = vmax.f32 %v1920_v39, 0.0  ;;  %v2591_v39 = vmax.f32 %v1914_v33, 0.0  ;;  %v2589_v33 = vmax.f32 %v1908_v62, 0.0  ;;  %v2587_v62 = vmax.f32 %v1902_v52, 0.0 }
 0x210   : > { %3725 = vmatmul.msk.f32.gmra.mxu3 %vm988_vm1, %v969_v22  ;;  %v2588_v22 = vmax.f32 %v1905_v55, 0.0  ;;  %v2585_v52 = vmax.f32 %v1896_v57, 0.0  ;;  %v2583_v57 = vmax.f32 %v1890_v42, 0.0  ;;  %v2581_v42 = vmax.f32 %v1884_v38, 0.0 }
 0x211   : > { %2858 = vmatpush.msrb.mxu3 %v2593_v44  ;;  %v4719_v20 = vpop.f32.mrf.mxu2  ;;  %v844_v44 = vld [vmem:[%s3939_s28 + $0x3c0] sm:$0xff]  ;;  %v2064_v38 = vadd.f32 %v4693_v27, %v4574_v5  ;;  %v2058_v5 = vadd.f32 %v4693_v27, %v4542_v11 }
 0x212   : > { %5664 = vst [vmem:[#allocation56_spill] sm:$0xff] %v4719_v20  ;;  %3600 = vmatmul.msk.f32.gmra.mxu1 %vm988_vm1, %v844_v44  ;;  %v1893_v44 = vadd.f32 %v4693_v27, %v4550_v54  ;;  %v917_v20 = vld [vmem:[%s3939_s28 + $0x608] sm:$0xff] }
 0x213   : > { %2859 = vmatpush.msrb.mxu3 %v2592_v59  ;;  %v4725_v7 = vpop.f32.mrf.mxu1  ;;  %v4729_v26 = vpop.f32.mrf.mxu3  ;;  %v908_v59 = vld [vmem:[%s3939_s28 + $0x5c0] sm:$0xff] }
 0x214   : > { %v4713_v47 = vpop.f32.mrf.mxu0  ;;  %5665 = vst [vmem:[#allocation57_spill] sm:$0xff] %v4729_v26  ;;  %3664 = vmatmul.msk.f32.gmra.mxu2 %vm988_vm1, %v908_v59  ;;  %v2584_v59 = vmax.f32 %v1893_v44, 0.0 }
 0x215   : > { %2860 = vmatpush.msrb.mxu3 %v2591_v39 }
 0x217   : > { %3544 = vmatmul.msk.f32.gmra.mxu0 %vm988_vm1, %v788_v37  ;;  %2861 = vmatpush.msrb.mxu3 %v2590_v53  ;;  %v789_v37 = vld [vmem:[%s3939_s28 + $0x208] sm:$0xff]  ;;  %v970_v53 = vld [vmem:[%s3939_s28 + $0x7b0] sm:$0xff] }
 0x218   : > { %3726 = vmatmul.msk.f32.gmra.mxu3 %vm988_vm1, %v970_v53  ;;  %v790_v53 = vld [vmem:[%s3939_s28 + $0x210] sm:$0xff] }
 0x219   : > { %2862 = vmatpush.msrb.mxu3 %v2589_v33  ;;  %v4743_v55 = vpop.f32.mrf.mxu2 }
 0x21a   : > { %5666 = vst [vmem:[#allocation58_spill] sm:$0xff] %v4743_v55  ;;  %v979_v55 = vld [vmem:[%s3939_s28 + $0x7f8] sm:$0xff] }
 0x21b   : > { %2863 = vmatpush.msrb.mxu3 %v2588_v22  ;;  %v4749_v33 = vpop.f32.mrf.mxu1  ;;  %v845_v22 = vld [vmem:[%s3939_s28 + $0x3c8] sm:$0xff]  ;;  %v4753_v54 = vpop.f32.mrf.mxu3 }
 0x21c   : > { %v4737_v39 = vpop.f32.mrf.mxu0  ;;  %3601 = vmatmul.msk.f32.gmra.mxu1 %vm988_vm1, %v845_v22  ;;  %5667 = vst [vmem:[#allocation59_spill] sm:$0xff] %v4753_v54 }
 0x21d   : > { %2864 = vmatpush.msrb.mxu3 %v2587_v62  ;;  %v909_v62 = vld [vmem:[%s3939_s28 + $0x5c8] sm:$0xff] }
 0x21e   : > { %3665 = vmatmul.msk.f32.gmra.mxu2 %vm988_vm1, %v909_v62  ;;  %v846_v62 = vld [vmem:[%s3939_s28 + $0x3d0] sm:$0xff] }
 0x21f   : > { %3545 = vmatmul.msk.f32.gmra.mxu0 %vm988_vm1, %v789_v37  ;;  %2865 = vmatpush.msrb.mxu3 %v2586_v56  ;;  %v971_v56 = vld [vmem:[%s3939_s28 + $0x7b8] sm:$0xff]  ;;  %v3242_v22 = vpop.xlane.xlu1 %3241 }
 0x220   : > { %3727 = vmatmul.msk.f32.gmra.mxu3 %vm988_vm1, %v971_v56  ;;  %v2580_v56 = vmax.f32 %v1881_v9, 0.0 }
 0x221   : > { %2866 = vmatpush.msrb.mxu3 %v2585_v52  ;;  %v4767_v44 = vpop.f32.mrf.mxu2  ;;  %v3243_v52 = vrot.slane %v3242_v22, 4 }
 0x222   : > { %5668 = vst [vmem:[#allocation60_spill] sm:$0xff] %v4767_v44  ;;  %v800_v44 = vld [vmem:[%s3939_s28 + $0x260] sm:$0xff] }
 0x223   : > { %2867 = vmatpush.msrb.mxu3 %v2584_v59  ;;  %v4773_v59 = vpop.f32.mrf.mxu1  ;;  %v3244_v30 = vadd.f32 %v3243_v52, %v3242_v22  ;;  %v4777_v0 = vpop.f32.mrf.mxu3 }
 0x224   : > { %v4761_v37 = vpop.f32.mrf.mxu0  ;;  %3602 = vmatmul.msk.f32.gmra.mxu1 %vm988_vm1, %v846_v62  ;;  %5669 = vst [vmem:[#allocation61_spill] sm:$0xff] %v4777_v0  ;;  %v791_v62 = vld [vmem:[%s3939_s28 + $0x218] sm:$0xff]  ;;  %v797_v0 = vld [vmem:[%s3939_s28 + $0x248] sm:$0xff] }
 0x225   : > { %2868 = vmatpush.msrb.mxu3 %v2583_v57  ;;  %v1875_v57 = vadd.f32 %v4693_v27, %v4417_v23  ;;  %v3245_v26 = vrot.slane %v3244_v30, 2  ;;  %v972_v23 = vld [vmem:[%s3939_s28 + $0x7c0] sm:$0xff] }
 0x226   : > { %3666 = vmatmul.msk.f32.gmra.mxu2 %vm988_vm1, %v910_v6  ;;  %v911_v6 = vld [vmem:[%s3939_s28 + $0x5d8] sm:$0xff] }
 0x227   : > { %3546 = vmatmul.msk.f32.gmra.mxu0 %vm988_vm1, %v790_v53  ;;  %2869 = vmatpush.msrb.mxu3 %v2582_v19  ;;  %v2579_v53 = vmax.f32 %v1878_v61, 0.0  ;;  %v3246_v22 = vadd.f32 %v3245_v26, %v3244_v30  ;;  %v2061_v19 = vadd.f32 %v4693_v27, %v4558_v63  ;;  %v2578_v9 = vmax.f32 %v1875_v57, 0.0  ;;  %v847_v26 = vld [vmem:[%s3939_s28 + $0x3d8] sm:$0xff] }
 0x228   : > { %3728 = vmatmul.msk.f32.gmra.mxu3 %vm988_vm1, %v972_v23  ;;  %v2055_v30 = vadd.f32 %v4693_v27, %v4526_v31  ;;  %v2049_v31 = vadd.f32 %v4693_v27, %v4482_v18  ;;  %v2043_v18 = vadd.f32 %v4693_v27, %v4432_v48 }
 0x229   : > { %2870 = vmatpush.msrb.mxu3 %v2581_v42  ;;  %v4791_v42 = vpop.f32.mrf.mxu2  ;;  %v3247_v54 = vrot.slane %v3246_v22, 1  ;;  %v2640_v57 = vmax.f32 %v2061_v19, 0.0  ;;  %v792_v19 = vld [vmem:[%s3939_s28 + $0x220] sm:$0xff] }
 0x22a   : > { %5670 = vst [vmem:[#allocation62_spill] sm:$0xff] %v4791_v42 }
 0x22b   : > { %2871 = vmatpush.msrb.mxu3 %v2580_v56  ;;  %v2641_v56 = vmax.f32 %v2064_v38, 0.0  ;;  %v4797_v63 = vpop.f32.mrf.mxu1  ;;  %v3248_v61 = vadd.f32 %v3247_v54, %v3246_v22  ;;  %v4803_v11 = vpop.f32.mrf.mxu3  ;;  %v2052_v38 = vadd.f32 %v4693_v27, %v4507_v50  ;;  %v2638_v54 = vmax.f32 %v2055_v30, 0.0 }
 0x22c   : > { %v4787_v52 = vpop.f32.mrf.mxu0  ;;  %3603 = vmatmul.msk.f32.gmra.mxu1 %vm988_vm1, %v847_v26  ;;  %5671 = vst [vmem:[#allocation63_spill] sm:$0xff] %v4803_v11  ;;  %v2046_v50 = vadd.f32 %v4693_v27, %v4457_v3  ;;  %v2636_v26 = vmax.f32 %v2049_v31, 0.0  ;;  %v912_v3 = vld [vmem:[%s3939_s28 + $0x5e0] sm:$0xff]  ;;  %v2040_v30 = vadd.f32 %v4693_v27, %v4405_v1  ;;  %v974_v31 = vld [vmem:[%s3939_s28 + $0x7d0] sm:$0xff]  ;;  %v2034_v1 = vadd.f32 %v4693_v27, %v4374_v8  ;;  %v913_v8 = vld [vmem:[%s3939_s28 + $0x5e8] sm:$0xff] }
 0x22d   : > { %2872 = vmatpush.msrb.mxu3 %v2579_v53  ;;  %3755 = vpush %v3248_v61  ;;  %v2639_v53 = vmax.f32 %v2058_v5, 0.0 }
 0x22e   : > { %3667 = vmatmul.msk.f32.gmra.mxu2 %vm988_vm1, %v911_v6  ;;  %v2037_v6 = vadd.f32 %v4693_v27, %v4388_v40  ;;  %v2031_v40 = vadd.f32 %v4693_v27, %v4360_v43 }
 0x22f   : > { %3547 = vmatmul.msk.f32.gmra.mxu0 %vm988_vm1, %v791_v62  ;;  %2873 = vmatpush.msrb.mxu3 %v2578_v9  ;;  %v973_v62 = vld [vmem:[%s3939_s28 + $0x7c8] sm:$0xff]  ;;  %v2637_v9 = vmax.f32 %v2052_v38, 0.0  ;;  %v2634_v38 = vmax.f32 %v2043_v18, 0.0  ;;  %v2028_v18 = vadd.f32 %v4693_v27, %v4346_v36  ;;  %v2022_v36 = vadd.f32 %v4693_v27, %v4314_v24  ;;  %v914_v24 = vld [vmem:[%s3939_s28 + $0x5f0] sm:$0xff] }
 0x230   : > { %3729 = vmatmul.msk.f32.gmra.mxu3 %vm988_vm1, %v973_v62 }
 0x231   : > { %2918 = vmatpush.msra.mxu3 %v2641_v56  ;;  %v4815_v23 = vpop.f32.mrf.mxu2  ;;  %v848_v56 = vld [vmem:[%s3939_s28 + $0x3e0] sm:$0xff] }
 0x232   : > { %5672 = vst [vmem:[#allocation64_spill] sm:$0xff] %v4815_v23  ;;  %v857_v23 = vld [vmem:[%s3939_s28 + $0x428] sm:$0xff] }
 0x233   : > { %2919 = vmatpush.msra.mxu3 %v2640_v57  ;;  %v4820_v5 = vpop.f32.mrf.mxu1  ;;  %v4827_v61 = vpop.f32.mrf.mxu3  ;;  %v2635_v57 = vmax.f32 %v2046_v50, 0.0  ;;  %v849_v50 = vld [vmem:[%s3939_s28 + $0x3e8] sm:$0xff] }
 0x234   : > { %v4811_v22 = vpop.f32.mrf.mxu0  ;;  %3604 = vmatmul.msk.f32.gmra.mxu1 %vm988_vm1, %v848_v56  ;;  %5673 = vst [vmem:[#allocation65_spill] sm:$0xff] %v4827_v61 }
 0x235   : > { %2920 = vmatpush.msra.mxu3 %v2639_v53  ;;  %v793_v53 = vld [vmem:[%s3939_s28 + $0x228] sm:$0xff] }
 0x236   : > { %3668 = vmatmul.msk.f32.gmra.mxu2 %vm988_vm1, %v912_v3  ;;  %v2025_v3 = vadd.f32 %v4693_v27, %v4330_v10  ;;  %v850_v10 = vld [vmem:[%s3939_s28 + $0x3f0] sm:$0xff] }
 0x237   : > { %2921 = vmatpush.msra.mxu3 %v2638_v54  ;;  %3548 = vmatmul.msk.f32.gmra.mxu0 %vm988_vm1, %v792_v19  ;;  %v2633_v19 = vmax.f32 %v2040_v30, 0.0  ;;  %v2630_v30 = vmax.f32 %v2031_v40, 0.0 }
 0x238   : > { %3730 = vmatmul.msk.f32.gmra.mxu3 %vm988_vm1, %v974_v31 }
 0x239   : > { %2922 = vmatpush.msra.mxu3 %v2637_v9  ;;  %v4839_v54 = vpop.f32.mrf.mxu2  ;;  %v2632_v9 = vmax.f32 %v2037_v6, 0.0  ;;  %v975_v6 = vld [vmem:[%s3939_s28 + $0x7d8] sm:$0xff] }
 0x23a   : > { %5674 = vst [vmem:[#allocation66_spill] sm:$0xff] %v4839_v54  ;;  %v802_v54 = vld [vmem:[%s3939_s28 + $0x270] sm:$0xff] }
 0x23b   : > { %2923 = vmatpush.msra.mxu3 %v2636_v26  ;;  %v4844_v62 = vpop.f32.mrf.mxu1  ;;  %v4851_v56 = vpop.f32.mrf.mxu3  ;;  %v2631_v26 = vmax.f32 %v2034_v1, 0.0  ;;  %v2628_v1 = vmax.f32 %v2025_v3, 0.0  ;;  %v851_v3 = vld [vmem:[%s3939_s28 + $0x3f8] sm:$0xff] }
 0x23c   : > { %v4835_v48 = vpop.f32.mrf.mxu0  ;;  %3605 = vmatmul.msk.f32.gmra.mxu1 %vm988_vm1, %v849_v50  ;;  %5675 = vst [vmem:[#allocation67_spill] sm:$0xff] %v4851_v56  ;;  %v2627_v50 = vmax.f32 %v2022_v36, 0.0 }
 0x23d   : > { %2924 = vmatpush.msra.mxu3 %v2635_v57  ;;  %v794_v57 = vld [vmem:[%s3939_s28 + $0x230] sm:$0xff] }
 0x23e   : > { %3669 = vmatmul.msk.f32.gmra.mxu2 %vm988_vm1, %v913_v8  ;;  %v976_v8 = vld [vmem:[%s3939_s28 + $0x7e0] sm:$0xff] }
 0x23f   : > { %2925 = vmatpush.msra.mxu3 %v2634_v38  ;;  %3549 = vmatmul.msk.f32.gmra.mxu0 %vm988_vm1, %v793_v53  ;;  %v2629_v53 = vmax.f32 %v2028_v18, 0.0 }
 0x240   : > { %3731 = vmatmul.msk.f32.gmra.mxu3 %vm988_vm1, %v975_v6  ;;  %v3812_v6 = vmov 1024.0  }
 0x241   : > { %2926 = vmatpush.msra.mxu3 %v2633_v19  ;;  %v4863_v38 = vpop.f32.mrf.mxu2  ;;  %3791 = vrcp.f32 %v3812_v6 }
 0x242   : > { %5676 = vst [vmem:[#allocation68_spill] sm:$0xff] %v4863_v38 }
 0x243   : > { %2927 = vmatpush.msra.mxu3 %v2632_v9  ;;  %v4868_v31 = vpop.f32.mrf.mxu1  ;;  %v4873_v19 = vpop.f32.mrf.mxu3  ;;  %v795_v9 = vld [vmem:[%s3939_s28 + $0x238] sm:$0xff] }
 0x244   : > { %v4859_v43 = vpop.f32.mrf.mxu0  ;;  %3606 = vmatmul.msk.f32.gmra.mxu1 %vm988_vm1, %v850_v10  ;;  %5677 = vst [vmem:[#allocation69_spill] sm:$0xff] %v4873_v19  ;;  %v977_v10 = vld [vmem:[%s3939_s28 + $0x7e8] sm:$0xff] }
 0x245   : > { %2928 = vmatpush.msra.mxu3 %v2631_v26 }
 0x246   : > { %3670 = vmatmul.msk.f32.gmra.mxu2 %vm988_vm1, %v914_v24 }
 0x247   : > { %2929 = vmatpush.msra.mxu3 %v2630_v30  ;;  %3550 = vmatmul.msk.f32.gmra.mxu0 %vm988_vm1, %v794_v57  ;;  %v915_v57 = vld [vmem:[%s3939_s28 + $0x5f8] sm:$0xff] }
 0x248   : > { %3732 = vmatmul.msk.f32.gmra.mxu3 %vm988_vm1, %v976_v8  ;;  %v3792_v8 = vpop.eup %3791 }
 0x249   : > { %2930 = vmatpush.msra.mxu3 %v2629_v53  ;;  %v4881_v18 = vpop.f32.mrf.mxu2  ;;  %v796_v53 = vld [vmem:[%s3939_s28 + $0x240] sm:$0xff]  ;;  %vm3256_vm9 = vweird.f32 %v3792_v8 }
 0x24a   : > { %5678 = vst [vmem:[#allocation70_spill] sm:$0xff] %v4881_v18  ;;  %v803_v18 = vld [vmem:[%s3939_s28 + $0x278] sm:$0xff] }
 0x24b   : > { %2931 = vmatpush.msra.mxu3 %v2628_v1  ;;  %v4884_v26 = vpop.f32.mrf.mxu1  ;;  %v4889_v30 = vpop.f32.mrf.mxu3 }
 0x24c   : > { %v4877_v40 = vpop.f32.mrf.mxu0  ;;  %3607 = vmatmul.msk.f32.gmra.mxu1 %vm988_vm1, %v851_v3  ;;  %5679 = vst [vmem:[#allocation71_spill] sm:$0xff] %v4889_v30  ;;  %v916_v3 = vld [vmem:[%s3939_s28 + $0x600] sm:$0xff]  ;;  %v798_v30 = vld [vmem:[%s3939_s28 + $0x250] sm:$0xff] }
 0x24d   : > { %2932 = vmatpush.msra.mxu3 %v2627_v50  ;;  %v852_v50 = vld [vmem:[%s3939_s28 + $0x400] sm:$0xff] }
 0x24e   : > { %3671 = vmatmul.msk.f32.gmra.mxu2 %vm988_vm1, %v915_v57  ;;  %v3252_v57 = vmul.f32 1024.0, %v3792_v8 }
 0x24f   : > { %3551 = vmatmul.msk.f32.gmra.mxu0 %vm988_vm1, %v795_v9 }
 0x250   : > { %3733 = vmatmul.msk.f32.gmra.mxu3 %vm988_vm1, %v977_v10  ;;  %v3253_v11 = vsub.f32 1.0, %v3252_v57 }
 0x251   : > { %v4897_v1 = vpop.f32.mrf.mxu2 }
 0x252   : > { %5680 = vst [vmem:[#allocation72_spill] sm:$0xff] %v4897_v1  ;;  %v3254_v56 = vmul.f32 %v3792_v8, %v3253_v11 }
 0x253   : > { %v4900_v24 = vpop.f32.mrf.mxu1  ;;  %v4905_v9 = vpop.f32.mrf.mxu3 }
 0x254   : > { %v4893_v36 = vpop.f32.mrf.mxu0  ;;  %5681 = vst [vmem:[#allocation73_spill] sm:$0xff] %v4900_v24  ;;  %3608 = vmatmul.msk.f32.gmra.mxu1 %vm988_vm1, %v852_v50  ;;  %v853_v50 = vld [vmem:[%s3939_s28 + $0x408] sm:$0xff]  ;;  %v3255_v19 = vadd.f32 %v3792_v8, %v3254_v56 }
 0x255   : > { %5682 = vst [vmem:[#allocation74_spill] sm:$0xff] %v4905_v9  ;;  %v855_v9 = vld [vmem:[%s3939_s28 + $0x418] sm:$0xff] }
 0x256   : > { %3672 = vmatmul.msk.f32.gmra.mxu2 %vm988_vm1, %v916_v3  ;;  %v4925_v11 = vsel %vm3256_vm9, %v3792_v8, %v3255_v19  ;;  %v854_v19 = vld [vmem:[%s3939_s28 + $0x410] sm:$0xff] }
 0x257   : > { %3552 = vmatmul.msk.f32.gmra.mxu0 %vm988_vm1, %v796_v53  ;;  %v978_v53 = vld [vmem:[%s3939_s28 + $0x7f0] sm:$0xff]  ;;  %5686 = vst [vmem:[#allocation78_spill] sm:$0xff] %v4925_v11 }
 0x258   : > { %3734 = vmatmul.msk.f32.gmra.mxu3 %vm988_vm1, %v978_v53 }
 0x259   : > { %v4913_v61 = vpop.f32.mrf.mxu2 }
 0x25a   : > { %5683 = vst [vmem:[#allocation75_spill] sm:$0xff] %v4913_v61 }
 0x25b   : > { %v4916_v10 = vpop.f32.mrf.mxu1  ;;  %v4921_v3 = vpop.f32.mrf.mxu3 }
 0x25c   : > { %v4909_v6 = vpop.f32.mrf.mxu0  ;;  %5684 = vst [vmem:[#allocation76_spill] sm:$0xff] %v4916_v10  ;;  %3609 = vmatmul.msk.f32.gmra.mxu1 %vm988_vm1, %v853_v50 }
 0x25d   : > { %5685 = vst [vmem:[#allocation77_spill] sm:$0xff] %v4921_v3  ;;  %v856_v3 = vld [vmem:[%s3939_s28 + $0x420] sm:$0xff] }
 0x25e   : > { %3673 = vmatmul.msk.f32.gmra.mxu2 %vm988_vm1, %v917_v20  ;;  %s3756_s27 = spop %3755 }
 0x25f   : > { %3553 = vmatmul.msk.f32.gmra.mxu0 %vm988_vm1, %v797_v0  ;;  %v3250_v57 = vstv %s3756_s27 }
 0x260   : > { %v3258_v53 = vmul.f32 %v4925_v11, %v3250_v57  ;;  %3735 = vmatmul.msk.f32.gmra.mxu3 %vm988_vm1, %v979_v55 }
 0x261   : > { %v4932_v50 = vpop.f32.mrf.mxu2 }
 0x262   : > { %5687 = vst [vmem:[#allocation79_spill] sm:$0xff] %v4932_v50  ;;  %v4935_v56 = vsub.f32 %v4510_v34, %v3258_v53  ;;  %v799_v34 = vld [vmem:[%s3939_s28 + $0x258] sm:$0xff] }
 0x263   : > { %v4938_v20 = vpop.f32.mrf.mxu1  ;;  %v4943_v8 = vpop.f32.mrf.mxu3 }
 0x264   : > { %v4927_v0 = vpop.f32.mrf.mxu0  ;;  %5688 = vst [vmem:[#allocation80_spill] sm:$0xff] %v4935_v56  ;;  %3610 = vmatmul.msk.f32.gmra.mxu1 %vm988_vm1, %v854_v19  ;;  %v3260_v57 = vmul.f32 %v4935_v56, %v4935_v56 }
 0x265   : > { %5689 = vst [vmem:[#allocation81_spill] sm:$0xff] %v4938_v20 }
 0x266   : > { %5690 = vst [vmem:[#allocation82_spill] sm:$0xff] %v4943_v8  ;;  %3261 = vadd.xlane.f32.xlu2 %v3260_v57  ;;  %v801_v8 = vld [vmem:[%s3939_s28 + $0x268] sm:$0xff] }
 0x267   : > { %3554 = vmatmul.msk.f32.gmra.mxu0 %vm988_vm1, %v798_v30 }
 0x269   : > { %v4948_v53 = vpop.f32.mrf.mxu2 }
 0x26a   : > { %5691 = vst [vmem:[#allocation83_spill] sm:$0xff] %v4948_v53  ;;  %v858_v53 = vld [vmem:[%s3939_s28 + $0x430] sm:$0xff] }
 0x26b   : > { %v4951_v30 = vpop.f32.mrf.mxu1  ;;  %v4955_v55 = vpop.f32.mrf.mxu3 }
 0x26c   : > { %v1955_v11 = vpop.f32.mrf.mxu0  ;;  %5692 = vst [vmem:[#allocation84_spill] sm:$0xff] %v4951_v30  ;;  %3611 = vmatmul.msk.f32.gmra.mxu1 %vm988_vm1, %v855_v9  ;;  %v1953_v30 = vadd.f32 %v4693_v27, %v4927_v0 }
 0x26f   : > { %3555 = vmatmul.msk.f32.gmra.mxu0 %vm988_vm1, %v799_v34 }
 0x271   : > { %v4958_v56 = vpop.f32.mrf.mxu2 }
 0x272   : > { %5693 = vst [vmem:[#allocation85_spill] sm:$0xff] %v4958_v56 }
 0x273   : > { %v4961_v57 = vpop.f32.mrf.mxu1  ;;  %v4965_v34 = vpop.f32.mrf.mxu3 }
 0x274   : > { %v1958_v19 = vpop.f32.mrf.mxu0  ;;  %5694 = vst [vmem:[#allocation86_spill] sm:$0xff] %v4961_v57  ;;  %3612 = vmatmul.msk.f32.gmra.mxu1 %vm988_vm1, %v856_v3 }
 0x277   : > { %3556 = vmatmul.msk.f32.gmra.mxu0 %vm988_vm1, %v800_v44 }
 0x279   : > { %v4968_v9 = vpop.f32.mrf.mxu2 }
 0x27a   : > { %5695 = vst [vmem:[#allocation87_spill] sm:$0xff] %v4968_v9 }
 0x27b   : > { %v4971_v61 = vpop.f32.mrf.mxu1  ;;  %v4975_v44 = vpop.f32.mrf.mxu3 }
 0x27c   : > { %v1961_v42 = vpop.f32.mrf.mxu0  ;;  %5696 = vst [vmem:[#allocation88_spill] sm:$0xff] %v4971_v61  ;;  %3613 = vmatmul.msk.f32.gmra.mxu1 %vm988_vm1, %v857_v23 }
 0x27d   : > { %v1962_v1 = vadd.f32 %v4693_v27, %v1961_v42 }
 0x27f   : > { %3557 = vmatmul.msk.f32.gmra.mxu0 %vm988_vm1, %v801_v8  ;;  %v2607_v20 = vmax.f32 %v1962_v1, 0.0  ;;  %v1947_v1 = vadd.f32 %v4693_v27, %v4893_v36  ;;  %v1938_v36 = vadd.f32 %v4693_v27, %v4835_v48 }
 0x281   : > { %v4982_v38 = vpop.f32.mrf.mxu2 }
 0x282   : > { %5698 = vst [vmem:[#allocation90_spill] sm:$0xff] %v4982_v38  ;;  %v1959_v38 = vadd.f32 %v4693_v27, %v1958_v19  ;;  %v1950_v19 = vadd.f32 %v4693_v27, %v4909_v6  ;;  %v1941_v6 = vadd.f32 %v4693_v27, %v4859_v43  ;;  %v2599_v43 = vmax.f32 %v1938_v36, 0.0 }
 0x283   : > { %v4979_v3 = vpop.f32.mrf.mxu1  ;;  %v4985_v56 = vpop.f32.mrf.mxu3 }
 0x284   : > { %v1964_v50 = vpop.f32.mrf.mxu0  ;;  %5697 = vst [vmem:[#allocation89_spill] sm:$0xff] %v4979_v3  ;;  %3614 = vmatmul.msk.f32.gmra.mxu1 %vm988_vm1, %v858_v53  ;;  %v2802_v53 = vld [vmem:[%s5586_s7] sm:$0xff]  ;;  %v2606_v57 = vmax.f32 %v1959_v38, 0.0  ;;  %v2603_v0 = vmax.f32 %v1950_v19, 0.0  ;;  %v1932_v19 = vadd.f32 %v4693_v27, %v4787_v52  ;;  %v1923_v52 = vadd.f32 %v4693_v27, %v4713_v47 }
 0x285   : > { %v1965_v9 = vadd.f32 %v4693_v27, %v1964_v50 }
 0x287   : > { %3558 = vmatmul.msk.f32.gmra.mxu0 %vm988_vm1, %v802_v54  ;;  %v2608_v10 = vmax.f32 %v1965_v9, 0.0  ;;  %v1944_v9 = vadd.f32 %v4693_v27, %v4877_v40  ;;  %v1935_v40 = vadd.f32 %v4693_v27, %v4811_v22  ;;  %v2597_v22 = vmax.f32 %v1932_v19, 0.0  ;;  %v2805_v19 = vld [vmem:[%s5586_s7 + $0x18] sm:$0xff] }
 0x289   : > { %v4998_v50 = vpop.f32.mrf.mxu2  ;;  %v2598_v48 = vmax.f32 %v1935_v40, 0.0  ;;  %v2594_v40 = vmax.f32 %v1923_v52, 0.0 }
 0x28a   : > { %5699 = vst [vmem:[#allocation91_spill] sm:$0xff] %v4998_v50 }
 0x28b   : > { %v4992_v54 = vpop.f32.mrf.mxu1 }
 0x28c   : > { %v1967_v8 = vpop.f32.mrf.mxu0  ;;  %2834 = vmatmul.f32.vlgmr.msrb.gmra.mxu1 %v2802_v53 }
 0x28d   : > { %v1968_v23 = vadd.f32 %v4693_v27, %v1967_v8  ;;  %v1956_v8 = vadd.f32 %v4693_v27, %v1955_v11 }
 0x28f   : > { %v2609_v24 = vmax.f32 %v1968_v23, 0.0  ;;  %3559 = vmatmul.msk.f32.gmra.mxu0 %vm988_vm1, %v803_v18  ;;  %v804_v18 = vld [vmem:[%s3939_s28 + $0x280] sm:$0xff]  ;;  %v5004_v23 = vpop.f32.mrf.mxu3 }
 0x291   : > { %2878 = vmatpush.msra.mxu1 %v2609_v24  ;;  %v2605_v24 = vmax.f32 %v1956_v8, 0.0  ;;  %v5017_v38 = vpop.f32.mrf.mxu2 }
 0x292   : > { %5700 = vst [vmem:[#allocation92_spill] sm:$0xff] %v5017_v38 }
 0x293   : > { %2879 = vmatpush.msra.mxu1 %v2608_v10  ;;  %v5011_v11 = vpop.f32.mrf.mxu1  ;;  %v2604_v10 = vmax.f32 %v1953_v30, 0.0  ;;  %v2601_v30 = vmax.f32 %v1944_v9, 0.0  ;;  %v1926_v9 = vadd.f32 %v4693_v27, %v4737_v39 }
 0x294   : > { %v5001_v42 = vpop.f32.mrf.mxu0 }
 0x295   : > { %2880 = vmatpush.msra.mxu1 %v2607_v20  ;;  %v2595_v36 = vmax.f32 %v1926_v9, 0.0 }
 0x297   : > { %3560 = vmatmul.msk.f32.gmra.mxu0 %vm988_vm1, %v804_v18  ;;  %2881 = vmatpush.msra.mxu1 %v2606_v57  ;;  %v2602_v57 = vmax.f32 %v1947_v1, 0.0  ;;  %v5023_v53 = vpop.f32.mrf.mxu3  ;;  %v2600_v18 = vmax.f32 %v1941_v6, 0.0  ;;  %v1929_v1 = vadd.f32 %v4693_v27, %v4761_v37  ;;  %v2112_v37 = vadd.f32 %v4693_v27, %v4884_v26 }
 0x298   : > { %v2103_v26 = vadd.f32 %v4693_v27, %v4820_v5  ;;  %v2094_v5 = vadd.f32 %v4693_v27, %v4749_v33 }
 0x299   : > { %2882 = vmatpush.msra.mxu1 %v2605_v24  ;;  %v2596_v6 = vmax.f32 %v1929_v1, 0.0  ;;  %v2657_v47 = vmax.f32 %v2112_v37, 0.0 }
 0x29a   : > { %v2654_v52 = vmax.f32 %v2103_v26, 0.0 }
 0x29b   : > { %2883 = vmatpush.msra.mxu1 %v2604_v10  ;;  %v5027_v8 = vpop.f32.mrf.mxu1  ;;  %v5037_v10 = vpop.f32.mrf.mxu2 }
 0x29c   : > { %v5019_v20 = vpop.f32.mrf.mxu0  ;;  %5701 = vst [vmem:[#allocation93_spill] sm:$0xff] %v5037_v10 }
 0x29d   : > { %2884 = vmatpush.msra.mxu1 %v2603_v0 }
 0x29f   : > { %2885 = vmatpush.msra.mxu1 %v2602_v57  ;;  %v5041_v0 = vpop.f32.mrf.mxu3 }
 0x2a1   : > { %2886 = vmatpush.msra.mxu1 %v2601_v30  ;;  %v2109_v30 = vadd.f32 %v4693_v27, %v4868_v31  ;;  %v2100_v31 = vadd.f32 %v4693_v27, %v4797_v63  ;;  %v2091_v63 = vadd.f32 %v4693_v27, %v4725_v7  ;;  %v2082_v7 = vadd.f32 %v4693_v27, %v4666_v46 }
 0x2a2   : > { %v2070_v46 = vadd.f32 %v4693_v27, %v4606_v2 }
 0x2a3   : > { %2887 = vmatpush.msra.mxu1 %v2600_v18  ;;  %v5045_v57 = vpop.f32.mrf.mxu1  ;;  %v2106_v18 = vadd.f32 %v4693_v27, %v4844_v62  ;;  %v2656_v1 = vmax.f32 %v2109_v30, 0.0  ;;  %v2653_v37 = vmax.f32 %v2100_v31, 0.0 }
 0x2a4   : > { %v5033_v24 = vpop.f32.mrf.mxu0 }
 0x2a5   : > { %2888 = vmatpush.msra.mxu1 %v2599_v43  ;;  %v5058_v43 = vpop.f32.mrf.mxu2 }
 0x2a6   : > { %5702 = vst [vmem:[#allocation94_spill] sm:$0xff] %v5058_v43 }
 0x2a7   : > { %2889 = vmatpush.msra.mxu1 %v2598_v48  ;;  %v2655_v48 = vmax.f32 %v2106_v18, 0.0  ;;  %v5064_v62 = vpop.f32.mrf.mxu3  ;;  %v2085_v18 = vadd.f32 %v4693_v27, %v4680_v58  ;;  %v2076_v58 = vadd.f32 %v4693_v27, %v4638_v17  ;;  %v2067_v17 = vadd.f32 %v4693_v27, %v4590_v45  ;;  %v2808_v45 = vld [vmem:[%s5586_s7 + $0x30] sm:$0xff] }
 0x2a9   : > { %2890 = vmatpush.msra.mxu1 %v2597_v22  ;;  %v2097_v22 = vadd.f32 %v4693_v27, %v4773_v59  ;;  %v2651_v59 = vmax.f32 %v2094_v5, 0.0  ;;  %v2648_v31 = vmax.f32 %v2085_v18, 0.0  ;;  %v2253_v18 = vadd.f32 %v4693_v27, %v4570_v21 }
 0x2aa   : > { %v2642_v2 = vmax.f32 %v2067_v17, 0.0  ;;  %v2235_v17 = vadd.f32 %v4693_v27, %v4450_v29  ;;  %v2226_v29 = vadd.f32 %v4693_v27, %v4384_v35 }
 0x2ab   : > { %2891 = vmatpush.msra.mxu1 %v2596_v6  ;;  %v5066_v9 = vpop.f32.mrf.mxu1 }
 0x2ac   : > { %v5051_v39 = vpop.f32.mrf.mxu0 }
 0x2ad   : > { %2892 = vmatpush.msra.mxu1 %v2595_v36  ;;  %v2652_v36 = vmax.f32 %v2097_v22, 0.0  ;;  %v5076_v30 = vpop.f32.mrf.mxu2 }
 0x2ae   : > { %5703 = vst [vmem:[#allocation95_spill] sm:$0xff] %v5076_v30 }
 0x2af   : > { %2893 = vmatpush.msra.mxu1 %v2594_v40  ;;  %v2088_v40 = vadd.f32 %v4693_v27, %v4702_v13  ;;  %v5084_v33 = vpop.f32.mrf.mxu3  ;;  %v2079_v13 = vadd.f32 %v4693_v27, %v4652_v12  ;;  %v2645_v12 = vmax.f32 %v2076_v58, 0.0  ;;  %v2244_v58 = vadd.f32 %v4693_v27, %v4522_v28 }
 0x2b0   : > { %2894 = vmatmul.f32.vlgmr.msra.gmra.mxu1 %v2805_v19 }
 0x2b1   : > { %2938 = vmatpush.msrb.mxu1 %v2657_v47  ;;  %v2650_v47 = vmax.f32 %v2091_v63, 0.0  ;;  %v2646_v5 = vmax.f32 %v2079_v13, 0.0 }
 0x2b3   : > { %2939 = vmatpush.msrb.mxu1 %v2656_v1  ;;  %v5086_v26 = vpop.f32.mrf.mxu1  ;;  %v2649_v1 = vmax.f32 %v2088_v40, 0.0 }
 0x2b4   : > { %v5070_v6 = vpop.f32.mrf.mxu0 }
 0x2b5   : > { %2940 = vmatpush.msrb.mxu1 %v2655_v48  ;;  %v2647_v48 = vmax.f32 %v2082_v7, 0.0  ;;  %v5094_v22 = vpop.f32.mrf.mxu2  ;;  %v2250_v7 = vadd.f32 %v4693_v27, %v4554_v16 }
 0x2b6   : > { %5704 = vst [vmem:[#allocation96_spill] sm:$0xff] %v5094_v22 }
 0x2b7   : > { %2941 = vmatpush.msrb.mxu1 %v2654_v52  ;;  %v2073_v52 = vadd.f32 %v4693_v27, %v4622_v32  ;;  %v5102_v63 = vpop.f32.mrf.mxu3  ;;  %v2256_v32 = vadd.f32 %v4693_v27, %v4586_v14  ;;  %v2247_v14 = vadd.f32 %v4693_v27, %v4538_v51  ;;  %v2703_v16 = vmax.f32 %v2250_v7, 0.0 }
 0x2b8   : > { %v2238_v51 = vadd.f32 %v4693_v27, %v4475_v15  ;;  %v2698_v15 = vmax.f32 %v2235_v17, 0.0 }
 0x2b9   : > { %2942 = vmatpush.msrb.mxu1 %v2653_v37  ;;  %v2644_v40 = vmax.f32 %v2073_v52, 0.0  ;;  %v2241_v52 = vadd.f32 %v4693_v27, %v4503_v60 }
 0x2ba   : > { %v2699_v60 = vmax.f32 %v2238_v51, 0.0  ;;  %v5705_v51 = vld [vmem:[#allocation27_spill] sm:$0xff] }
 0x2bb   : > { %2943 = vmatpush.msrb.mxu1 %v2652_v36  ;;  %v5104_v36 = vpop.f32.mrf.mxu1  ;;  %v2700_v28 = vmax.f32 %v2241_v52, 0.0  ;;  %v2217_v35 = vadd.f32 %v4693_v27, %v5705_v51 }
 0x2bc   : > { %v5082_v19 = vpop.f32.mrf.mxu0 }
 0x2bd   : > { %2944 = vmatpush.msrb.mxu1 %v2651_v59  ;;  %v2643_v59 = vmax.f32 %v2070_v46, 0.0  ;;  %v5119_v13 = vpop.f32.mrf.mxu2 }
 0x2bf   : > { %2945 = vmatpush.msrb.mxu1 %v2650_v47  ;;  %v5123_v21 = vpop.f32.mrf.mxu3 }
 0x2c1   : > { %2946 = vmatpush.msrb.mxu1 %v2649_v1  ;;  %v2705_v1 = vmax.f32 %v2256_v32, 0.0  ;;  %v2232_v32 = vadd.f32 %v4693_v27, %v4425_v49 }
 0x2c3   : > { %2947 = vmatpush.msrb.mxu1 %v2648_v31  ;;  %v2704_v31 = vmax.f32 %v2253_v18, 0.0  ;;  %v2229_v18 = vadd.f32 %v4693_v27, %v4400_v25  ;;  %v2220_v25 = vadd.f32 %v4693_v27, %v4356_v41 }
 0x2c4   : > { %v5098_v37 = vpop.f32.mrf.mxu0 }
 0x2c5   : > { %2948 = vmatpush.msrb.mxu1 %v2647_v48  ;;  %v5127_v48 = vpop.f32.mrf.mxu1 }
 0x2c7   : > { %2949 = vmatpush.msrb.mxu1 %v2646_v5  ;;  %v2702_v5 = vmax.f32 %v2247_v14, 0.0  ;;  %v2223_v14 = vadd.f32 %v4693_v27, %v4370_v4 }
 0x2c9   : > { %2950 = vmatpush.msrb.mxu1 %v2645_v12  ;;  %v2701_v12 = vmax.f32 %v2244_v58, 0.0 }
 0x2cb   : > { %2951 = vmatpush.msrb.mxu1 %v2644_v40  ;;  %v5137_v40 = vpop.f32.mrf.mxu2 }
 0x2cc   : > { %v5112_v47 = vpop.f32.mrf.mxu0 }
 0x2cd   : > { %2952 = vmatpush.msrb.mxu1 %v2643_v59  ;;  %v5141_v59 = vpop.f32.mrf.mxu3 }
 0x2cf   : > { %2953 = vmatpush.msrb.mxu1 %v2642_v2  ;;  %v5145_v2 = vpop.f32.mrf.mxu1 }
 0x2d0   : > { %2954 = vmatmul.f32.vlgmr.msrb.gmra.mxu1 %v2808_v45 }
 0x2d1   : > { %2998 = vmatpush.msra.mxu1 %v2705_v1  ;;  %v2697_v1 = vmax.f32 %v2232_v32, 0.0  ;;  %v5706_v32 = vld [vmem:[#allocation25_spill] sm:$0xff] }
 0x2d3   : > { %2999 = vmatpush.msra.mxu1 %v2704_v31  ;;  %v2696_v31 = vmax.f32 %v2229_v18, 0.0  ;;  %v5155_v52 = vpop.f32.mrf.mxu2  ;;  %v2693_v18 = vmax.f32 %v2220_v25, 0.0 }
 0x2d4   : > { %v5131_v46 = vpop.f32.mrf.mxu0 }
 0x2d5   : > { %3000 = vmatpush.msra.mxu1 %v2703_v16  ;;  %v2695_v16 = vmax.f32 %v2226_v29, 0.0  ;;  %v5707_v29 = vld [vmem:[#allocation23_spill] sm:$0xff] }
 0x2d7   : > { %3001 = vmatpush.msra.mxu1 %v2702_v5  ;;  %v5165_v41 = vpop.f32.mrf.mxu1 }
 0x2d9   : > { %3002 = vmatpush.msra.mxu1 %v2701_v12  ;;  %v3262_v45 = vpop.xlane.xlu2 %3261  ;;  %v2694_v12 = vmax.f32 %v2223_v14, 0.0 }
 0x2da   : > { %v3263_v49 = vrot.slane %v3262_v45, 4 }
 0x2db   : > { %3003 = vmatpush.msra.mxu1 %v2700_v28  ;;  %v5161_v28 = vpop.f32.mrf.mxu3  ;;  %v5173_v51 = vpop.f32.mrf.mxu2 }
 0x2dc   : > { %v5147_v7 = vpop.f32.mrf.mxu0  ;;  %v3264_v58 = vadd.f32 %v3263_v49, %v3262_v45  ;;  %v2692_v45 = vmax.f32 %v2217_v35, 0.0  ;;  %v5708_v49 = vld [vmem:[#allocation26_spill] sm:$0xff] }
 0x2dd   : > { %3004 = vmatpush.msra.mxu1 %v2699_v60  ;;  %v2214_v60 = vadd.f32 %v4693_v27, %v5706_v32  ;;  %v2400_v14 = vadd.f32 %v4693_v27, %v5708_v49  ;;  %v5712_v49 = vld [vmem:[#allocation18_spill] sm:$0xff] }
 0x2de   : > { %v3265_v5 = vrot.slane %v3264_v58, 2 }
 0x2df   : > { %3005 = vmatpush.msra.mxu1 %v2698_v15 }
 0x2e0   : > { %v3266_v4 = vadd.f32 %v3265_v5, %v3264_v58  ;;  %v5709_v58 = vld [vmem:[#allocation24_spill] sm:$0xff] }
 0x2e1   : > { %3006 = vmatpush.msra.mxu1 %v2697_v1  ;;  %v2211_v1 = vadd.f32 %v4693_v27, %v5707_v29  ;;  %v2397_v5 = vadd.f32 %v4693_v27, %v5709_v58  ;;  %v2753_v29 = vmax.f32 %v2400_v14, 0.0 }
 0x2e2   : > { %v3267_v15 = vrot.slane %v3266_v4, 1 }
 0x2e3   : > { %3007 = vmatpush.msra.mxu1 %v2696_v31  ;;  %v2690_v25 = vmax.f32 %v2211_v1, 0.0  ;;  %v2537_v1 = vpop.f32.mrf.mxu3 }
 0x2e4   : > { %v5159_v17 = vpop.f32.mrf.mxu0  ;;  %v3268_v31 = vadd.f32 %v3267_v15, %v3266_v4  ;;  %v2811_v4 = vld [vmem:[%s5586_s7 + $0x48] sm:$0xff]  ;;  %v2752_v15 = vmax.f32 %v2397_v5, 0.0 }
 0x2e5   : > { %3008 = vmatpush.msra.mxu1 %v2695_v16  ;;  %v2691_v16 = vmax.f32 %v2214_v60, 0.0  ;;  %v5711_v60 = vld [vmem:[#allocation20_spill] sm:$0xff] }
 0x2e6   : > { %3757 = vpush %v3268_v31  ;;  %v2388_v31 = vadd.f32 %v4693_v27, %v5712_v49 }
 0x2e7   : > { %3009 = vmatpush.msra.mxu1 %v2694_v12  ;;  %v5710_v12 = vld [vmem:[#allocation22_spill] sm:$0xff] }
 0x2e8   : > { %v2394_v32 = vadd.f32 %v4693_v27, %v5710_v12  ;;  %v5714_v12 = vld [vmem:[#allocation14_spill] sm:$0xff] }
 0x2e9   : > { %3010 = vmatpush.msra.mxu1 %v2693_v18  ;;  %v2391_v18 = vadd.f32 %v4693_v27, %v5711_v60  ;;  %v2382_v50 = vadd.f32 %v4693_v27, %v5714_v12  ;;  %v2749_v60 = vmax.f32 %v2388_v31, 0.0  ;;  %v5716_v31 = vld [vmem:[#allocation10_spill] sm:$0xff] }
 0x2ea   : > { %v2751_v14 = vmax.f32 %v2394_v32, 0.0  ;;  %v5200_v32 = vld [vmem:[%s5588_s9] ss:$0 sm:$0xff] }
 0x2eb   : > { %3011 = vmatpush.msra.mxu1 %v2692_v45  ;;  %v5184_v45 = vpop.f32.mrf.mxu1 }
 0x2ec   : > { %v5177_v35 = vpop.f32.mrf.mxu0 }
 0x2ed   : > { %3012 = vmatpush.msra.mxu1 %v2691_v16  ;;  %v5713_v16 = vld [vmem:[#allocation16_spill] sm:$0xff] }
 0x2ee   : > { %v2385_v58 = vadd.f32 %v4693_v27, %v5713_v16  ;;  %v2804_v27 = vld [vmem:[%s5586_s7 + $0x10] sm:$0xff]  ;;  %v2747_v16 = vmax.f32 %v2382_v50, 0.0 }
 0x2ef   : > { %3013 = vmatpush.msra.mxu1 %v2690_v25  ;;  %v2750_v25 = vmax.f32 %v2391_v18, 0.0  ;;  %v5715_v18 = vld [vmem:[#allocation12_spill] sm:$0xff]  ;;  %2874 = vmatmul.f32.vlgmr.msrb.gmra.mxu3 %v2804_v27 }
 0x2f0   : > { %3014 = vmatmul.f32.vlgmr.msra.gmra.mxu1 %v2811_v4  ;;  %v2354_v4 = vpop.f32.mrf.mxu2  ;;  %v2748_v49 = vmax.f32 %v2385_v58, 0.0  ;;  %v5718_v58 = vld [vmem:[#allocation6_spill] sm:$0xff]  ;;  %v5719_v27 = vld [vmem:[#allocation4_spill] sm:$0xff] }
 0x2f1   : > { %3058 = vmatpush.msrb.mxu1 %v2753_v29  ;;  %v2803_v29 = vld [vmem:[%s5586_s7 + $0x8] sm:$0xff]  ;;  %v2367_v61 = vadd.f32 %v5200_v32, %v5719_v27 }
 0x2f2   : > { %2854 = vmatmul.f32.vlgmr.msrb.gmra.mxu2 %v2803_v29  ;;  %v5717_v29 = vld [vmem:[#allocation8_spill] sm:$0xff] }
 0x2f3   : > { %3059 = vmatpush.msrb.mxu1 %v2752_v15  ;;  %v2379_v15 = vadd.f32 %v5200_v32, %v5715_v18  ;;  %v5209_v12 = vpop.f32.mrf.mxu1  ;;  %v2373_v38 = vadd.f32 %v5200_v32, %v5717_v29  ;;  %v5721_v29 = vld [vmem:[#allocation2_spill] sm:$0xff] }
 0x2f4   : > { %v5192_v5 = vpop.f32.mrf.mxu0 }
 0x2f5   : > { %3060 = vmatpush.msrb.mxu1 %v2751_v14  ;;  %v2376_v14 = vadd.f32 %v5200_v32, %v5716_v31  ;;  %v2746_v10 = vmax.f32 %v2379_v15, 0.0  ;;  %v2744_v31 = vmax.f32 %v2373_v38, 0.0  ;;  %v2361_v15 = vadd.f32 %v5200_v32, %v5721_v29 }
 0x2f6   : > { %v2355_v38 = vadd.f32 %v5200_v32, %v2354_v4 }
 0x2f7   : > { %3061 = vmatpush.msrb.mxu1 %v2750_v25  ;;  %v2540_v25 = vpop.f32.mrf.mxu3  ;;  %v2745_v18 = vmax.f32 %v2376_v14, 0.0 }
 0x2f8   : > { %v2357_v50 = vpop.f32.mrf.mxu2 }
 0x2f9   : > { %3062 = vmatpush.msrb.mxu1 %v2749_v60  ;;  %v2370_v60 = vadd.f32 %v5200_v32, %v5718_v58  ;;  %v2358_v14 = vadd.f32 %v5200_v32, %v2357_v50 }
 0x2fb   : > { %3063 = vmatpush.msrb.mxu1 %v2748_v49  ;;  %v5720_v49 = vld [vmem:[#allocation3_spill] sm:$0xff]  ;;  %v2743_v3 = vmax.f32 %v2370_v60, 0.0  ;;  %v2739_v60 = vmax.f32 %v2358_v14, 0.0 }
 0x2fc   : > { %v2009_v43 = vpop.f32.mrf.mxu0  ;;  %v2364_v30 = vadd.f32 %v5200_v32, %v5720_v49  ;;  %v2740_v49 = vmax.f32 %v2361_v15, 0.0 }
 0x2fd   : > { %3064 = vmatpush.msrb.mxu1 %v2747_v16  ;;  %v2742_v16 = vmax.f32 %v2367_v61, 0.0  ;;  %v2738_v61 = vmax.f32 %v2355_v38, 0.0 }
 0x2fe   : > { %v2741_v22 = vmax.f32 %v2364_v30, 0.0  ;;  %v2535_v30 = vadd.f32 %v5200_v32, %v5161_v28  ;;  %v2529_v28 = vadd.f32 %v5200_v32, %v5123_v21  ;;  %v5722_v21 = vld [vmem:[#allocation21_spill] sm:$0xff] }
 0x2ff   : > { %3065 = vmatpush.msrb.mxu1 %v2746_v10  ;;  %v2543_v58 = vpop.f32.mrf.mxu3  ;;  %v5222_v10 = vpop.f32.mrf.mxu1 }
 0x300   : > { %v2798_v38 = vmax.f32 %v2535_v30, 0.0 }
 0x301   : > { %3066 = vmatpush.msrb.mxu1 %v2745_v18  ;;  %v2544_v18 = vadd.f32 %v5200_v32, %v2543_v58 }
 0x303   : > { %3067 = vmatpush.msrb.mxu1 %v2744_v31  ;;  %v2541_v31 = vadd.f32 %v5200_v32, %v2540_v25  ;;  %v2801_v50 = vmax.f32 %v2544_v18, 0.0  ;;  %v2532_v25 = vadd.f32 %v5200_v32, %v5141_v59  ;;  %v2526_v59 = vadd.f32 %v5200_v32, %v5102_v63 }
 0x304   : > { %v2012_v27 = vpop.f32.mrf.mxu0 }
 0x305   : > { %3068 = vmatpush.msrb.mxu1 %v2743_v3  ;;  %v2538_v3 = vadd.f32 %v5200_v32, %v2537_v1  ;;  %v2800_v29 = vmax.f32 %v2541_v31, 0.0  ;;  %v2013_v4 = vadd.f32 %v5200_v32, %v2012_v27  ;;  %v2010_v1 = vadd.f32 %v5200_v32, %v2009_v43 }
 0x306   : > { %v2007_v27 = vadd.f32 %v5200_v32, %v5192_v5  ;;  %v2796_v31 = vmax.f32 %v2529_v28, 0.0  ;;  %v2523_v5 = vadd.f32 %v5200_v32, %v5084_v33  ;;  %v2517_v28 = vadd.f32 %v5200_v32, %v5041_v0 }
 0x307   : > { %3069 = vmatpush.msrb.mxu1 %v2742_v16  ;;  %v2799_v14 = vmax.f32 %v2538_v3, 0.0  ;;  %v2624_v18 = vmax.f32 %v2013_v4, 0.0  ;;  %v2623_v43 = vmax.f32 %v2010_v1, 0.0  ;;  %v2795_v4 = vmax.f32 %v2526_v59, 0.0 }
 0x308   : > { %v2622_v30 = vmax.f32 %v2007_v27, 0.0 }
 0x309   : > { %3070 = vmatpush.msrb.mxu1 %v2741_v22  ;;  %v5232_v22 = vpop.f32.mrf.mxu1 }
 0x30b   : > { %3071 = vmatpush.msrb.mxu1 %v2740_v49  ;;  %v2797_v49 = vmax.f32 %v2532_v25, 0.0 }
 0x30c   : > { %v2015_v16 = vpop.f32.mrf.mxu0 }
 0x30d   : > { %3072 = vmatpush.msrb.mxu1 %v2739_v60  ;;  %v2016_v15 = vadd.f32 %v5200_v32, %v2015_v16  ;;  %v2004_v60 = vadd.f32 %v5200_v32, %v5177_v35  ;;  %v5723_v35 = vld [vmem:[#allocation19_spill] sm:$0xff]  ;;  %v2520_v16 = vadd.f32 %v5200_v32, %v5064_v62 }
 0x30e   : > { %v2807_v62 = vld [vmem:[%s5586_s7 + $0x28] sm:$0xff] }
 0x30f   : > { %3073 = vmatpush.msrb.mxu1 %v2738_v61  ;;  %v2625_v58 = vmax.f32 %v2016_v15, 0.0  ;;  %v2208_v61 = vadd.f32 %v5200_v32, %v5722_v21  ;;  %v1998_v15 = vadd.f32 %v5200_v32, %v5147_v7  ;;  %v2621_v25 = vmax.f32 %v2004_v60, 0.0 }
 0x310   : > { %v1995_v7 = vadd.f32 %v5200_v32, %v5131_v46  ;;  %v2514_v60 = vadd.f32 %v5200_v32, %v5023_v53  ;;  %v2793_v0 = vmax.f32 %v2520_v16, 0.0  ;;  %v5726_v46 = vld [vmem:[#allocation13_spill] sm:$0xff]  ;;  %v5727_v53 = vld [vmem:[#allocation11_spill] sm:$0xff] }
 0x311   : > { %3118 = vmatpush.msra.mxu1 %v2801_v50  ;;  %2898 = vmatpush.msra.mxu2 %v2625_v58  ;;  %v2001_v50 = vadd.f32 %v5200_v32, %v5159_v17  ;;  %v5724_v17 = vld [vmem:[#allocation17_spill] sm:$0xff]  ;;  %v2689_v58 = vmax.f32 %v2208_v61, 0.0  ;;  %v2196_v21 = vadd.f32 %v5200_v32, %v5726_v46 }
 0x312   : > { %v2202_v1 = vadd.f32 %v5200_v32, %v5724_v17 }
 0x313   : > { %3119 = vmatpush.msra.mxu1 %v2800_v29  ;;  %2899 = vmatpush.msra.mxu2 %v2624_v18  ;;  %v2205_v29 = vadd.f32 %v5200_v32, %v5723_v35  ;;  %v2620_v27 = vmax.f32 %v2001_v50, 0.0  ;;  %v5725_v18 = vld [vmem:[#allocation15_spill] sm:$0xff]  ;;  %v2618_v50 = vmax.f32 %v1995_v7, 0.0  ;;  %v2791_v35 = vmax.f32 %v2514_v60, 0.0 }
 0x314   : > { %v2018_v3 = vpop.f32.mrf.mxu0  ;;  %v2687_v61 = vmax.f32 %v2202_v1, 0.0  ;;  %v5729_v1 = vld [vmem:[#allocation7_spill] sm:$0xff]  ;;  %v1980_v7 = vadd.f32 %v5200_v32, %v5051_v39  ;;  %v2499_v39 = vadd.f32 %v5200_v32, %v4955_v55  ;;  %v1971_v55 = vadd.f32 %v5200_v32, %v5001_v42 }
 0x315   : > { %3120 = vmatpush.msra.mxu1 %v2799_v14  ;;  %v2019_v63 = vadd.f32 %v5200_v32, %v2018_v3  ;;  %2900 = vmatpush.msra.mxu2 %v2623_v43  ;;  %v5258_v14 = vpop.f32.mrf.mxu1  ;;  %v2688_v59 = vmax.f32 %v2205_v29, 0.0  ;;  %v1992_v43 = vadd.f32 %v5200_v32, %v5112_v47  ;;  %v2792_v3 = vmax.f32 %v2517_v28, 0.0 }
 0x316   : > { %v2511_v47 = vadd.f32 %v5200_v32, %v5004_v23  ;;  %v1986_v29 = vadd.f32 %v5200_v32, %v5082_v19  ;;  %v1983_v23 = vadd.f32 %v5200_v32, %v5070_v6  ;;  %v2187_v19 = vadd.f32 %v5200_v32, %v5729_v1 }
 0x317   : > { %3121 = vmatpush.msra.mxu1 %v2798_v38  ;;  %v2626_v33 = vmax.f32 %v2019_v63, 0.0  ;;  %2901 = vmatpush.msra.mxu2 %v2622_v30  ;;  %v2794_v38 = vmax.f32 %v2523_v5, 0.0  ;;  %v1989_v5 = vadd.f32 %v5200_v32, %v5098_v37  ;;  %v2193_v30 = vadd.f32 %v5200_v32, %v5727_v53  ;;  %s5552_s26 = spop %3757 }
 0x318   : > { %v2617_v16 = vmax.f32 %v1992_v43, 0.0  ;;  %v2505_v28 = vadd.f32 %v5200_v32, %v4975_v44  ;;  %v2615_v6 = vmax.f32 %v1986_v29, 0.0  ;;  %v1977_v44 = vadd.f32 %v5200_v32, %v5033_v24 }
 0x319   : > { %3122 = vmatpush.msra.mxu1 %v2797_v49  ;;  %2902 = vmatpush.msra.mxu2 %v2621_v25  ;;  %v2199_v49 = vadd.f32 %v5200_v32, %v5725_v18  ;;  %v2508_v25 = vadd.f32 %v5200_v32, %v4985_v56  ;;  %v2502_v18 = vadd.f32 %v5200_v32, %v4965_v34  ;;  %v2614_v60 = vmax.f32 %v1983_v23, 0.0 }
 0x31a   : > { %2933 = vmatpush.msra.mxu3 %v2626_v33  ;;  %v2616_v33 = vmax.f32 %v1989_v5, 0.0  ;;  %v2788_v43 = vmax.f32 %v2505_v28, 0.0  ;;  %v1974_v34 = vadd.f32 %v5200_v32, %v5019_v20  ;;  %v2613_v46 = vmax.f32 %v1980_v7, 0.0  ;;  %v5732_v7 = vld [vmem:[#allocation89_spill] sm:$0xff] }
 0x31b   : > { %3123 = vmatpush.msra.mxu1 %v2796_v31  ;;  %v2619_v31 = vmax.f32 %v1998_v15, 0.0  ;;  %2903 = vmatpush.msra.mxu2 %v2620_v27  ;;  %v2686_v63 = vmax.f32 %v2199_v49, 0.0  ;;  %v2685_v15 = vmax.f32 %v2196_v21, 0.0  ;;  %v2789_v49 = vmax.f32 %v2508_v25, 0.0 }
 0x31c   : > { %2978 = vmatpush.msrb.mxu3 %v2689_v58  ;;  %v2684_v58 = vmax.f32 %v2193_v30, 0.0  ;;  %v2175_v24 = vadd.f32 %v5200_v32, %v5232_v22  ;;  %v2612_v5 = vmax.f32 %v1977_v44, 0.0  ;;  %v2611_v53 = vmax.f32 %v1974_v34, 0.0  ;;  %v5735_v44 = vld [vmem:[#allocation94_spill] sm:$0xff]  ;;  %v5737_v34 = vld [vmem:[#allocation93_spill] sm:$0xff] }
 0x31d   : > { %3124 = vmatpush.msra.mxu1 %v2795_v4  ;;  %2934 = vmatmul.f32.vlgmr.msra.gmra.mxu3 %v2807_v62  ;;  %v5728_v4 = vld [vmem:[#allocation9_spill] sm:$0xff]  ;;  %v2180_v17 = vpop.f32.mrf.mxu1  ;;  %v2790_v62 = vmax.f32 %v2511_v47, 0.0  ;;  %v2157_v22 = vadd.f32 %v5200_v32, %v5127_v48  ;;  %v2172_v30 = vadd.f32 %v5200_v32, %v5222_v10  ;;  %v2610_v42 = vmax.f32 %v1971_v55, 0.0  ;;  %v2806_v48 = vld [vmem:[%s5586_s7 + $0x20] sm:$0xff]  ;;  %v5739_v55 = vld [vmem:[#allocation92_spill] sm:$0xff] }
 0x31e   : > { %2979 = vmatpush.msrb.mxu3 %v2688_v59  ;;  %2904 = vmatpush.msra.mxu2 %v2619_v31  ;;  %v2190_v37 = vadd.f32 %v5200_v32, %v5728_v4  ;;  %v2181_v59 = vadd.f32 %v5200_v32, %v2180_v17  ;;  %v2178_v31 = vadd.f32 %v5200_v32, %v5258_v14 }
 0x31f   : > { %3125 = vmatpush.msra.mxu1 %v2794_v38  ;;  %v5730_v38 = vld [vmem:[#allocation5_spill] sm:$0xff]  ;;  %v2160_v14 = vadd.f32 %v5200_v32, %v5145_v2  ;;  %v2154_v2 = vadd.f32 %v5200_v32, %v5104_v36  ;;  %v2151_v10 = vadd.f32 %v5200_v32, %v5086_v26  ;;  %v2672_v29 = vmax.f32 %v2157_v22, 0.0  ;;  %v5741_v22 = vld [vmem:[#allocation91_spill] sm:$0xff] }
 0x320   : > { %2980 = vmatpush.msrb.mxu3 %v2687_v61  ;;  %2905 = vmatpush.msra.mxu2 %v2618_v50  ;;  %v2184_v56 = vadd.f32 %v5200_v32, %v5730_v38  ;;  %v2683_v27 = vmax.f32 %v2190_v37, 0.0  ;;  %v2787_v61 = vmax.f32 %v2502_v18, 0.0  ;;  %v2786_v50 = vmax.f32 %v2499_v39, 0.0  ;;  %v5731_v38 = vld [vmem:[#allocation96_spill] sm:$0xff]  ;;  %v5736_v39 = vld [vmem:[#allocation86_spill] sm:$0xff] }
 0x321   : > { %3126 = vmatpush.msra.mxu1 %v2793_v0  ;;  %v2682_v0 = vmax.f32 %v2187_v19, 0.0  ;;  %v2679_v20 = vmax.f32 %v2178_v31, 0.0  ;;  %v2673_v47 = vmax.f32 %v2160_v14, 0.0  ;;  %v2677_v4 = vmax.f32 %v2172_v30, 0.0 }
 0x322   : > { %2981 = vmatpush.msrb.mxu3 %v2686_v63  ;;  %2906 = vmatpush.msra.mxu2 %v2617_v16  ;;  %v2681_v21 = vmax.f32 %v2184_v56, 0.0  ;;  %v2678_v63 = vmax.f32 %v2175_v24, 0.0  ;;  %v2166_v16 = vadd.f32 %v5200_v32, %v5184_v45  ;;  %v2352_v36 = vadd.f32 %v5200_v32, %v5173_v51 }
 0x323   : > { %3127 = vmatpush.msra.mxu1 %v2792_v3  ;;  %v2680_v3 = vmax.f32 %v2181_v59, 0.0  ;;  %v2671_v37 = vmax.f32 %v2154_v2, 0.0  ;;  %v2349_v26 = vadd.f32 %v5200_v32, %v5155_v52  ;;  %v2145_v45 = vadd.f32 %v5200_v32, %v5045_v57  ;;  %v2810_v57 = vld [vmem:[%s5586_s7 + $0x40] sm:$0xff] }
 0x324   : > { %2982 = vmatpush.msrb.mxu3 %v2685_v15  ;;  %2907 = vmatpush.msra.mxu2 %v2616_v33  ;;  %v2163_v15 = vadd.f32 %v5200_v32, %v5165_v41  ;;  %v2670_v23 = vmax.f32 %v2151_v10, 0.0  ;;  %v2675_v33 = vmax.f32 %v2166_v16, 0.0  ;;  %v2737_v51 = vmax.f32 %v2352_v36, 0.0  ;;  %v5745_v36 = vld [vmem:[#allocation72_spill] sm:$0xff] }
 0x325   : > { %3128 = vmatpush.msra.mxu1 %v2791_v35  ;;  %v2169_v35 = vadd.f32 %v5200_v32, %v5209_v12  ;;  %v2148_v12 = vadd.f32 %v5200_v32, %v5066_v9  ;;  %v2346_v9 = vadd.f32 %v5200_v32, %v5137_v40  ;;  %v2142_v41 = vadd.f32 %v5200_v32, %v5027_v8 }
 0x326   : > { %2983 = vmatpush.msrb.mxu3 %v2684_v58  ;;  %2908 = vmatpush.msra.mxu2 %v2615_v6  ;;  %v2674_v1 = vmax.f32 %v2163_v15, 0.0  ;;  %v2736_v19 = vmax.f32 %v2349_v26, 0.0  ;;  %v2139_v52 = vadd.f32 %v5200_v32, %v5011_v11  ;;  %v2668_v58 = vmax.f32 %v2145_v45, 0.0  ;;  %v5747_v45 = vld [vmem:[#allocation70_spill] sm:$0xff] }
 0x327   : > { %3129 = vmatpush.msra.mxu1 %v2790_v62  ;;  %v2676_v25 = vmax.f32 %v2169_v35, 0.0  ;;  %v2669_v17 = vmax.f32 %v2148_v12, 0.0  ;;  %v2343_v40 = vadd.f32 %v5200_v32, %v5119_v13  ;;  %v2735_v28 = vmax.f32 %v2346_v9, 0.0  ;;  %v5743_v35 = vld [vmem:[#allocation90_spill] sm:$0xff] }
 0x328   : > { %2984 = vmatpush.msrb.mxu3 %v2683_v27  ;;  %2909 = vmatpush.msra.mxu2 %v2614_v60  ;;  %v2136_v8 = vadd.f32 %v5200_v32, %v4992_v54  ;;  %v2667_v62 = vmax.f32 %v2142_v41, 0.0  ;;  %v2340_v56 = vadd.f32 %v5200_v32, %v5731_v38  ;;  %v2133_v11 = vadd.f32 %v5200_v32, %v5732_v7  ;;  %v5733_v27 = vld [vmem:[#allocation95_spill] sm:$0xff] }
 0x329   : > { %3130 = vmatpush.msra.mxu1 %v2789_v49  ;;  %v2666_v6 = vmax.f32 %v2139_v52, 0.0  ;;  %v2337_v13 = vadd.f32 %v5200_v32, %v5733_v27  ;;  %v2734_v18 = vmax.f32 %v2343_v40, 0.0  ;;  %v5734_v49 = vld [vmem:[#allocation88_spill] sm:$0xff]  ;;  %v2334_v60 = vadd.f32 %v5200_v32, %v5735_v44  ;;  %v2809_v40 = vld [vmem:[%s5586_s7 + $0x38] sm:$0xff]  ;;  %v5752_v38 = vld [vmem:[#allocation79_spill] sm:$0xff] }
 0x32a   : > { %2985 = vmatpush.msrb.mxu3 %v2682_v0  ;;  %2910 = vmatpush.msra.mxu2 %v2613_v46  ;;  %v2130_v54 = vadd.f32 %v5200_v32, %v5734_v49  ;;  %v2665_v59 = vmax.f32 %v2136_v8, 0.0  ;;  %v2733_v0 = vmax.f32 %v2340_v56, 0.0  ;;  %v2664_v31 = vmax.f32 %v2133_v11, 0.0  ;;  %v5753_v11 = vld [vmem:[#allocation64_spill] sm:$0xff]  ;;  %v5756_v44 = vld [vmem:[#allocation62_spill] sm:$0xff] }
 0x32b   : > { %3131 = vmatpush.msra.mxu1 %v2788_v43  ;;  %v2127_v43 = vadd.f32 %v5200_v32, %v5736_v39  ;;  %v2331_v46 = vadd.f32 %v5200_v32, %v5737_v34  ;;  %v2731_v14 = vmax.f32 %v2334_v60, 0.0  ;;  %v2325_v30 = vadd.f32 %v5200_v32, %v5741_v22  ;;  %v5758_v34 = vld [vmem:[#allocation60_spill] sm:$0xff] }
 0x32c   : > { %2986 = vmatpush.msrb.mxu3 %v2681_v21  ;;  %2911 = vmatpush.msra.mxu2 %v2612_v5  ;;  %v2732_v21 = vmax.f32 %v2337_v13, 0.0  ;;  %v2328_v5 = vadd.f32 %v5200_v32, %v5739_v55  ;;  %v2304_v12 = vadd.f32 %v5200_v32, %v5745_v36  ;;  %v2310_v56 = vadd.f32 %v5200_v32, %v5752_v38  ;;  %v5754_v13 = vld [vmem:[#allocation75_spill] sm:$0xff] }
 0x32d   : > { %3132 = vmatpush.msra.mxu1 %v2787_v61  ;;  %v5738_v61 = vld [vmem:[#allocation84_spill] sm:$0xff]  ;;  %v2289_v60 = vadd.f32 %v5200_v32, %v5756_v44  ;;  %v5765_v36 = vld [vmem:[#allocation67_spill] sm:$0xff]  ;;  %v5776_v44 = vld [vmem:[#allocation42_spill] sm:$0xff] }
 0x32e   : > { %2987 = vmatpush.msrb.mxu3 %v2680_v3  ;;  %2912 = vmatpush.msra.mxu2 %v2611_v53  ;;  %v2124_v24 = vadd.f32 %v5200_v32, %v5738_v61  ;;  %v2663_v3 = vmax.f32 %v2130_v54, 0.0  ;;  %v2662_v53 = vmax.f32 %v2127_v43, 0.0  ;;  %v2729_v10 = vmax.f32 %v2328_v5, 0.0  ;;  %v5755_v54 = vld [vmem:[#allocation82_spill] sm:$0xff]  ;;  %v5757_v43 = vld [vmem:[#allocation77_spill] sm:$0xff] }
 0x32f   : > { %3133 = vmatpush.msra.mxu1 %v2786_v50  ;;  %v5740_v50 = vld [vmem:[#allocation81_spill] sm:$0xff]  ;;  %v2723_v39 = vmax.f32 %v2310_v56, 0.0 }
 0x330   : > { %2988 = vmatpush.msrb.mxu3 %v2679_v20  ;;  %2913 = vmatpush.msra.mxu2 %v2610_v42  ;;  %v2121_v20 = vadd.f32 %v5200_v32, %v5740_v50  ;;  %v5742_v42 = vld [vmem:[#allocation76_spill] sm:$0xff]  ;;  %v2813_v5 = vld [vmem:[%s5586_s7 + $0x58] sm:$0xff] }
 0x331   : > { %2914 = vmatmul.f32.vlgmr.msra.gmra.mxu2 %v2806_v48  ;;  %v2118_v2 = vadd.f32 %v5200_v32, %v5742_v42  ;;  %v2322_v48 = vadd.f32 %v5200_v32, %v5743_v35  ;;  %v5762_v42 = vld [vmem:[#allocation56_spill] sm:$0xff]  ;;  %v5763_v35 = vld [vmem:[#allocation69_spill] sm:$0xff] }
 0x332   : > { %2958 = vmatpush.msrb.mxu2 %v2673_v47  ;;  %2989 = vmatpush.msrb.mxu3 %v2678_v63  ;;  %v2730_v63 = vmax.f32 %v2331_v46, 0.0  ;;  %v2661_v47 = vmax.f32 %v2124_v24, 0.0  ;;  %v2286_v46 = vadd.f32 %v5200_v32, %v5758_v34  ;;  %v5759_v24 = vld [vmem:[#allocation74_spill] sm:$0xff] }
 0x333   : > { %v2659_v26 = vmax.f32 %v2118_v2, 0.0  ;;  %v2280_v2 = vadd.f32 %v5200_v32, %v5762_v42  ;;  %v2812_v42 = vld [vmem:[%s5586_s7 + $0x50] sm:$0xff] }
 0x334   : > { %2959 = vmatpush.msrb.mxu2 %v2672_v29  ;;  %2990 = vmatpush.msrb.mxu3 %v2677_v4  ;;  %v5744_v29 = vld [vmem:[#allocation73_spill] sm:$0xff]  ;;  %v2660_v4 = vmax.f32 %v2121_v20, 0.0  ;;  %v2716_v20 = vmax.f32 %v2289_v60, 0.0  ;;  %v2259_v60 = vadd.f32 %v5200_v32, %v5776_v44 }
 0x335   : > { %v2115_v16 = vadd.f32 %v5200_v32, %v5744_v29  ;;  %v5764_v29 = vld [vmem:[#allocation54_spill] sm:$0xff] }
 0x336   : > { %2960 = vmatpush.msrb.mxu2 %v2671_v37  ;;  %2991 = vmatpush.msrb.mxu3 %v2676_v25  ;;  %v5746_v37 = vld [vmem:[#allocation87_spill] sm:$0xff]  ;;  %v2728_v25 = vmax.f32 %v2325_v30, 0.0 }
 0x337   : > { %v2319_v15 = vadd.f32 %v5200_v32, %v5746_v37  ;;  %v2658_v41 = vmax.f32 %v2115_v16, 0.0  ;;  %v2277_v16 = vadd.f32 %v5200_v32, %v5764_v29 }
 0x338   : > { %2961 = vmatpush.msrb.mxu2 %v2670_v23  ;;  %2992 = vmatpush.msrb.mxu3 %v2675_v33  ;;  %v2301_v23 = vadd.f32 %v5200_v32, %v5747_v45  ;;  %v5748_v33 = vld [vmem:[#allocation85_spill] sm:$0xff] }
 0x339   : > { %v2316_v9 = vadd.f32 %v5200_v32, %v5748_v33  ;;  %v5767_v45 = vld [vmem:[#allocation65_spill] sm:$0xff] }
 0x33a   : > { %2962 = vmatpush.msrb.mxu2 %v2669_v17  ;;  %2993 = vmatpush.msrb.mxu3 %v2674_v1  ;;  %v5749_v17 = vld [vmem:[#allocation68_spill] sm:$0xff] }
 0x33b   : > { %2994 = vmatmul.f32.vlgmr.msrb.gmra.mxu3 %v2810_v57  ;;  %v2298_v1 = vadd.f32 %v5200_v32, %v5749_v17  ;;  %v5750_v57 = vld [vmem:[#allocation83_spill] sm:$0xff]  ;;  %v2725_v7 = vmax.f32 %v2316_v9, 0.0  ;;  %v5768_v9 = vld [vmem:[#allocation50_spill] sm:$0xff] }
 0x33c   : > { %3038 = vmatpush.msra.mxu3 %v2737_v51  ;;  %2963 = vmatpush.msrb.mxu2 %v2668_v58  ;;  %v2727_v51 = vmax.f32 %v2322_v48, 0.0  ;;  %v2313_v52 = vadd.f32 %v5200_v32, %v5750_v57  ;;  %v2726_v58 = vmax.f32 %v2319_v15, 0.0  ;;  %v2484_v48 = vadd.f32 %v5200_v32, %v5763_v35  ;;  %v5766_v15 = vld [vmem:[#allocation52_spill] sm:$0xff]  ;;  %v5769_v17 = vld [vmem:[#allocation63_spill] sm:$0xff] }
 0x33d   : > { %v2719_v27 = vmax.f32 %v2298_v1, 0.0  ;;  %v2475_v1 = vadd.f32 %v5200_v32, %v5769_v17  ;;  %v5770_v57 = vld [vmem:[#allocation48_spill] sm:$0xff] }
 0x33e   : > { %3039 = vmatpush.msra.mxu3 %v2736_v19  ;;  %2964 = vmatpush.msrb.mxu2 %v2667_v62  ;;  %v2721_v19 = vmax.f32 %v2304_v12, 0.0  ;;  %v2720_v62 = vmax.f32 %v2301_v23, 0.0  ;;  %v2724_v49 = vmax.f32 %v2313_v52, 0.0  ;;  %v2481_v12 = vadd.f32 %v5200_v32, %v5765_v36 }
 0x33f   : > { %v2478_v23 = vadd.f32 %v5200_v32, %v5767_v45  ;;  %v2781_v33 = vmax.f32 %v2484_v48, 0.0  ;;  %v2268_v52 = vadd.f32 %v5200_v32, %v5770_v57 }
 0x340   : > { %3040 = vmatpush.msra.mxu3 %v2735_v28  ;;  %2965 = vmatpush.msrb.mxu2 %v2666_v6  ;;  %v5751_v28 = vld [vmem:[#allocation66_spill] sm:$0xff]  ;;  %v2292_v6 = vadd.f32 %v5200_v32, %v5753_v11 }
 0x341   : > { %v2295_v8 = vadd.f32 %v5200_v32, %v5751_v28 }
 0x342   : > { %3041 = vmatpush.msra.mxu3 %v2734_v18  ;;  %2966 = vmatpush.msrb.mxu2 %v2665_v59  ;;  %v2307_v18 = vadd.f32 %v5200_v32, %v5754_v13  ;;  %v2496_v59 = vadd.f32 %v5200_v32, %v5755_v54 }
 0x344   : > { %3042 = vmatpush.msra.mxu3 %v2733_v0  ;;  %2967 = vmatpush.msrb.mxu2 %v2664_v31  ;;  %v2718_v0 = vmax.f32 %v2295_v8, 0.0  ;;  %v2493_v31 = vadd.f32 %v5200_v32, %v5757_v43  ;;  %v2722_v61 = vmax.f32 %v2307_v18, 0.0  ;;  %v2785_v55 = vmax.f32 %v2496_v59, 0.0 }
 0x345   : > { %v2779_v8 = vmax.f32 %v2478_v23, 0.0  ;;  %v2709_v18 = vmax.f32 %v2268_v52, 0.0 }
 0x346   : > { %3043 = vmatpush.msra.mxu3 %v2732_v21  ;;  %2968 = vmatpush.msrb.mxu2 %v2663_v3  ;;  %v2717_v21 = vmax.f32 %v2292_v6, 0.0  ;;  %v2490_v3 = vadd.f32 %v5200_v32, %v5759_v24  ;;  %v2784_v30 = vmax.f32 %v2493_v31, 0.0  ;;  %v2778_v6 = vmax.f32 %v2475_v1, 0.0  ;;  %v5778_v31 = vld [vmem:[#allocation55_spill] sm:$0xff]  ;;  %v2816_v1 = vld [vmem:[%s5586_s7 + $0x70] sm:$0xff] }
 0x347   : > { %v2463_v34 = vadd.f32 %v5200_v32, %v5778_v31  ;;  %v5797_v31 = vld [vmem:[#allocation28_spill] sm:$0xff] }
 0x348   : > { %3044 = vmatpush.msra.mxu3 %v2731_v14  ;;  %2969 = vmatpush.msrb.mxu2 %v2662_v53  ;;  %v5760_v14 = vld [vmem:[#allocation58_spill] sm:$0xff]  ;;  %v5761_v53 = vld [vmem:[#allocation71_spill] sm:$0xff] }
 0x349   : > { %v2283_v50 = vadd.f32 %v5200_v32, %v5760_v14  ;;  %v2487_v22 = vadd.f32 %v5200_v32, %v5761_v53  ;;  %v2706_v14 = vmax.f32 %v2259_v60, 0.0 }
 0x34a   : > { %3045 = vmatpush.msra.mxu3 %v2730_v63  ;;  %2970 = vmatpush.msrb.mxu2 %v2661_v47  ;;  %v2814_v63 = vld [vmem:[%s5586_s7 + $0x60] sm:$0xff]  ;;  %v2715_v47 = vmax.f32 %v2286_v46, 0.0 }
 0x34b   : > { %3074 = vmatmul.f32.vlgmr.msrb.gmra.mxu1 %v2814_v63  ;;  %v2782_v37 = vmax.f32 %v2487_v22, 0.0  ;;  %v5782_v22 = vld [vmem:[#allocation51_spill] sm:$0xff]  ;;  %v2774_v63 = vmax.f32 %v2463_v34, 0.0  ;;  %v2403_v34 = vadd.f32 %v5200_v32, %v5797_v31 }
 0x34c   : > { %3046 = vmatpush.msra.mxu3 %v2729_v10  ;;  %2971 = vmatpush.msrb.mxu2 %v2660_v4  ;;  %v2783_v10 = vmax.f32 %v2490_v3, 0.0  ;;  %v2714_v4 = vmax.f32 %v2283_v50, 0.0  ;;  %v5780_v3 = vld [vmem:[#allocation53_spill] sm:$0xff] }
 0x34d   : > { %v5781_v50 = vld [vmem:[#allocation41_spill] sm:$0xff] }
 0x34e   : > { %3047 = vmatpush.msra.mxu3 %v2728_v25  ;;  %2972 = vmatpush.msrb.mxu2 %v2659_v26  ;;  %v2274_v25 = vadd.f32 %v5200_v32, %v5766_v15  ;;  %v2713_v26 = vmax.f32 %v2280_v2, 0.0  ;;  %v2817_v2 = vld [vmem:[%s5586_s7 + $0x78] sm:$0xff] }
 0x350   : > { %3048 = vmatpush.msra.mxu3 %v2727_v51  ;;  %2973 = vmatpush.msrb.mxu2 %v2658_v41  ;;  %v2271_v51 = vadd.f32 %v5200_v32, %v5768_v9  ;;  %v2712_v41 = vmax.f32 %v2277_v16, 0.0  ;;  %v5788_v9 = vld [vmem:[#allocation37_spill] sm:$0xff] }
 0x351   : > { %2974 = vmatmul.f32.vlgmr.msrb.gmra.mxu2 %v2809_v40  ;;  %v5771_v40 = vld [vmem:[#allocation61_spill] sm:$0xff] }
 0x352   : > { %3018 = vmatpush.msra.mxu2 %v2721_v19  ;;  %3049 = vmatpush.msra.mxu3 %v2726_v58  ;;  %v2780_v19 = vmax.f32 %v2481_v12, 0.0  ;;  %v2711_v58 = vmax.f32 %v2274_v25, 0.0  ;;  %v2472_v28 = vadd.f32 %v5200_v32, %v5771_v40  ;;  %v2710_v56 = vmax.f32 %v2271_v51, 0.0 }
 0x353   : > { %3134 = vmatmul.f32.vlgmr.msra.gmra.mxu1 %v2817_v2  ;;  %v2430_v51 = vadd.f32 %v5200_v32, %v5788_v9  ;;  %v3168_v2 = vld [vmem:[%s5592_s13] sm:$0x1f] }
 0x354   : > { %3019 = vmatpush.msra.mxu2 %v2720_v62  ;;  %3050 = vmatpush.msra.mxu3 %v2725_v7  ;;  %v5772_v62 = vld [vmem:[#allocation46_spill] sm:$0xff]  ;;  %v5773_v7 = vld [vmem:[#allocation59_spill] sm:$0xff]  ;;  %v2777_v59 = vmax.f32 %v2472_v28, 0.0 }
 0x355   : > { %v2265_v38 = vadd.f32 %v5200_v32, %v5772_v62  ;;  %v2469_v11 = vadd.f32 %v5200_v32, %v5773_v7  ;;  %v2763_v28 = vmax.f32 %v2430_v51, 0.0 }
 0x356   : > { %3020 = vmatpush.msra.mxu2 %v2719_v27  ;;  %3051 = vmatpush.msra.mxu3 %v2724_v49  ;;  %v5774_v27 = vld [vmem:[#allocation44_spill] sm:$0xff]  ;;  %v5775_v49 = vld [vmem:[#allocation57_spill] sm:$0xff] }
 0x357   : > { %v2262_v13 = vadd.f32 %v5200_v32, %v5774_v27  ;;  %v2466_v54 = vadd.f32 %v5200_v32, %v5775_v49  ;;  %v2776_v46 = vmax.f32 %v2469_v11, 0.0 }
 0x358   : > { %3021 = vmatpush.msra.mxu2 %v2718_v0  ;;  %3052 = vmatpush.msra.mxu3 %v2723_v39  ;;  %v2708_v0 = vmax.f32 %v2265_v38, 0.0  ;;  %v5777_v39 = vld [vmem:[#allocation45_spill] sm:$0xff] }
 0x359   : > { %v2448_v43 = vadd.f32 %v5200_v32, %v5777_v39 }
 0x35a   : > { %3022 = vmatpush.msra.mxu2 %v2717_v21  ;;  %3053 = vmatpush.msra.mxu3 %v2722_v61  ;;  %v2707_v21 = vmax.f32 %v2262_v13, 0.0  ;;  %v5779_v61 = vld [vmem:[#allocation43_spill] sm:$0xff] }
 0x35b   : > { %3054 = vmatmul.f32.vlgmr.msra.gmra.mxu3 %v2813_v5  ;;  %v2445_v24 = vadd.f32 %v5200_v32, %v5779_v61  ;;  %v2775_v5 = vmax.f32 %v2466_v54, 0.0  ;;  %v2769_v53 = vmax.f32 %v2448_v43, 0.0  ;;  %v2754_v61 = vmax.f32 %v2403_v34, 0.0 }
 0x35c   : > { %3098 = vmatpush.msrb.mxu3 %v2785_v55  ;;  %3023 = vmatpush.msra.mxu2 %v2716_v20  ;;  %v2460_v55 = vadd.f32 %v5200_v32, %v5780_v3  ;;  %v2442_v20 = vadd.f32 %v5200_v32, %v5781_v50  ;;  %v2835_v3 = vpop.f32.mrf.mxu1 }
 0x35d   : > { %v2768_v48 = vmax.f32 %v2445_v24, 0.0  ;;  %v2815_v24 = vld [vmem:[%s5586_s7 + $0x68] sm:$0xff] }
 0x35e   : > { %3099 = vmatpush.msrb.mxu3 %v2784_v30  ;;  %3024 = vmatpush.msra.mxu2 %v2715_v47  ;;  %v2457_v30 = vadd.f32 %v5200_v32, %v5782_v22  ;;  %v5783_v47 = vld [vmem:[#allocation40_spill] sm:$0xff]  ;;  %v2773_v16 = vmax.f32 %v2460_v55, 0.0  ;;  %v2767_v12 = vmax.f32 %v2442_v20, 0.0 }
 0x35f   : > { %v2439_v35 = vadd.f32 %v5200_v32, %v5783_v47  ;;  %v3167_v47 = vld [vmem:[%s664_s3] sm:$0xff] }
 0x360   : > { %3100 = vmatpush.msrb.mxu3 %v2783_v10  ;;  %3025 = vmatpush.msra.mxu2 %v2714_v4  ;;  %v5784_v10 = vld [vmem:[#allocation49_spill] sm:$0xff]  ;;  %v5785_v4 = vld [vmem:[#allocation39_spill] sm:$0xff]  ;;  %v2772_v25 = vmax.f32 %v2457_v30, 0.0 }
 0x361   : > { %v2454_v29 = vadd.f32 %v5200_v32, %v5784_v10  ;;  %v2436_v36 = vadd.f32 %v5200_v32, %v5785_v4  ;;  %v2766_v23 = vmax.f32 %v2439_v35, 0.0 }
 0x362   : > { %3101 = vmatpush.msrb.mxu3 %v2782_v37  ;;  %3026 = vmatpush.msra.mxu2 %v2713_v26  ;;  %v5786_v37 = vld [vmem:[#allocation47_spill] sm:$0xff]  ;;  %v5787_v26 = vld [vmem:[#allocation38_spill] sm:$0xff] }
 0x363   : > { %v2451_v15 = vadd.f32 %v5200_v32, %v5786_v37  ;;  %v2433_v45 = vadd.f32 %v5200_v32, %v5787_v26 }
 0x364   : > { %3102 = vmatpush.msrb.mxu3 %v2781_v33  ;;  %3027 = vmatpush.msra.mxu2 %v2712_v41  ;;  %v2771_v33 = vmax.f32 %v2454_v29, 0.0  ;;  %v2765_v41 = vmax.f32 %v2436_v36, 0.0  ;;  %v2895_v20 = vpop.f32.mrf.mxu1 }
 0x365   : > { %v2770_v17 = vmax.f32 %v2451_v15, 0.0  ;;  %v2764_v52 = vmax.f32 %v2433_v45, 0.0 }
 0x366   : > { %3103 = vmatpush.msrb.mxu3 %v2780_v19  ;;  %3028 = vmatpush.msra.mxu2 %v2711_v58  ;;  %v5789_v19 = vld [vmem:[#allocation36_spill] sm:$0xff]  ;;  %v5790_v58 = vld [vmem:[#allocation35_spill] sm:$0xff] }
 0x367   : > { %v2427_v57 = vadd.f32 %v5200_v32, %v5789_v19  ;;  %v2424_v40 = vadd.f32 %v5200_v32, %v5790_v58  ;;  %v3209_v19 = vld [vmem:[%s5594_s15 + $0x38] sm:$0xff]  ;;  %v3206_v58 = vld [vmem:[%s5594_s15 + $0x20] sm:$0xff] }
 0x368   : > { %3104 = vmatpush.msrb.mxu3 %v2779_v8  ;;  %3029 = vmatpush.msra.mxu2 %v2710_v56  ;;  %v5791_v8 = vld [vmem:[#allocation34_spill] sm:$0xff]  ;;  %v5792_v56 = vld [vmem:[#allocation33_spill] sm:$0xff] }
 0x369   : > { %v2421_v62 = vadd.f32 %v5200_v32, %v5791_v8  ;;  %v2762_v38 = vmax.f32 %v2427_v57, 0.0  ;;  %v2418_v7 = vadd.f32 %v5200_v32, %v5792_v56  ;;  %v2761_v11 = vmax.f32 %v2424_v40, 0.0  ;;  %v3208_v57 = vld [vmem:[%s5594_s15 + $0x30] sm:$0xff]  ;;  %v3785_v40 = vld [vmem:[%s5593_s14] ss:$0 sm:$0xff]  ;;  %v3205_v8 = vld [vmem:[%s5594_s15 + $0x18] sm:$0xff] }
 0x36a   : > { %3105 = vmatpush.msrb.mxu3 %v2778_v6  ;;  %3030 = vmatpush.msra.mxu2 %v2709_v18  ;;  %v5793_v6 = vld [vmem:[#allocation32_spill] sm:$0xff]  ;;  %v5794_v18 = vld [vmem:[#allocation31_spill] sm:$0xff] }
 0x36b   : > { %v2415_v27 = vadd.f32 %v5200_v32, %v5793_v6  ;;  %v2760_v13 = vmax.f32 %v2421_v62, 0.0  ;;  %v2412_v49 = vadd.f32 %v5200_v32, %v5794_v18  ;;  %v2759_v54 = vmax.f32 %v2418_v7, 0.0  ;;  %v3203_v56 = vld [vmem:[%s5594_s15 + $0x8] sm:$0xff]  ;;  %v3784_v6 = vld [vmem:[%s5590_s11] ss:$0 sm:$0xff] }
 0x36c   : > { %3106 = vmatpush.msrb.mxu3 %v2777_v59  ;;  %3031 = vmatpush.msra.mxu2 %v2708_v0  ;;  %v5795_v59 = vld [vmem:[#allocation30_spill] sm:$0xff]  ;;  %v5796_v0 = vld [vmem:[#allocation29_spill] sm:$0xff]  ;;  %v2955_v35 = vpop.f32.mrf.mxu1 }
 0x36d   : > { %v2409_v44 = vadd.f32 %v5200_v32, %v5795_v59  ;;  %v2758_v60 = vmax.f32 %v2415_v27, 0.0  ;;  %v2406_v39 = vadd.f32 %v5200_v32, %v5796_v0  ;;  %v2757_v43 = vmax.f32 %v2412_v49, 0.0 }
 0x36e   : > { %3107 = vmatpush.msrb.mxu3 %v2776_v46  ;;  %3032 = vmatpush.msra.mxu2 %v2707_v21 }
 0x36f   : > { %v2756_v46 = vmax.f32 %v2409_v44, 0.0  ;;  %v2755_v21 = vmax.f32 %v2406_v39, 0.0  ;;  %v3786_v39 = vld [vmem:[%s5595_s16] ss:$0 sm:$0xff] }
 0x370   : > { %3108 = vmatpush.msrb.mxu3 %v2775_v5  ;;  %3033 = vmatpush.msra.mxu2 %v2706_v14 }
 0x371   : > { %3034 = vmatmul.f32.vlgmr.msra.gmra.mxu2 %v2812_v42 }
 0x372   : > { %3078 = vmatpush.msrb.mxu2 %v2769_v53  ;;  %3109 = vmatpush.msrb.mxu3 %v2774_v63  ;;  %v2875_v14 = vpop.f32.mrf.mxu3  ;;  %v3138_v63 = vld [vmem:[%s5589_s10] sm:$0xff] }
 0x374   : > { %3079 = vmatpush.msrb.mxu2 %v2768_v48  ;;  %3110 = vmatpush.msrb.mxu3 %v2773_v16  ;;  %v3015_v36 = vpop.f32.mrf.mxu1 }
 0x375   : > { %v2855_v55 = vpop.f32.mrf.mxu2 }
 0x376   : > { %3080 = vmatpush.msrb.mxu2 %v2767_v12  ;;  %3111 = vmatpush.msrb.mxu3 %v2772_v25  ;;  %v2856_v5 = vadd.f32 %v2855_v55, %v2835_v3 }
 0x378   : > { %3081 = vmatpush.msrb.mxu2 %v2766_v23  ;;  %3112 = vmatpush.msrb.mxu3 %v2771_v33  ;;  %v2876_v50 = vadd.f32 %v2875_v14, %v2856_v5 }
 0x37a   : > { %3082 = vmatpush.msrb.mxu2 %v2765_v41  ;;  %3113 = vmatpush.msrb.mxu3 %v2770_v17  ;;  %v2896_v53 = vadd.f32 %v2895_v20, %v2876_v50 }
 0x37b   : > { %3114 = vmatmul.f32.vlgmr.msrb.gmra.mxu3 %v2816_v1 }
 0x37c   : > { %3083 = vmatpush.msrb.mxu2 %v2764_v52  ;;  %3737 = vmatpush.msk.msra.mxu3 %vm3177_vm10, %v3168_v2  ;;  %v3207_v52 = vld [vmem:[%s5594_s15 + $0x28] sm:$0xff] }
 0x37e   : > { %3084 = vmatpush.msrb.mxu2 %v2763_v28 }
 0x380   : > { %3085 = vmatpush.msrb.mxu2 %v2762_v38  ;;  %v3204_v38 = vld [vmem:[%s5594_s15 + $0x10] sm:$0xff] }
 0x382   : > { %3086 = vmatpush.msrb.mxu2 %v2761_v11  ;;  %v3202_v11 = vld [vmem:[%s5594_s15] sm:$0xff] }
 0x383   : > { %3738 = vmatmul.msk.f32.vlgmr.msra.gmra.mxu3 %vm3173_vm11, %v3167_v47 }
 0x384   : > { %3087 = vmatpush.msrb.mxu2 %v2760_v13 }
 0x386   : > { %3088 = vmatpush.msrb.mxu2 %v2759_v54 }
 0x388   : > { %3089 = vmatpush.msrb.mxu2 %v2758_v60 }
 0x38a   : > { %3090 = vmatpush.msrb.mxu2 %v2757_v43 }
 0x38c   : > { %3091 = vmatpush.msrb.mxu2 %v2756_v46 }
 0x38e   : > { %3092 = vmatpush.msrb.mxu2 %v2755_v21  ;;  %v5798_v21 = vld [vmem:[#allocation78_spill] sm:$0xff] }
 0x390   : > { %3093 = vmatpush.msrb.mxu2 %v2754_v61 }
 0x391   : > { %3094 = vmatmul.f32.vlgmr.msrb.gmra.mxu2 %v2815_v24 }
 0x392   : > { %3162 = vmatpush.msra.mxu2 %v3138_v63 }
 0x394   : > { %3226 = vmatpush.msrb.mxu2 %v3209_v19 }
 0x396   : > { %3227 = vmatpush.msrb.mxu2 %v3208_v57 }
 0x398   : > { %3228 = vmatpush.msrb.mxu2 %v3207_v52 }
 0x39a   : > { %3229 = vmatpush.msrb.mxu2 %v3206_v58 }
 0x39c   : > { %3230 = vmatpush.msrb.mxu2 %v3205_v8 }
 0x39e   : > { %3231 = vmatpush.msrb.mxu2 %v3204_v38 }
 0x3a0   : > { %v2935_v30 = vpop.f32.mrf.mxu3  ;;  %3232 = vmatpush.msrb.mxu2 %v3203_v56 }
 0x3a2   : > { %3233 = vmatpush.msrb.mxu2 %v3202_v11 }
 0x3b4   : > { %v2915_v32 = vpop.f32.mrf.mxu2 }
 0x3b5   : > { %v2916_v22 = vadd.f32 %v2915_v32, %v2896_v53 }
 0x3b7   : > { %v2936_v42 = vadd.f32 %v2935_v30, %v2916_v22 }
 0x3b9   : > { %v2956_v10 = vadd.f32 %v2955_v35, %v2936_v42 }
 0x3be   : > { %v2995_v16 = vpop.f32.mrf.mxu3 }
 0x3c8   : > { %v3075_v26 = vpop.f32.mrf.mxu1 }
 0x3d0   : > { %v3135_v41 = vpop.f32.mrf.mxu1 }
 0x3d4   : > { %v2975_v48 = vpop.f32.mrf.mxu2 }
 0x3d5   : > { %v2976_v29 = vadd.f32 %v2975_v48, %v2956_v10 }
 0x3d7   : > { %v2996_v4 = vadd.f32 %v2995_v16, %v2976_v29 }
 0x3d9   : > { %v3016_v37 = vadd.f32 %v3015_v36, %v2996_v4 }
 0x3de   : > { %v3055_v25 = vpop.f32.mrf.mxu3 }
 0x3f4   : > { %v3035_v12 = vpop.f32.mrf.mxu2 }
 0x3f5   : > { %v3036_v15 = vadd.f32 %v3035_v12, %v3016_v37 }
 0x3f7   : > { %v3056_v45 = vadd.f32 %v3055_v25, %v3036_v15 }
 0x3f9   : > { %v3076_v23 = vadd.f32 %v3075_v26, %v3056_v45 }
 0x3fe   : > { %v3115_v9 = vpop.f32.mrf.mxu3 }
 0x406   : > { %v3198_v28 = vpop.f32.mrf.mxu3 }
 0x407   : > { %v3199_v62 = vadd.f32 %v3785_v40, %v3198_v28 }
 0x409   : > { %v3201_v7 = vmax.f32 %v3199_v62, 0.0 }
 0x414   : > { %v3095_v33 = vpop.f32.mrf.mxu2 }
 0x415   : > { %v3096_v51 = vadd.f32 %v3095_v33, %v3076_v23  ;;  %v3270_v23 = vstv %s5552_s26 }
 0x417   : > { %v3116_v17 = vadd.f32 %v3115_v9, %v3096_v51  ;;  %v3271_v9 = vmul.f32 %v3270_v23, %v5798_v21 }
 0x419   : > { %v3136_v1 = vadd.f32 %v3135_v41, %v3116_v17  ;;  %v3272_v41 = vadd.f32 1e-05, %v3271_v9 }
 0x41b   : > { %3736 = vmatmul.msk.f32.vlgmr.msra.gmra.mxu2 %vm3143_vm12, %v3136_v1  ;;  %vm3279_vm14 = vweird.f32 %v3272_v41 }
 0x423   : > { %3739 = vmatmul.msk.f32.vlgmr.msrb.gmra.mxu2 %vm3214_vm13, %v3201_v7 }
 0x49e   : > { %v3164_v27 = vpop.f32.mrf.mxu2 }
 0x49f   : > { %v3165_v13 = vadd.f32 %v3784_v6, %v3164_v27 }
 0x4a1   : > { %3286 = vadd.xlane.f32.xlu2 %v3165_v13 }
 0x4a6   : > { %v3235_v43 = vpop.f32.mrf.mxu2 }
 0x4a7   : > { %v3236_v31 = vadd.f32 %v3786_v39, %v3235_v43  ;;  %v3239_v39 = vld [vmem:[%s5596_s17] sm:$0xff] }
 0x4a9   : > { %v3238_v34 = vmax.f32 %v3236_v31, 0.0 }
 0x4ab   : > { %3325 = vadd.xlane.f32.xlu2 %v3238_v34 }
 0x514   : > { %v3287_v18 = vpop.xlane.xlu2 %3286 }
 0x515   : > { %v3288_v49 = vrot.slane %v3287_v18, 4 }
 0x517   : > { %v3289_v54 = vadd.f32 %v3288_v49, %v3287_v18 }
 0x519   : > { %v3290_v59 = vrot.slane %v3289_v54, 2 }
 0x51b   : > { %v3291_v44 = vadd.f32 %v3290_v59, %v3289_v54 }
 0x51d   : > { %v3292_v60 = vrot.slane %v3291_v44, 1 }
 0x51e   : > { %v3326_v55 = vpop.xlane.xlu2 %3325 }
 0x51f   : > { %v3293_v0 = vadd.f32 %v3292_v60, %v3291_v44  ;;  %v3327_v5 = vrot.slane %v3326_v55, 4  ;;  %v5799_v60 = vld [vmem:[#allocation80_spill] sm:$0xff] }
 0x521   : > { %3759 = vpush %v3293_v0  ;;  %v3328_v14 = vadd.f32 %v3327_v5, %v3326_v55 }
 0x523   : > { %v3329_v20 = vrot.slane %v3328_v14, 2 }
 0x525   : > { %v3330_v22 = vadd.f32 %v3329_v20, %v3328_v14 }
 0x527   : > { %v3331_v42 = vrot.slane %v3330_v22, 1 }
 0x529   : > { %v3332_v35 = vadd.f32 %v3331_v42, %v3330_v22 }
 0x552   : > { %s3760_s27 = spop %3759 }
 0x553   : > { %v3295_v46 = vstv %s3760_s27 }
 0x554   : > { %v3296_v61 = vmul.f32 %v3295_v46, %v5798_v21 }
 0x556   : > { %v5555_v24 = vsub.f32 %v3165_v13, %v3296_v61 }
 0x558   : > { %v3298_v3 = vmul.f32 %v5555_v24, %v5555_v24 }
 0x55a   : > { %3299 = vadd.xlane.f32.xlu0 %v3298_v3 }
 0x5cd   : > { %v3300_v50 = vpop.xlane.xlu0 %3299 }
 0x5ce   : > { %v3301_v32 = vrot.slane %v3300_v50, 4 }
 0x5d0   : > { %v3302_v53 = vadd.f32 %v3301_v32, %v3300_v50 }
 0x5d2   : > { %v3303_v30 = vrot.slane %v3302_v53, 2 }
 0x5d4   : > { %v3304_v63 = vadd.f32 %v3303_v30, %v3302_v53 }
 0x5d6   : > { %v3305_v2 = vrot.slane %v3304_v63, 1 }
 0x5d8   : > { %v3306_v47 = vadd.f32 %v3305_v2, %v3304_v63 }
 0x5da   : > { %3761 = vpush %v3306_v47 }
 0x5db   : > { %3763 = vpush %v3332_v35 }
 0x60b   : > { %s3762_s20 = spop %3761 }
 0x60c   : > { %s3764_s21 = spop %3763  ;;  %v3308_v45 = vstv %s3762_s20 }
 0x60d   : > { %v3334_v48 = vstv %s3764_s21  ;;  %v3309_v33 = vmul.f32 %v3308_v45, %v5798_v21 }
 0x60e   : > { %v3335_v10 = vmul.f32 %v3334_v48, %v5798_v21 }
 0x60f   : > { %v3310_v51 = vadd.f32 1e-05, %v3309_v33 }
 0x610   : > { %v3336_v29 = vsub.f32 %v3238_v34, %v3335_v10 }
 0x611   : > { %3793 = vrsqrt.f32 %v3310_v51  ;;  %vm3317_vm2 = vweird.f32 %v3310_v51 }
 0x612   : > { %v3337_v16 = vmul.f32 %v3336_v29, %v3336_v29  ;;  %3795 = vrsqrt.f32 %v3272_v41 }
 0x614   : > { %3338 = vadd.xlane.f32.xlu0 %v3337_v16 }
 0x617   : > { %v3794_v17 = vpop.eup %3793 }
 0x618   : > { %v3796_v1 = vpop.eup %3795  ;;  %v3312_v19 = vmul.f32 %v3794_v17, %v3310_v51  ;;  %vm3318_vm0 = vweird.f32 %v3794_v17 }
 0x619   : > { %v3274_v57 = vmul.f32 %v3796_v1, %v3272_v41  ;;  %vm3280_vm15 = vweird.f32 %v3796_v1  ;;  %vm3319_vm3 = vmor %vm3317_vm2, %vm3318_vm0 }
 0x61a   : > { %v3313_v52 = vmul.f32 %v3794_v17, %v3312_v19  ;;  %vm3281_vm1 = vmor %vm3279_vm14, %vm3280_vm15 }
 0x61b   : > { %v3275_v58 = vmul.f32 %v3796_v1, %v3274_v57 }
 0x61c   : > { %v3314_v40 = vmul.f32 0.5, %v3313_v52 }
 0x61d   : > { %v3276_v62 = vmul.f32 0.5, %v3275_v58 }
 0x61e   : > { %v3315_v56 = vsub.f32 1.5, %v3314_v40 }
 0x61f   : > { %v3277_v7 = vsub.f32 1.5, %v3276_v62 }
 0x620   : > { %v3316_v11 = vmul.f32 %v3794_v17, %v3315_v56 }
 0x621   : > { %v3278_v6 = vmul.f32 %v3796_v1, %v3277_v7 }
 0x622   : > { %v3320_v13 = vsel %vm3319_vm3, %v3794_v17, %v3316_v11 }
 0x623   : > { %v3282_v49 = vsel %vm3281_vm1, %v3796_v1, %v3278_v6  ;;  %v3321_v59 = vmul.f32 %v3320_v13, %v5555_v24 }
 0x624   : > { %v3283_v0 = vmul.f32 %v3282_v49, %v5799_v60 }
 0x625   : > { %v3322_v31 = vmul.f32 %v3321_v59, %v3239_v39 }
 0x626   : > { %v3284_v46 = vmul.f32 %v3283_v0, %v3239_v39 }
 0x687   : > { %v3339_v4 = vpop.xlane.xlu0 %3338 }
 0x688   : > { %v3340_v36 = vrot.slane %v3339_v4, 4 }
 0x68a   : > { %v3341_v12 = vadd.f32 %v3340_v36, %v3339_v4 }
 0x68c   : > { %v3342_v37 = vrot.slane %v3341_v12, 2 }
 0x68e   : > { %v3343_v15 = vadd.f32 %v3342_v37, %v3341_v12 }
 0x690   : > { %v3344_v25 = vrot.slane %v3343_v15, 1 }
 0x692   : > { %v3345_v26 = vadd.f32 %v3344_v25, %v3343_v15 }
 0x694   : > { %3765 = vpush %v3345_v26 }
 0x6c5   : > { %s3766_s28 = spop %3765 }
 0x6c6   : > { %v3347_v28 = vstv %s3766_s28 }
 0x6c7   : > { %v3348_v8 = vmul.f32 %v3347_v28, %v5798_v21  ;;  %v3240_v21 = vld [vmem:[%s5597_s18] sm:$0xff] }
 0x6c8   : > { %v3323_v24 = vadd.f32 %v3322_v31, %v3240_v21  ;;  %v3285_v55 = vadd.f32 %v3284_v46, %v3240_v21 }
 0x6c9   : > { %v3349_v38 = vadd.f32 1e-05, %v3348_v8 }
 0x6ca   : > { %v3324_v14 = vadd.f32 %v3323_v24, %v3285_v55 }
 0x6cb   : > { %3797 = vrsqrt.f32 %v3349_v38  ;;  %vm3356_vm5 = vweird.f32 %v3349_v38 }
 0x6d1   : > { %v3798_v27 = vpop.eup %3797 }
 0x6d2   : > { %v3351_v18 = vmul.f32 %v3798_v27, %v3349_v38  ;;  %vm3357_vm4 = vweird.f32 %v3798_v27 }
 0x6d3   : > { %vm3358_vm6 = vmor %vm3356_vm5, %vm3357_vm4 }
 0x6d4   : > { %v3352_v54 = vmul.f32 %v3798_v27, %v3351_v18 }
 0x6d6   : > { %v3353_v44 = vmul.f32 0.5, %v3352_v54 }
 0x6d8   : > { %v3354_v43 = vsub.f32 1.5, %v3353_v44 }
 0x6da   : > { %v3355_v34 = vmul.f32 %v3798_v27, %v3354_v43 }
 0x6dc   : > { %v3359_v61 = vsel %vm3358_vm6, %v3798_v27, %v3355_v34 }
 0x6dd   : > { %v3360_v3 = vmul.f32 %v3359_v61, %v3336_v29 }
 0x6df   : > { %v3361_v5 = vmul.f32 %v3360_v3, %v3239_v39 }
 0x6e1   : > { %v3362_v50 = vadd.f32 %v3361_v5, %v3240_v21 }
 0x6e3   : > { %v3363_v20 = vadd.f32 %v3362_v50, %v3324_v14 }
 0x6e5   : > { %3364 = vst [vmem:[%s668_s30] sm:$0xff] %v3363_v20 }
 0x6e6 PF: > { %s29_s0 = sadd.s32 1, %s3807_s0  }
 0x6e7   : > { %p26_p4 = scmp.ge.s32.totalorder %s29_s0, 4  }
 0x6e9   :  { %28 = sbr.rel (!%p26_p4) target bundleno = 5 (0x5), region = 138 }

</bundles_post_ra>
